<compile_context>
chip_gen: v7x
topology: tpu7x:2x2x1
jax: 0.10.0
libtpu: 0.0.40
codegen_flags: <defaults>
</compile_context>

<pallas_src>
import math
from functools import partial

import jax
import jax.numpy as jnp
from jax.experimental import pallas as pl
from jax.experimental.pallas import tpu as pltpu

LN_EPS = 1e-12                     # BertConfig layer_norm_eps


# --------------------------- feature / hardware probes ---------------------------

_BUFFERED_SUPPORTED = None


def _has_buffered():
    """Feature-detect pl.Buffered(1) with a tiny probe kernel (no broad except
    around the real kernels, so genuine lowering errors still surface)."""
    global _BUFFERED_SUPPORTED
    if _BUFFERED_SUPPORTED is None:
        ok = hasattr(pl, "Buffered")
        if ok:
            try:
                def _probe(c_ref, o_ref):
                    o_ref[...] = c_ref[...] * 2.0

                x = jnp.ones((8, 128), jnp.float32)
                y = pl.pallas_call(
                    _probe,
                    out_shape=jax.ShapeDtypeStruct((8, 128), jnp.float32),
                    grid=(1,),
                    in_specs=[pl.BlockSpec((8, 128), lambda i: (0, 0),
                                           pipeline_mode=pl.Buffered(1))],
                    out_specs=pl.BlockSpec((8, 128), lambda i: (0, 0)),
                )(x)
                jax.block_until_ready(y)
            except Exception:
                ok = False
        _BUFFERED_SUPPORTED = ok
    return _BUFFERED_SUPPORTED


def _vmem_limit_bytes():
    """Per-generation VMEM budget: ~56 MiB on v7x (64 MiB physical),
    ~112 MiB on v5e/v6e (128 MiB physical)."""
    cap = 128 * 1024 * 1024
    try:
        info = pltpu.get_tpu_info()
        cap = int(getattr(info, "vmem_capacity_bytes", cap)) or cap
    except Exception:
        pass
    return min(cap * 7 // 8, 112 * 1024 * 1024)


def _const_spec(shape, grid_rank):
    """BlockSpec for a block whose index_map is constant over the grid
    (weights / biases / LN params): single-buffer it when supported."""
    zeros = (0,) * len(shape)
    if grid_rank == 1:
        imap = lambda b: zeros
    else:
        imap = lambda b, q: zeros
    if _has_buffered():
        return pl.BlockSpec(shape, imap, pipeline_mode=pl.Buffered(1))
    return pl.BlockSpec(shape, imap)


def _choose_q_tile(seq_len):
    if seq_len <= 256:
        return seq_len
    for t in (256, 128, 64, 32, 16, 8):
        if seq_len % t == 0:
            return t
    return seq_len


# ------------------------------- in-kernel helpers -------------------------------

def _layer_norm(x, g, b):
    # single-pass statistics: E[x^2] - mu^2 (both reductions independent)
    mu = jnp.mean(x, axis=-1, keepdims=True)
    ms = jnp.mean(x * x, axis=-1, keepdims=True)
    var = ms - mu * mu
    return (x - mu) * jax.lax.rsqrt(var + LN_EPS) * g + b


def _gelu_tanh(x):
    # tanh-approximate GELU (EUP tanh instead of a VALU-heavy erf polynomial);
    # |delta| vs exact-erf GELU < 1e-3.
    c = 0.7978845608028654  # sqrt(2/pi)
    return 0.5 * x * (1.0 + jnp.tanh(c * (x + 0.044715 * x * x * x)))


def _softmax_last(x):
    m = jnp.max(x, axis=-1, keepdims=True)
    e = jnp.exp(x - m)
    return e * pl.reciprocal(jnp.sum(e, axis=-1, keepdims=True), approx=True)


# --------------------------------- Pallas kernels ---------------------------------

def embed_ln_kernel(we_ref, pe_ref, te_ref, g_ref, b_ref, o_ref):
    # fused word+pos+type sum + LayerNorm (f32 math, bf16 store to HBM)
    e = we_ref[0] + pe_ref[...] + te_ref[...]          # (S,H) + (S,H) + (1,H)
    o_ref[0] = _layer_norm(e, g_ref[...], b_ref[...]).astype(o_ref.dtype)


def embed_layernorm(we, pe, te, gamma, beta):
    B, S, H = we.shape
    return pl.pallas_call(
        embed_ln_kernel,
        out_shape=jax.ShapeDtypeStruct((B, S, H), jnp.bfloat16),
        grid=(B,),
        in_specs=[
            pl.BlockSpec((1, S, H), lambda b: (b, 0, 0)),   # word-emb gather result
            _const_spec((S, H), 1),                         # position embeddings 0..S-1
            _const_spec((1, H), 1),                         # token-type-0 embedding
            _const_spec((1, H), 1),                         # LN gamma
            _const_spec((1, H), 1),                         # LN beta
        ],
        out_specs=pl.BlockSpec((1, S, H), lambda b: (b, 0, 0)),
        compiler_params=pltpu.CompilerParams(
            dimension_semantics=("parallel",),
            vmem_limit_bytes=_vmem_limit_bytes()),
    )(we, pe, te, gamma, beta)


def encoder_layer_kernel(x_ref, amask_ref, wqkv_ref, bqkv_ref, wo_ref,
                         wi_ref, bi_ref, wout_ref, vec_ref,
                         o_ref, kv_scr, *, num_heads, head_dim, q_tile):
    H = num_heads * head_dim
    qi = pl.program_id(1)

    # --- K / V for the full sequence: computed once per batch row (qi == 0),
    #     cached head-major in VMEM scratch (persists across the q-tile axis).
    #     Head indexing uses leading dims of per-head weight blocks: no lane
    #     slicing, no stack/concat, all canonical 2-D MXU matmuls. ---
    @pl.when(qi == 0)
    def _():
        x_all = x_ref[0]                                            # (S, H) bf16
        for n in range(num_heads):
            k_n = jnp.dot(x_all, wqkv_ref[1, n],
                          preferred_element_type=jnp.float32) + bqkv_ref[1, n]
            v_n = jnp.dot(x_all, wqkv_ref[2, n],
                          preferred_element_type=jnp.float32) + bqkv_ref[2, n]
            kv_scr[0, n] = k_n.astype(jnp.bfloat16)                 # (S, hd)
            kv_scr[1, n] = v_n.astype(jnp.bfloat16)

    # --- current query tile of the residual stream (bf16 in HBM, f32 math) ---
    q0 = pl.multiple_of(qi * q_tile, q_tile)
    xq = x_ref[0, pl.ds(q0, q_tile), :]                             # (tq, H) bf16
    x_res = xq.astype(jnp.float32)
    amask = amask_ref[0]                                            # (1, S) additive mask

    # --- attention: per-head MXU matmuls, output projection folded per head ---
    attn = jnp.zeros((q_tile, H), jnp.float32)
    for n in range(num_heads):
        # 1/sqrt(head_dim) is folded into wqkv_ref[0]/bqkv_ref[0] host-side.
        q_n = (jnp.dot(xq, wqkv_ref[0, n], preferred_element_type=jnp.float32)
               + bqkv_ref[0, n]).astype(jnp.bfloat16)               # (tq, hd)
        k_n = kv_scr[0, n]                                          # (S, hd) bf16
        v_n = kv_scr[1, n]                                          # (S, hd) bf16
        s_n = jax.lax.dot_general(                                  # (tq, S) f32
            q_n, k_n, (((1,), (1,)), ((), ())),
            preferred_element_type=jnp.float32) + amask
        p_n = _softmax_last(s_n).astype(jnp.bfloat16)               # f32 stats, bf16 PV
        ctx_n = jnp.dot(p_n, v_n, preferred_element_type=jnp.float32)  # (tq, hd)
        attn = attn + jnp.dot(ctx_n.astype(jnp.bfloat16), wo_ref[n],
                              preferred_element_type=jnp.float32)   # (tq, H)

    ln1_g, ln1_b = vec_ref[0], vec_ref[1]
    ln2_g, ln2_b = vec_ref[2], vec_ref[3]
    b_o, b_out = vec_ref[4], vec_ref[5]

    x1 = _layer_norm(attn + b_o + x_res, ln1_g, ln1_b)              # post-attn LN

    # --- feed forward (bf16 MXU operands, f32 accumulate) ---
    hmid = _gelu_tanh(jnp.dot(x1.astype(jnp.bfloat16), wi_ref[...],
                              preferred_element_type=jnp.float32) + bi_ref[...])
    ffn = jnp.dot(hmid.astype(jnp.bfloat16), wout_ref[...],
                  preferred_element_type=jnp.float32) + b_out
    o_ref[0] = _layer_norm(ffn + x1, ln2_g, ln2_b).astype(o_ref.dtype)


def encoder_layer(x, amask, kp, *, num_heads):
    B, S, H = x.shape
    head_dim = H // num_heads
    I = kp['w_i'].shape[1]
    tq = _choose_q_tile(S)
    nq = S // tq
    kernel = partial(encoder_layer_kernel, num_heads=num_heads,
                     head_dim=head_dim, q_tile=tq)

    cost = pl.CostEstimate(
        flops=2 * B * S * H * (4 * H + 2 * S + 2 * I),
        transcendentals=B * S * (num_heads * S + I),
        bytes_accessed=(4 * B * S * H + 4 * B * S
                        + 2 * (4 * H * H + 2 * H * I) + 4 * (8 * H + I)),
    )

    return pl.pallas_call(
        kernel,
        out_shape=jax.ShapeDtypeStruct((B, S, H), jnp.bfloat16),
        grid=(B, nq),
        in_specs=[
            pl.BlockSpec((1, S, H), lambda b, q: (b, 0, 0)),   # x: resident per batch row
            pl.BlockSpec((1, 1, S), lambda b, q: (b, 0, 0)),   # additive attention mask
            _const_spec((3, num_heads, H, head_dim), 2),       # per-head Q/K/V weights (bf16)
            _const_spec((3, num_heads, 1, head_dim), 2),       # per-head Q/K/V biases (f32)
            _const_spec((num_heads, head_dim, H), 2),          # per-head output proj (bf16)
            _const_spec((H, I), 2),                            # FFN in weight (bf16)
            _const_spec((1, I), 2),                            # FFN in bias (f32)
            _const_spec((I, H), 2),                            # FFN out weight (bf16)
            _const_spec((6, 1, H), 2),                         # [ln1_g,ln1_b,ln2_g,ln2_b,b_o,b_out]
        ],
        out_specs=pl.BlockSpec((1, tq, H), lambda b, q: (b, q, 0)),
        scratch_shapes=[pltpu.VMEM((2, num_heads, S, head_dim), jnp.bfloat16)],
        compiler_params=pltpu.CompilerParams(
            dimension_semantics=("parallel", "arbitrary"),
            vmem_limit_bytes=_vmem_limit_bytes()),
        cost_estimate=cost,
    )(x, amask, kp['wqkv_h'], kp['b_qkv_h'], kp['wo_h'],
      kp['w_i'], kp['b_i'], kp['w_out'], kp['vec6'])


# ------------------------------ parameters / glue ------------------------------

def init_params(key, *, vocab_size, max_pos, type_vocab, hidden, intermediate,
                num_layers, init_range=0.02):
    keys = iter(jax.random.split(key, 4 + 20 * num_layers))

    def nrm(shape):
        return init_range * jax.random.normal(next(keys), shape, jnp.float32)

    params = {
        'word_emb': nrm((vocab_size, hidden)),
        'pos_emb': nrm((max_pos, hidden)),
        'type_emb': nrm((type_vocab, hidden)),
        'emb_ln_g': jnp.ones((1, hidden), jnp.float32),
        'emb_ln_b': jnp.zeros((1, hidden), jnp.float32),
        'layers': [],
    }
    for _ in range(num_layers):
        params['layers'].append({
            'w_q': nrm((hidden, hidden)), 'b_q': nrm((hidden,)),
            'w_k': nrm((hidden, hidden)), 'b_k': nrm((hidden,)),
            'w_v': nrm((hidden, hidden)), 'b_v': nrm((hidden,)),
            'w_o': nrm((hidden, hidden)), 'b_o': nrm((hidden,)),
            'ln1_g': 1.0 + nrm((hidden,)), 'ln1_b': nrm((hidden,)),
            'w_i': nrm((hidden, intermediate)), 'b_i': nrm((intermediate,)),
            'w_out': nrm((intermediate, hidden)), 'b_out': nrm((hidden,)),
            'ln2_g': 1.0 + nrm((hidden,)), 'ln2_b': nrm((hidden,)),
        })
    return params


def prepare_layer_params(lp, *, num_heads):
    """Host-side weight prep: per-head Q/K/V/O blocks, 1/sqrt(hd) folded into
    Q weight+bias, matmul operands cast to bf16, small vectors packed."""
    H = lp['w_q'].shape[0]
    hd = H // num_heads
    scale = 1.0 / math.sqrt(hd)

    def heads_w(w):                       # (H, H) -> (nh, H, hd)
        return w.reshape(H, num_heads, hd).transpose(1, 0, 2)

    def heads_b(b):                       # (H,) -> (nh, 1, hd)
        return b.reshape(num_heads, 1, hd)

    wqkv_h = jnp.stack([heads_w(lp['w_q']) * scale,
                        heads_w(lp['w_k']),
                        heads_w(lp['w_v'])]).astype(jnp.bfloat16)      # (3, nh, H, hd)
    b_qkv_h = jnp.stack([heads_b(lp['b_q']) * scale,
                         heads_b(lp['b_k']),
                         heads_b(lp['b_v'])]).astype(jnp.float32)      # (3, nh, 1, hd)
    wo_h = lp['w_o'].reshape(num_heads, hd, H).astype(jnp.bfloat16)    # (nh, hd, H)
    vec6 = jnp.stack([lp['ln1_g'], lp['ln1_b'], lp['ln2_g'], lp['ln2_b'],
                      lp['b_o'], lp['b_out']]).reshape(6, 1, H).astype(jnp.float32)
    return {
        'wqkv_h': wqkv_h, 'b_qkv_h': b_qkv_h, 'wo_h': wo_h,
        'w_i': lp['w_i'].astype(jnp.bfloat16), 'b_i': lp['b_i'].reshape(1, -1),
        'w_out': lp['w_out'].astype(jnp.bfloat16), 'vec6': vec6,
    }


def prepare_params(params, *, num_heads):
    out = {k: v for k, v in params.items() if k != 'layers'}
    out['layers'] = [prepare_layer_params(lp, num_heads=num_heads)
                     for lp in params['layers']]
    return out


@partial(jax.jit, static_argnames=("num_heads",))
def spmm_encoder_forward(input_ids, attention_mask, kparams, *, num_heads):
    B, S = input_ids.shape
    # BERT embeddings: table gather stays in plain JAX (glue); sum + LN fused in Pallas.
    we = jnp.take(kparams['word_emb'], input_ids, axis=0)        # (B,S,H) f32
    pe = kparams['pos_emb'][:S]                                  # (S,H)  positions 0..S-1
    te = kparams['type_emb'][0:1]                                # (1,H)  token_type_ids == 0
    x = embed_layernorm(we, pe, te, kparams['emb_ln_g'], kparams['emb_ln_b'])  # bf16
    # HF extended attention mask: (1 - mask) * -10000, broadcast over heads/queries.
    amask = (1.0 - attention_mask.astype(jnp.float32))[:, None, :] * -10000.0
    for lp in kparams['layers']:                                 # only fusion_layer layers run
        x = encoder_layer(x, amask, lp, num_heads=num_heads)
    return x[:, 0, :].astype(jnp.float32)                        # CLS embedding


# ------------------------- pure-JAX reference (f32) -------------------------

def _reference_forward(input_ids, attention_mask, params, num_heads):
    B, S = input_ids.shape
    H = params['word_emb'].shape[1]
    hd = H // num_heads

    def ln(x, g, b):
        mu = x.mean(-1, keepdims=True)
        var = ((x - mu) ** 2).mean(-1, keepdims=True)
        return (x - mu) / jnp.sqrt(var + LN_EPS) * g + b

    e = (jnp.take(params['word_emb'], input_ids, axis=0)
         + params['pos_emb'][:S][None] + params['type_emb'][0][None, None])
    x = ln(e, params['emb_ln_g'], params['emb_ln_b'])
    mask = (1.0 - attention_mask.astype(jnp.float32))[:, None, None, :] * -10000.0
    for lp in params['layers']:
        q = x @ lp['w_q'] + lp['b_q']
        k = x @ lp['w_k'] + lp['b_k']
        v = x @ lp['w_v'] + lp['b_v']

        def heads(t):
            return t.reshape(B, S, num_heads, hd).transpose(0, 2, 1, 3)

        s = jnp.einsum('bnqd,bnkd->bnqk', heads(q), heads(k)) / math.sqrt(hd) + mask
        p = jax.nn.softmax(s, axis=-1)
        ctx = jnp.einsum('bnqk,bnkd->bnqd', p, heads(v)).transpose(0, 2, 1, 3).reshape(B, S, H)
        attn = ctx @ lp['w_o'] + lp['b_o']
        x1 = ln(attn + x, lp['ln1_g'], lp['ln1_b'])
        h = _gelu_tanh(x1 @ lp['w_i'] + lp['b_i'])
        ffn = h @ lp['w_out'] + lp['b_out']
        x = ln(ffn + x1, lp['ln2_g'], lp['ln2_b'])
    return x[:, 0, :]


# ----------------------------------- main --------------------------------------

if __name__ == "__main__":
    # Scaled-down SPMM config (real: hidden=768, heads=12, intermediate=3072,
    # fusion_layer=6 layers actually executed, vocab=300, max_pos=512).
    VOCAB, MAX_POS, TYPE_VOCAB = 64, 32, 2
    HIDDEN, HEADS, INTER = 128, 4, 256
    FUSION_LAYERS = 2          # layers >= fusion_layer are nn.Identity -> only these run
    B, S = 2, 8

    key = jax.random.PRNGKey(0)
    pkey, ikey = jax.random.split(key)
    params = init_params(pkey, vocab_size=VOCAB, max_pos=MAX_POS, type_vocab=TYPE_VOCAB,
                         hidden=HIDDEN, intermediate=INTER, num_layers=FUSION_LAYERS)
    kparams = prepare_params(params, num_heads=HEADS)

    input_ids = jax.random.randint(ikey, (B, S), 0, VOCAB, dtype=jnp.int32)
    attention_mask = jnp.array([[1, 1, 1, 1, 1, 1, 0, 0],
                                [1, 1, 1, 1, 1, 1, 1, 1]], dtype=jnp.int32)

    _has_buffered()   # prime the pl.Buffered(1) feature probe outside the jit trace

    out = spmm_encoder_forward(input_ids, attention_mask, kparams, num_heads=HEADS)
    out = jax.block_until_ready(out)
    assert out.shape == (B, HIDDEN) and out.dtype == jnp.float32
    assert bool(jnp.isfinite(out).all())

    # tolerance: bf16 MXU operands, approx-reciprocal softmax, tanh GELU,
    # bf16 residual stream (documented deviations from exact f32/erf math)
    ref = _reference_forward(input_ids, attention_mask, params, HEADS)
    max_err = float(jnp.max(jnp.abs(out - ref)))
    assert max_err < 1e-1, f"kernel deviates from reference: max |err| = {max_err}"
    print("KERNEL_OK")
</pallas_src>

<mosaic_0001>
module attributes {stable_mosaic.version = 11 : i64} {
  func.func @_probe(%arg0: i32, %arg1: memref<8x128xf32, #tpu.memory_space<vmem>>, %arg2: memref<8x128xf32, #tpu.memory_space<vmem>>) attributes {dimension_semantics = [#tpu.dimension_semantics<arbitrary>], iteration_bounds = array<i64: 1>, scalar_prefetch = 0 : i64, scratch_operands = 0 : i64, tpu.core_type = #tpu.core_type<tc>, window_params = [{pipeline_mode = #tpu.pipeline_mode<synchronous>, transform_indices = @transform_0, window_bounds = array<i64: 8, 128>}, {pipeline_mode = #tpu.pipeline_mode<synchronous>, transform_indices = @transform_1, window_bounds = array<i64: 8, 128>}]} {
    %c0 = arith.constant 0 : index
    %c0_0 = arith.constant 0 : index
    %0 = vector.load %arg1[%c0, %c0_0] : memref<8x128xf32, #tpu.memory_space<vmem>>, vector<8x128xf32>
    %cst = arith.constant 2.000000e+00 : f32
    %1 = vector.broadcast %cst : f32 to vector<8x128xf32>
    %2 = arith.mulf %0, %1 : vector<8x128xf32>
    %c0_1 = arith.constant 0 : index
    %c0_2 = arith.constant 0 : index
    %3 = vector.load %arg2[%c0_1, %c0_2] : memref<8x128xf32, #tpu.memory_space<vmem>>, vector<8x128xf32>
    tpu.vector_store %arg2[%c0_1, %c0_2], %2 {strides = array<i32>} : memref<8x128xf32, #tpu.memory_space<vmem>>, vector<8x128xf32>,
    return
  }
  func.func @transform_0(%arg0: i32) -> (i32, i32) {
    %c0_i32 = arith.constant 0 : i32
    %c0_i32_0 = arith.constant 0 : i32
    %c0_i32_1 = arith.constant 0 : i32
    return %c0_i32, %c0_i32_0 : i32, i32
  }
  func.func @transform_1(%arg0: i32) -> (i32, i32) {
    %c0_i32 = arith.constant 0 : i32
    %c0_i32_0 = arith.constant 0 : i32
    %c0_i32_1 = arith.constant 0 : i32
    return %c0_i32, %c0_i32_0 : i32, i32
  }
}

module attributes {stable_mosaic.version = 11 : i64} {
  func.func @embed_ln_kernel(%arg0: i32, %arg1: memref<1x8x128xf32, #tpu.memory_space<vmem>>, %arg2: memref<8x128xf32, #tpu.memory_space<vmem>>, %arg3: memref<1x128xf32, #tpu.memory_space<vmem>>, %arg4: memref<1x128xf32, #tpu.memory_space<vmem>>, %arg5: memref<1x128xf32, #tpu.memory_space<vmem>>, %arg6: memref<1x8x128xbf16, #tpu.memory_space<vmem>>) attributes {dimension_semantics = [#tpu.dimension_semantics<parallel>], iteration_bounds = array<i64: 2>, scalar_prefetch = 0 : i64, scratch_operands = 0 : i64, tpu.core_type = #tpu.core_type<tc>, window_params = [{transform_indices = @transform_0, window_bounds = array<i64: 1, 8, 128>}, {pipeline_mode = #tpu.pipeline_mode<synchronous>, transform_indices = @transform_1, window_bounds = array<i64: 8, 128>}, {pipeline_mode = #tpu.pipeline_mode<synchronous>, transform_indices = @transform_2, window_bounds = array<i64: 1, 128>}, {pipeline_mode = #tpu.pipeline_mode<synchronous>, transform_indices = @transform_3, window_bounds = array<i64: 1, 128>}, {pipeline_mode = #tpu.pipeline_mode<synchronous>, transform_indices = @transform_4, window_bounds = array<i64: 1, 128>}, {transform_indices = @transform_5, window_bounds = array<i64: 1, 8, 128>}]} {
    %c0 = arith.constant 0 : index
    %c0_0 = arith.constant 0 : index
    %c0_1 = arith.constant 0 : index
    %0 = vector.load %arg1[%c0, %c0_0, %c0_1] : memref<1x8x128xf32, #tpu.memory_space<vmem>>, vector<1x8x128xf32>
    %1 = vector.shape_cast %0 : vector<1x8x128xf32> to vector<8x128xf32>
    %c0_2 = arith.constant 0 : index
    %c0_3 = arith.constant 0 : index
    %2 = vector.load %arg2[%c0_2, %c0_3] : memref<8x128xf32, #tpu.memory_space<vmem>>, vector<8x128xf32>
    %3 = arith.addf %1, %2 : vector<8x128xf32>
    %c0_4 = arith.constant 0 : index
    %c0_5 = arith.constant 0 : index
    %4 = vector.load %arg3[%c0_4, %c0_5] : memref<1x128xf32, #tpu.memory_space<vmem>>, vector<1x128xf32>
    %5 = vector.broadcast %4 : vector<1x128xf32> to vector<8x128xf32>
    %6 = arith.addf %3, %5 : vector<8x128xf32>
    %c0_6 = arith.constant 0 : index
    %c0_7 = arith.constant 0 : index
    %7 = vector.load %arg4[%c0_6, %c0_7] : memref<1x128xf32, #tpu.memory_space<vmem>>, vector<1x128xf32>
    %c0_8 = arith.constant 0 : index
    %c0_9 = arith.constant 0 : index
    %8 = vector.load %arg5[%c0_8, %c0_9] : memref<1x128xf32, #tpu.memory_space<vmem>>, vector<1x128xf32>
    %cst = arith.constant dense<0.000000e+00> : vector<8xf32>
    %9 = vector.multi_reduction <add>, %6, %cst [1] : vector<8x128xf32> to vector<8xf32>
    %10 = vector.shape_cast %9 : vector<8xf32> to vector<8x1xf32>
    %cst_10 = arith.constant 1.280000e+02 : f32
    %11 = vector.broadcast %cst_10 : f32 to vector<8x1xf32>
    %12 = arith.divf %10, %11 : vector<8x1xf32>
    %13 = arith.mulf %6, %6 : vector<8x128xf32>
    %cst_11 = arith.constant dense<0.000000e+00> : vector<8xf32>
    %14 = vector.multi_reduction <add>, %13, %cst_11 [1] : vector<8x128xf32> to vector<8xf32>
    %15 = vector.shape_cast %14 : vector<8xf32> to vector<8x1xf32>
    %cst_12 = arith.constant 1.280000e+02 : f32
    %16 = vector.broadcast %cst_12 : f32 to vector<8x1xf32>
    %17 = arith.divf %15, %16 : vector<8x1xf32>
    %18 = arith.mulf %12, %12 : vector<8x1xf32>
    %19 = arith.subf %17, %18 : vector<8x1xf32>
    %20 = vector.broadcast %12 : vector<8x1xf32> to vector<8x128xf32>
    %21 = arith.subf %6, %20 : vector<8x128xf32>
    %cst_13 = arith.constant 9.99999996E-13 : f32
    %22 = vector.broadcast %cst_13 : f32 to vector<8x1xf32>
    %23 = arith.addf %19, %22 : vector<8x1xf32>
    %24 = math.rsqrt %23 : vector<8x1xf32>
    %25 = vector.broadcast %24 : vector<8x1xf32> to vector<8x128xf32>
    %26 = arith.mulf %21, %25 : vector<8x128xf32>
    %27 = vector.broadcast %7 : vector<1x128xf32> to vector<8x128xf32>
    %28 = arith.mulf %26, %27 : vector<8x128xf32>
    %29 = vector.broadcast %8 : vector<1x128xf32> to vector<8x128xf32>
    %30 = arith.addf %28, %29 : vector<8x128xf32>
    %31 = arith.truncf %30 : vector<8x128xf32> to vector<8x128xbf16>
    %c0_14 = arith.constant 0 : index
    %c0_15 = arith.constant 0 : index
    %c0_16 = arith.constant 0 : index
    %32 = vector.load %arg6[%c0_14, %c0_15, %c0_16] : memref<1x8x128xbf16, #tpu.memory_space<vmem>>, vector<1x8x128xbf16>
    %33 = vector.shape_cast %32 : vector<1x8x128xbf16> to vector<8x128xbf16>
    %34 = vector.shape_cast %31 : vector<8x128xbf16> to vector<1x8x128xbf16>
    tpu.vector_store %arg6[%c0_14, %c0_15, %c0_16], %34 {strides = array<i32>} : memref<1x8x128xbf16, #tpu.memory_space<vmem>>, vector<1x8x128xbf16>,
    return
  }
  func.func @transform_0(%arg0: i32) -> (i32, i32, i32) {
    %c0_i32 = arith.constant 0 : i32
    %c0_i32_0 = arith.constant 0 : i32
    %c0_i32_1 = arith.constant 0 : i32
    return %arg0, %c0_i32, %c0_i32_0 : i32, i32, i32
  }
  func.func @transform_1(%arg0: i32) -> (i32, i32) {
    %c0_i32 = arith.constant 0 : i32
    %c0_i32_0 = arith.constant 0 : i32
    %c0_i32_1 = arith.constant 0 : i32
    return %c0_i32, %c0_i32_0 : i32, i32
  }
  func.func @transform_2(%arg0: i32) -> (i32, i32) {
    %c0_i32 = arith.constant 0 : i32
    %c0_i32_0 = arith.constant 0 : i32
    %c0_i32_1 = arith.constant 0 : i32
    return %c0_i32, %c0_i32_0 : i32, i32
  }
  func.func @transform_3(%arg0: i32) -> (i32, i32) {
    %c0_i32 = arith.constant 0 : i32
    %c0_i32_0 = arith.constant 0 : i32
    %c0_i32_1 = arith.constant 0 : i32
    return %c0_i32, %c0_i32_0 : i32, i32
  }
  func.func @transform_4(%arg0: i32) -> (i32, i32) {
    %c0_i32 = arith.constant 0 : i32
    %c0_i32_0 = arith.constant 0 : i32
    %c0_i32_1 = arith.constant 0 : i32
    return %c0_i32, %c0_i32_0 : i32, i32
  }
  func.func @transform_5(%arg0: i32) -> (i32, i32, i32) {
    %c0_i32 = arith.constant 0 : i32
    %c0_i32_0 = arith.constant 0 : i32
    %c0_i32_1 = arith.constant 0 : i32
    return %arg0, %c0_i32, %c0_i32_0 : i32, i32, i32
  }
}

module attributes {stable_mosaic.version = 11 : i64} {
  func.func @encoder_layer_kernel(%arg0: i32, %arg1: i32, %arg2: memref<1x8x128xbf16, #tpu.memory_space<vmem>>, %arg3: memref<1x1x8xf32, #tpu.memory_space<vmem>>, %arg4: memref<3x4x128x32xbf16, #tpu.memory_space<vmem>>, %arg5: memref<3x4x1x32xf32, #tpu.memory_space<vmem>>, %arg6: memref<4x32x128xbf16, #tpu.memory_space<vmem>>, %arg7: memref<128x256xbf16, #tpu.memory_space<vmem>>, %arg8: memref<1x256xf32, #tpu.memory_space<vmem>>, %arg9: memref<256x128xbf16, #tpu.memory_space<vmem>>, %arg10: memref<6x1x128xf32, #tpu.memory_space<vmem>>, %arg11: memref<1x8x128xbf16, #tpu.memory_space<vmem>>, %arg12: memref<2x4x8x32xbf16, #tpu.memory_space<vmem>>) attributes {dimension_semantics = [#tpu.dimension_semantics<parallel>, #tpu.dimension_semantics<arbitrary>], iteration_bounds = array<i64: 2, 1>, scalar_prefetch = 0 : i64, scratch_operands = 1 : i64, tpu.core_type = #tpu.core_type<tc>, window_params = [{transform_indices = @transform_0, window_bounds = array<i64: 1, 8, 128>}, {transform_indices = @transform_1, window_bounds = array<i64: 1, 1, 8>}, {pipeline_mode = #tpu.pipeline_mode<synchronous>, transform_indices = @transform_2, window_bounds = array<i64: 3, 4, 128, 32>}, {pipeline_mode = #tpu.pipeline_mode<synchronous>, transform_indices = @transform_3, window_bounds = array<i64: 3, 4, 1, 32>}, {pipeline_mode = #tpu.pipeline_mode<synchronous>, transform_indices = @transform_4, window_bounds = array<i64: 4, 32, 128>}, {pipeline_mode = #tpu.pipeline_mode<synchronous>, transform_indices = @transform_5, window_bounds = array<i64: 128, 256>}, {pipeline_mode = #tpu.pipeline_mode<synchronous>, transform_indices = @transform_6, window_bounds = array<i64: 1, 256>}, {pipeline_mode = #tpu.pipeline_mode<synchronous>, transform_indices = @transform_7, window_bounds = array<i64: 256, 128>}, {pipeline_mode = #tpu.pipeline_mode<synchronous>, transform_indices = @transform_8, window_bounds = array<i64: 6, 1, 128>}, {transform_indices = @transform_9, window_bounds = array<i64: 1, 8, 128>}]} {
    %c0_i32 = arith.constant 0 : i32
    %0 = arith.cmpi eq, %arg1, %c0_i32 : i32
    %1 = arith.extui %0 : i1 to i32
    %c0_i32_0 = arith.constant 0 : i32
    %2 = arith.cmpi ne, %1, %c0_i32_0 : i32
    scf.if %2 {
      %c0_143 = arith.constant 0 : index
      %c0_144 = arith.constant 0 : index
      %c0_145 = arith.constant 0 : index
      %228 = vector.load %arg2[%c0_143, %c0_144, %c0_145] : memref<1x8x128xbf16, #tpu.memory_space<vmem>>, vector<1x8x128xbf16>
      %229 = vector.shape_cast %228 : vector<1x8x128xbf16> to vector<8x128xbf16>
      %c1_146 = arith.constant 1 : index
      %c0_147 = arith.constant 0 : index
      %c0_148 = arith.constant 0 : index
      %c0_149 = arith.constant 0 : index
      %230 = vector.load %arg4[%c1_146, %c0_147, %c0_148, %c0_149] : memref<3x4x128x32xbf16, #tpu.memory_space<vmem>>, vector<1x1x128x32xbf16>
      %231 = vector.shape_cast %230 : vector<1x1x128x32xbf16> to vector<128x32xbf16>
      %cst_150 = arith.constant dense<0.000000e+00> : vector<8x32xf32>
      %232 = tpu.matmul %229, %231, %cst_150 {dimension_numbers = #tpu.dot_dimension_numbers<[1], [0], [0], [1], [0, 0, 1, 1], [], []>} : vector<8x128xbf16>, vector<128x32xbf16>, vector<8x32xf32> -> vector<8x32xf32>
      %c1_151 = arith.constant 1 : index
      %c0_152 = arith.constant 0 : index
      %c0_153 = arith.constant 0 : index
      %c0_154 = arith.constant 0 : index
      %233 = vector.load %arg5[%c1_151, %c0_152, %c0_153, %c0_154] : memref<3x4x1x32xf32, #tpu.memory_space<vmem>>, vector<1x1x1x32xf32>
      %234 = vector.shape_cast %233 : vector<1x1x1x32xf32> to vector<1x32xf32>
      %235 = vector.broadcast %234 : vector<1x32xf32> to vector<8x32xf32>
      %236 = arith.addf %232, %235 : vector<8x32xf32>
      %c2_155 = arith.constant 2 : index
      %c0_156 = arith.constant 0 : index
      %c0_157 = arith.constant 0 : index
      %c0_158 = arith.constant 0 : index
      %237 = vector.load %arg4[%c2_155, %c0_156, %c0_157, %c0_158] : memref<3x4x128x32xbf16, #tpu.memory_space<vmem>>, vector<1x1x128x32xbf16>
      %238 = vector.shape_cast %237 : vector<1x1x128x32xbf16> to vector<128x32xbf16>
      %cst_159 = arith.constant dense<0.000000e+00> : vector<8x32xf32>
      %239 = tpu.matmul %229, %238, %cst_159 {dimension_numbers = #tpu.dot_dimension_numbers<[1], [0], [0], [1], [0, 0, 1, 1], [], []>} : vector<8x128xbf16>, vector<128x32xbf16>, vector<8x32xf32> -> vector<8x32xf32>
      %c2_160 = arith.constant 2 : index
      %c0_161 = arith.constant 0 : index
      %c0_162 = arith.constant 0 : index
      %c0_163 = arith.constant 0 : index
      %240 = vector.load %arg5[%c2_160, %c0_161, %c0_162, %c0_163] : memref<3x4x1x32xf32, #tpu.memory_space<vmem>>, vector<1x1x1x32xf32>
      %241 = vector.shape_cast %240 : vector<1x1x1x32xf32> to vector<1x32xf32>
      %242 = vector.broadcast %241 : vector<1x32xf32> to vector<8x32xf32>
      %243 = arith.addf %239, %242 : vector<8x32xf32>
      %244 = arith.truncf %236 : vector<8x32xf32> to vector<8x32xbf16>
      %c0_164 = arith.constant 0 : index
      %c0_165 = arith.constant 0 : index
      %c0_166 = arith.constant 0 : index
      %c0_167 = arith.constant 0 : index
      %245 = vector.load %arg12[%c0_164, %c0_165, %c0_166, %c0_167] : memref<2x4x8x32xbf16, #tpu.memory_space<vmem>>, vector<1x1x8x32xbf16>
      %246 = vector.shape_cast %245 : vector<1x1x8x32xbf16> to vector<8x32xbf16>
      %247 = vector.shape_cast %244 : vector<8x32xbf16> to vector<1x1x8x32xbf16>
      tpu.vector_store %arg12[%c0_164, %c0_165, %c0_166, %c0_167], %247 {strides = array<i32>} : memref<2x4x8x32xbf16, #tpu.memory_space<vmem>>, vector<1x1x8x32xbf16>,
      %248 = arith.truncf %243 : vector<8x32xf32> to vector<8x32xbf16>
      %c1_168 = arith.constant 1 : index
      %c0_169 = arith.constant 0 : index
      %c0_170 = arith.constant 0 : index
      %c0_171 = arith.constant 0 : index
      %249 = vector.load %arg12[%c1_168, %c0_169, %c0_170, %c0_171] : memref<2x4x8x32xbf16, #tpu.memory_space<vmem>>, vector<1x1x8x32xbf16>
      %250 = vector.shape_cast %249 : vector<1x1x8x32xbf16> to vector<8x32xbf16>
      %251 = vector.shape_cast %248 : vector<8x32xbf16> to vector<1x1x8x32xbf16>
      tpu.vector_store %arg12[%c1_168, %c0_169, %c0_170, %c0_171], %251 {strides = array<i32>} : memref<2x4x8x32xbf16, #tpu.memory_space<vmem>>, vector<1x1x8x32xbf16>,
      %c1_172 = arith.constant 1 : index
      %c1_173 = arith.constant 1 : index
      %c0_174 = arith.constant 0 : index
      %c0_175 = arith.constant 0 : index
      %252 = vector.load %arg4[%c1_172, %c1_173, %c0_174, %c0_175] : memref<3x4x128x32xbf16, #tpu.memory_space<vmem>>, vector<1x1x128x32xbf16>
      %253 = vector.shape_cast %252 : vector<1x1x128x32xbf16> to vector<128x32xbf16>
      %cst_176 = arith.constant dense<0.000000e+00> : vector<8x32xf32>
      %254 = tpu.matmul %229, %253, %cst_176 {dimension_numbers = #tpu.dot_dimension_numbers<[1], [0], [0], [1], [0, 0, 1, 1], [], []>} : vector<8x128xbf16>, vector<128x32xbf16>, vector<8x32xf32> -> vector<8x32xf32>
      %c1_177 = arith.constant 1 : index
      %c1_178 = arith.constant 1 : index
      %c0_179 = arith.constant 0 : index
      %c0_180 = arith.constant 0 : index
      %255 = vector.load %arg5[%c1_177, %c1_178, %c0_179, %c0_180] : memref<3x4x1x32xf32, #tpu.memory_space<vmem>>, vector<1x1x1x32xf32>
      %256 = vector.shape_cast %255 : vector<1x1x1x32xf32> to vector<1x32xf32>
      %257 = vector.broadcast %256 : vector<1x32xf32> to vector<8x32xf32>
      %258 = arith.addf %254, %257 : vector<8x32xf32>
      %c2_181 = arith.constant 2 : index
      %c1_182 = arith.constant 1 : index
      %c0_183 = arith.constant 0 : index
      %c0_184 = arith.constant 0 : index
      %259 = vector.load %arg4[%c2_181, %c1_182, %c0_183, %c0_184] : memref<3x4x128x32xbf16, #tpu.memory_space<vmem>>, vector<1x1x128x32xbf16>
      %260 = vector.shape_cast %259 : vector<1x1x128x32xbf16> to vector<128x32xbf16>
      %cst_185 = arith.constant dense<0.000000e+00> : vector<8x32xf32>
      %261 = tpu.matmul %229, %260, %cst_185 {dimension_numbers = #tpu.dot_dimension_numbers<[1], [0], [0], [1], [0, 0, 1, 1], [], []>} : vector<8x128xbf16>, vector<128x32xbf16>, vector<8x32xf32> -> vector<8x32xf32>
      %c2_186 = arith.constant 2 : index
      %c1_187 = arith.constant 1 : index
      %c0_188 = arith.constant 0 : index
      %c0_189 = arith.constant 0 : index
      %262 = vector.load %arg5[%c2_186, %c1_187, %c0_188, %c0_189] : memref<3x4x1x32xf32, #tpu.memory_space<vmem>>, vector<1x1x1x32xf32>
      %263 = vector.shape_cast %262 : vector<1x1x1x32xf32> to vector<1x32xf32>
      %264 = vector.broadcast %263 : vector<1x32xf32> to vector<8x32xf32>
      %265 = arith.addf %261, %264 : vector<8x32xf32>
      %266 = arith.truncf %258 : vector<8x32xf32> to vector<8x32xbf16>
      %c0_190 = arith.constant 0 : index
      %c1_191 = arith.constant 1 : index
      %c0_192 = arith.constant 0 : index
      %c0_193 = arith.constant 0 : index
      %267 = vector.load %arg12[%c0_190, %c1_191, %c0_192, %c0_193] : memref<2x4x8x32xbf16, #tpu.memory_space<vmem>>, vector<1x1x8x32xbf16>
      %268 = vector.shape_cast %267 : vector<1x1x8x32xbf16> to vector<8x32xbf16>
      %269 = vector.shape_cast %266 : vector<8x32xbf16> to vector<1x1x8x32xbf16>
      tpu.vector_store %arg12[%c0_190, %c1_191, %c0_192, %c0_193], %269 {strides = array<i32>} : memref<2x4x8x32xbf16, #tpu.memory_space<vmem>>, vector<1x1x8x32xbf16>,
      %270 = arith.truncf %265 : vector<8x32xf32> to vector<8x32xbf16>
      %c1_194 = arith.constant 1 : index
      %c1_195 = arith.constant 1 : index
      %c0_196 = arith.constant 0 : index
      %c0_197 = arith.constant 0 : index
      %271 = vector.load %arg12[%c1_194, %c1_195, %c0_196, %c0_197] : memref<2x4x8x32xbf16, #tpu.memory_space<vmem>>, vector<1x1x8x32xbf16>
      %272 = vector.shape_cast %271 : vector<1x1x8x32xbf16> to vector<8x32xbf16>
      %273 = vector.shape_cast %270 : vector<8x32xbf16> to vector<1x1x8x32xbf16>
      tpu.vector_store %arg12[%c1_194, %c1_195, %c0_196, %c0_197], %273 {strides = array<i32>} : memref<2x4x8x32xbf16, #tpu.memory_space<vmem>>, vector<1x1x8x32xbf16>,
      %c1_198 = arith.constant 1 : index
      %c2_199 = arith.constant 2 : index
      %c0_200 = arith.constant 0 : index
      %c0_201 = arith.constant 0 : index
      %274 = vector.load %arg4[%c1_198, %c2_199, %c0_200, %c0_201] : memref<3x4x128x32xbf16, #tpu.memory_space<vmem>>, vector<1x1x128x32xbf16>
      %275 = vector.shape_cast %274 : vector<1x1x128x32xbf16> to vector<128x32xbf16>
      %cst_202 = arith.constant dense<0.000000e+00> : vector<8x32xf32>
      %276 = tpu.matmul %229, %275, %cst_202 {dimension_numbers = #tpu.dot_dimension_numbers<[1], [0], [0], [1], [0, 0, 1, 1], [], []>} : vector<8x128xbf16>, vector<128x32xbf16>, vector<8x32xf32> -> vector<8x32xf32>
      %c1_203 = arith.constant 1 : index
      %c2_204 = arith.constant 2 : index
      %c0_205 = arith.constant 0 : index
      %c0_206 = arith.constant 0 : index
      %277 = vector.load %arg5[%c1_203, %c2_204, %c0_205, %c0_206] : memref<3x4x1x32xf32, #tpu.memory_space<vmem>>, vector<1x1x1x32xf32>
      %278 = vector.shape_cast %277 : vector<1x1x1x32xf32> to vector<1x32xf32>
      %279 = vector.broadcast %278 : vector<1x32xf32> to vector<8x32xf32>
      %280 = arith.addf %276, %279 : vector<8x32xf32>
      %c2_207 = arith.constant 2 : index
      %c2_208 = arith.constant 2 : index
      %c0_209 = arith.constant 0 : index
      %c0_210 = arith.constant 0 : index
      %281 = vector.load %arg4[%c2_207, %c2_208, %c0_209, %c0_210] : memref<3x4x128x32xbf16, #tpu.memory_space<vmem>>, vector<1x1x128x32xbf16>
      %282 = vector.shape_cast %281 : vector<1x1x128x32xbf16> to vector<128x32xbf16>
      %cst_211 = arith.constant dense<0.000000e+00> : vector<8x32xf32>
      %283 = tpu.matmul %229, %282, %cst_211 {dimension_numbers = #tpu.dot_dimension_numbers<[1], [0], [0], [1], [0, 0, 1, 1], [], []>} : vector<8x128xbf16>, vector<128x32xbf16>, vector<8x32xf32> -> vector<8x32xf32>
      %c2_212 = arith.constant 2 : index
      %c2_213 = arith.constant 2 : index
      %c0_214 = arith.constant 0 : index
      %c0_215 = arith.constant 0 : index
      %284 = vector.load %arg5[%c2_212, %c2_213, %c0_214, %c0_215] : memref<3x4x1x32xf32, #tpu.memory_space<vmem>>, vector<1x1x1x32xf32>
      %285 = vector.shape_cast %284 : vector<1x1x1x32xf32> to vector<1x32xf32>
      %286 = vector.broadcast %285 : vector<1x32xf32> to vector<8x32xf32>
      %287 = arith.addf %283, %286 : vector<8x32xf32>
      %288 = arith.truncf %280 : vector<8x32xf32> to vector<8x32xbf16>
      %c0_216 = arith.constant 0 : index
      %c2_217 = arith.constant 2 : index
      %c0_218 = arith.constant 0 : index
      %c0_219 = arith.constant 0 : index
      %289 = vector.load %arg12[%c0_216, %c2_217, %c0_218, %c0_219] : memref<2x4x8x32xbf16, #tpu.memory_space<vmem>>, vector<1x1x8x32xbf16>
      %290 = vector.shape_cast %289 : vector<1x1x8x32xbf16> to vector<8x32xbf16>
      %291 = vector.shape_cast %288 : vector<8x32xbf16> to vector<1x1x8x32xbf16>
      tpu.vector_store %arg12[%c0_216, %c2_217, %c0_218, %c0_219], %291 {strides = array<i32>} : memref<2x4x8x32xbf16, #tpu.memory_space<vmem>>, vector<1x1x8x32xbf16>,
      %292 = arith.truncf %287 : vector<8x32xf32> to vector<8x32xbf16>
      %c1_220 = arith.constant 1 : index
      %c2_221 = arith.constant 2 : index
      %c0_222 = arith.constant 0 : index
      %c0_223 = arith.constant 0 : index
      %293 = vector.load %arg12[%c1_220, %c2_221, %c0_222, %c0_223] : memref<2x4x8x32xbf16, #tpu.memory_space<vmem>>, vector<1x1x8x32xbf16>
      %294 = vector.shape_cast %293 : vector<1x1x8x32xbf16> to vector<8x32xbf16>
      %295 = vector.shape_cast %292 : vector<8x32xbf16> to vector<1x1x8x32xbf16>
      tpu.vector_store %arg12[%c1_220, %c2_221, %c0_222, %c0_223], %295 {strides = array<i32>} : memref<2x4x8x32xbf16, #tpu.memory_space<vmem>>, vector<1x1x8x32xbf16>,
      %c1_224 = arith.constant 1 : index
      %c3_225 = arith.constant 3 : index
      %c0_226 = arith.constant 0 : index
      %c0_227 = arith.constant 0 : index
      %296 = vector.load %arg4[%c1_224, %c3_225, %c0_226, %c0_227] : memref<3x4x128x32xbf16, #tpu.memory_space<vmem>>, vector<1x1x128x32xbf16>
      %297 = vector.shape_cast %296 : vector<1x1x128x32xbf16> to vector<128x32xbf16>
      %cst_228 = arith.constant dense<0.000000e+00> : vector<8x32xf32>
      %298 = tpu.matmul %229, %297, %cst_228 {dimension_numbers = #tpu.dot_dimension_numbers<[1], [0], [0], [1], [0, 0, 1, 1], [], []>} : vector<8x128xbf16>, vector<128x32xbf16>, vector<8x32xf32> -> vector<8x32xf32>
      %c1_229 = arith.constant 1 : index
      %c3_230 = arith.constant 3 : index
      %c0_231 = arith.constant 0 : index
      %c0_232 = arith.constant 0 : index
      %299 = vector.load %arg5[%c1_229, %c3_230, %c0_231, %c0_232] : memref<3x4x1x32xf32, #tpu.memory_space<vmem>>, vector<1x1x1x32xf32>
      %300 = vector.shape_cast %299 : vector<1x1x1x32xf32> to vector<1x32xf32>
      %301 = vector.broadcast %300 : vector<1x32xf32> to vector<8x32xf32>
      %302 = arith.addf %298, %301 : vector<8x32xf32>
      %c2_233 = arith.constant 2 : index
      %c3_234 = arith.constant 3 : index
      %c0_235 = arith.constant 0 : index
      %c0_236 = arith.constant 0 : index
      %303 = vector.load %arg4[%c2_233, %c3_234, %c0_235, %c0_236] : memref<3x4x128x32xbf16, #tpu.memory_space<vmem>>, vector<1x1x128x32xbf16>
      %304 = vector.shape_cast %303 : vector<1x1x128x32xbf16> to vector<128x32xbf16>
      %cst_237 = arith.constant dense<0.000000e+00> : vector<8x32xf32>
      %305 = tpu.matmul %229, %304, %cst_237 {dimension_numbers = #tpu.dot_dimension_numbers<[1], [0], [0], [1], [0, 0, 1, 1], [], []>} : vector<8x128xbf16>, vector<128x32xbf16>, vector<8x32xf32> -> vector<8x32xf32>
      %c2_238 = arith.constant 2 : index
      %c3_239 = arith.constant 3 : index
      %c0_240 = arith.constant 0 : index
      %c0_241 = arith.constant 0 : index
      %306 = vector.load %arg5[%c2_238, %c3_239, %c0_240, %c0_241] : memref<3x4x1x32xf32, #tpu.memory_space<vmem>>, vector<1x1x1x32xf32>
      %307 = vector.shape_cast %306 : vector<1x1x1x32xf32> to vector<1x32xf32>
      %308 = vector.broadcast %307 : vector<1x32xf32> to vector<8x32xf32>
      %309 = arith.addf %305, %308 : vector<8x32xf32>
      %310 = arith.truncf %302 : vector<8x32xf32> to vector<8x32xbf16>
      %c0_242 = arith.constant 0 : index
      %c3_243 = arith.constant 3 : index
      %c0_244 = arith.constant 0 : index
      %c0_245 = arith.constant 0 : index
      %311 = vector.load %arg12[%c0_242, %c3_243, %c0_244, %c0_245] : memref<2x4x8x32xbf16, #tpu.memory_space<vmem>>, vector<1x1x8x32xbf16>
      %312 = vector.shape_cast %311 : vector<1x1x8x32xbf16> to vector<8x32xbf16>
      %313 = vector.shape_cast %310 : vector<8x32xbf16> to vector<1x1x8x32xbf16>
      tpu.vector_store %arg12[%c0_242, %c3_243, %c0_244, %c0_245], %313 {strides = array<i32>} : memref<2x4x8x32xbf16, #tpu.memory_space<vmem>>, vector<1x1x8x32xbf16>,
      %314 = arith.truncf %309 : vector<8x32xf32> to vector<8x32xbf16>
      %c1_246 = arith.constant 1 : index
      %c3_247 = arith.constant 3 : index
      %c0_248 = arith.constant 0 : index
      %c0_249 = arith.constant 0 : index
      %315 = vector.load %arg12[%c1_246, %c3_247, %c0_248, %c0_249] : memref<2x4x8x32xbf16, #tpu.memory_space<vmem>>, vector<1x1x8x32xbf16>
      %316 = vector.shape_cast %315 : vector<1x1x8x32xbf16> to vector<8x32xbf16>
      %317 = vector.shape_cast %314 : vector<8x32xbf16> to vector<1x1x8x32xbf16>
      tpu.vector_store %arg12[%c1_246, %c3_247, %c0_248, %c0_249], %317 {strides = array<i32>} : memref<2x4x8x32xbf16, #tpu.memory_space<vmem>>, vector<1x1x8x32xbf16>,
    } else {
    }
    %c8_i32 = arith.constant 8 : i32
    %3 = arith.muli %arg1, %c8_i32 : i32
    %4 = tpu.assume_multiple %3, 8 : i32
    %c0 = arith.constant 0 : index
    %5 = arith.index_cast %4 : i32 to index
    %c0_1 = arith.constant 0 : index
    %6 = vector.load %arg2[%c0, %5, %c0_1] : memref<1x8x128xbf16, #tpu.memory_space<vmem>>, vector<1x8x128xbf16>
    %7 = vector.shape_cast %6 : vector<1x8x128xbf16> to vector<8x128xbf16>
    %8 = arith.extf %7 : vector<8x128xbf16> to vector<8x128xf32>
    %c0_2 = arith.constant 0 : index
    %c0_3 = arith.constant 0 : index
    %c0_4 = arith.constant 0 : index
    %9 = vector.load %arg3[%c0_2, %c0_3, %c0_4] : memref<1x1x8xf32, #tpu.memory_space<vmem>>, vector<1x1x8xf32>
    %10 = vector.shape_cast %9 : vector<1x1x8xf32> to vector<1x8xf32>
    %cst = arith.constant 0.000000e+00 : f32
    %11 = vector.broadcast %cst : f32 to vector<8x128xf32>
    %c0_5 = arith.constant 0 : index
    %c0_6 = arith.constant 0 : index
    %c0_7 = arith.constant 0 : index
    %c0_8 = arith.constant 0 : index
    %12 = vector.load %arg4[%c0_5, %c0_6, %c0_7, %c0_8] : memref<3x4x128x32xbf16, #tpu.memory_space<vmem>>, vector<1x1x128x32xbf16>
    %13 = vector.shape_cast %12 : vector<1x1x128x32xbf16> to vector<128x32xbf16>
    %cst_9 = arith.constant dense<0.000000e+00> : vector<8x32xf32>
    %14 = tpu.matmul %7, %13, %cst_9 {dimension_numbers = #tpu.dot_dimension_numbers<[1], [0], [0], [1], [0, 0, 1, 1], [], []>} : vector<8x128xbf16>, vector<128x32xbf16>, vector<8x32xf32> -> vector<8x32xf32>
    %c0_10 = arith.constant 0 : index
    %c0_11 = arith.constant 0 : index
    %c0_12 = arith.constant 0 : index
    %c0_13 = arith.constant 0 : index
    %15 = vector.load %arg5[%c0_10, %c0_11, %c0_12, %c0_13] : memref<3x4x1x32xf32, #tpu.memory_space<vmem>>, vector<1x1x1x32xf32>
    %16 = vector.shape_cast %15 : vector<1x1x1x32xf32> to vector<1x32xf32>
    %17 = vector.broadcast %16 : vector<1x32xf32> to vector<8x32xf32>
    %18 = arith.addf %14, %17 : vector<8x32xf32>
    %19 = arith.truncf %18 : vector<8x32xf32> to vector<8x32xbf16>
    %c0_14 = arith.constant 0 : index
    %c0_15 = arith.constant 0 : index
    %c0_16 = arith.constant 0 : index
    %c0_17 = arith.constant 0 : index
    %20 = vector.load %arg12[%c0_14, %c0_15, %c0_16, %c0_17] : memref<2x4x8x32xbf16, #tpu.memory_space<vmem>>, vector<1x1x8x32xbf16>
    %21 = vector.shape_cast %20 : vector<1x1x8x32xbf16> to vector<8x32xbf16>
    %c1 = arith.constant 1 : index
    %c0_18 = arith.constant 0 : index
    %c0_19 = arith.constant 0 : index
    %c0_20 = arith.constant 0 : index
    %22 = vector.load %arg12[%c1, %c0_18, %c0_19, %c0_20] : memref<2x4x8x32xbf16, #tpu.memory_space<vmem>>, vector<1x1x8x32xbf16>
    %23 = vector.shape_cast %22 : vector<1x1x8x32xbf16> to vector<8x32xbf16>
    %cst_21 = arith.constant dense<0.000000e+00> : vector<8x8xf32>
    %24 = tpu.matmul %19, %21, %cst_21 {dimension_numbers = #tpu.dot_dimension_numbers<[1], [1], [0], [0], [0, 0, 1, 0], [], []>} : vector<8x32xbf16>, vector<8x32xbf16>, vector<8x8xf32> -> vector<8x8xf32>
    %25 = vector.broadcast %10 : vector<1x8xf32> to vector<8x8xf32>
    %26 = arith.addf %24, %25 : vector<8x8xf32>
    %cst_22 = arith.constant dense<0xFF800000> : vector<8xf32>
    %27 = vector.multi_reduction <maximumf>, %26, %cst_22 [1] : vector<8x8xf32> to vector<8xf32>
    %28 = vector.shape_cast %27 : vector<8xf32> to vector<8x1xf32>
    %29 = vector.broadcast %28 : vector<8x1xf32> to vector<8x8xf32>
    %30 = arith.subf %26, %29 : vector<8x8xf32>
    %31 = math.exp %30 : vector<8x8xf32>
    %cst_23 = arith.constant dense<0.000000e+00> : vector<8xf32>
    %32 = vector.multi_reduction <add>, %31, %cst_23 [1] : vector<8x8xf32> to vector<8xf32>
    %33 = vector.shape_cast %32 : vector<8xf32> to vector<8x1xf32>
    %34 = tpu.reciprocal %33 {approx = true} : vector<8x1xf32> -> vector<8x1xf32>
    %35 = vector.broadcast %34 : vector<8x1xf32> to vector<8x8xf32>
    %36 = arith.mulf %31, %35 : vector<8x8xf32>
    %37 = arith.truncf %36 : vector<8x8xf32> to vector<8x8xbf16>
    %cst_24 = arith.constant dense<0.000000e+00> : vector<8x32xf32>
    %38 = tpu.matmul %37, %23, %cst_24 {dimension_numbers = #tpu.dot_dimension_numbers<[1], [0], [0], [1], [0, 0, 1, 1], [], []>} : vector<8x8xbf16>, vector<8x32xbf16>, vector<8x32xf32> -> vector<8x32xf32>
    %39 = arith.truncf %38 : vector<8x32xf32> to vector<8x32xbf16>
    %c0_25 = arith.constant 0 : index
    %c0_26 = arith.constant 0 : index
    %c0_27 = arith.constant 0 : index
    %40 = vector.load %arg6[%c0_25, %c0_26, %c0_27] : memref<4x32x128xbf16, #tpu.memory_space<vmem>>, vector<1x32x128xbf16>
    %41 = vector.shape_cast %40 : vector<1x32x128xbf16> to vector<32x128xbf16>
    %cst_28 = arith.constant dense<0.000000e+00> : vector<8x128xf32>
    %42 = tpu.matmul %39, %41, %cst_28 {dimension_numbers = #tpu.dot_dimension_numbers<[1], [0], [0], [1], [0, 0, 1, 1], [], []>} : vector<8x32xbf16>, vector<32x128xbf16>, vector<8x128xf32> -> vector<8x128xf32>
    %43 = arith.addf %11, %42 : vector<8x128xf32>
    %c0_29 = arith.constant 0 : index
    %c1_30 = arith.constant 1 : index
    %c0_31 = arith.constant 0 : index
    %c0_32 = arith.constant 0 : index
    %44 = vector.load %arg4[%c0_29, %c1_30, %c0_31, %c0_32] : memref<3x4x128x32xbf16, #tpu.memory_space<vmem>>, vector<1x1x128x32xbf16>
    %45 = vector.shape_cast %44 : vector<1x1x128x32xbf16> to vector<128x32xbf16>
    %cst_33 = arith.constant dense<0.000000e+00> : vector<8x32xf32>
    %46 = tpu.matmul %7, %45, %cst_33 {dimension_numbers = #tpu.dot_dimension_numbers<[1], [0], [0], [1], [0, 0, 1, 1], [], []>} : vector<8x128xbf16>, vector<128x32xbf16>, vector<8x32xf32> -> vector<8x32xf32>
    %c0_34 = arith.constant 0 : index
    %c1_35 = arith.constant 1 : index
    %c0_36 = arith.constant 0 : index
    %c0_37 = arith.constant 0 : index
    %47 = vector.load %arg5[%c0_34, %c1_35, %c0_36, %c0_37] : memref<3x4x1x32xf32, #tpu.memory_space<vmem>>, vector<1x1x1x32xf32>
    %48 = vector.shape_cast %47 : vector<1x1x1x32xf32> to vector<1x32xf32>
    %49 = vector.broadcast %48 : vector<1x32xf32> to vector<8x32xf32>
    %50 = arith.addf %46, %49 : vector<8x32xf32>
    %51 = arith.truncf %50 : vector<8x32xf32> to vector<8x32xbf16>
    %c0_38 = arith.constant 0 : index
    %c1_39 = arith.constant 1 : index
    %c0_40 = arith.constant 0 : index
    %c0_41 = arith.constant 0 : index
    %52 = vector.load %arg12[%c0_38, %c1_39, %c0_40, %c0_41] : memref<2x4x8x32xbf16, #tpu.memory_space<vmem>>, vector<1x1x8x32xbf16>
    %53 = vector.shape_cast %52 : vector<1x1x8x32xbf16> to vector<8x32xbf16>
    %c1_42 = arith.constant 1 : index
    %c1_43 = arith.constant 1 : index
    %c0_44 = arith.constant 0 : index
    %c0_45 = arith.constant 0 : index
    %54 = vector.load %arg12[%c1_42, %c1_43, %c0_44, %c0_45] : memref<2x4x8x32xbf16, #tpu.memory_space<vmem>>, vector<1x1x8x32xbf16>
    %55 = vector.shape_cast %54 : vector<1x1x8x32xbf16> to vector<8x32xbf16>
    %cst_46 = arith.constant dense<0.000000e+00> : vector<8x8xf32>
    %56 = tpu.matmul %51, %53, %cst_46 {dimension_numbers = #tpu.dot_dimension_numbers<[1], [1], [0], [0], [0, 0, 1, 0], [], []>} : vector<8x32xbf16>, vector<8x32xbf16>, vector<8x8xf32> -> vector<8x8xf32>
    %57 = vector.broadcast %10 : vector<1x8xf32> to vector<8x8xf32>
    %58 = arith.addf %56, %57 : vector<8x8xf32>
    %cst_47 = arith.constant dense<0xFF800000> : vector<8xf32>
    %59 = vector.multi_reduction <maximumf>, %58, %cst_47 [1] : vector<8x8xf32> to vector<8xf32>
    %60 = vector.shape_cast %59 : vector<8xf32> to vector<8x1xf32>
    %61 = vector.broadcast %60 : vector<8x1xf32> to vector<8x8xf32>
    %62 = arith.subf %58, %61 : vector<8x8xf32>
    %63 = math.exp %62 : vector<8x8xf32>
    %cst_48 = arith.constant dense<0.000000e+00> : vector<8xf32>
    %64 = vector.multi_reduction <add>, %63, %cst_48 [1] : vector<8x8xf32> to vector<8xf32>
    %65 = vector.shape_cast %64 : vector<8xf32> to vector<8x1xf32>
    %66 = tpu.reciprocal %65 {approx = true} : vector<8x1xf32> -> vector<8x1xf32>
    %67 = vector.broadcast %66 : vector<8x1xf32> to vector<8x8xf32>
    %68 = arith.mulf %63, %67 : vector<8x8xf32>
    %69 = arith.truncf %68 : vector<8x8xf32> to vector<8x8xbf16>
    %cst_49 = arith.constant dense<0.000000e+00> : vector<8x32xf32>
    %70 = tpu.matmul %69, %55, %cst_49 {dimension_numbers = #tpu.dot_dimension_numbers<[1], [0], [0], [1], [0, 0, 1, 1], [], []>} : vector<8x8xbf16>, vector<8x32xbf16>, vector<8x32xf32> -> vector<8x32xf32>
    %71 = arith.truncf %70 : vector<8x32xf32> to vector<8x32xbf16>
    %c1_50 = arith.constant 1 : index
    %c0_51 = arith.constant 0 : index
    %c0_52 = arith.constant 0 : index
    %72 = vector.load %arg6[%c1_50, %c0_51, %c0_52] : memref<4x32x128xbf16, #tpu.memory_space<vmem>>, vector<1x32x128xbf16>
    %73 = vector.shape_cast %72 : vector<1x32x128xbf16> to vector<32x128xbf16>
    %cst_53 = arith.constant dense<0.000000e+00> : vector<8x128xf32>
    %74 = tpu.matmul %71, %73, %cst_53 {dimension_numbers = #tpu.dot_dimension_numbers<[1], [0], [0], [1], [0, 0, 1, 1], [], []>} : vector<8x32xbf16>, vector<32x128xbf16>, vector<8x128xf32> -> vector<8x128xf32>
    %75 = arith.addf %43, %74 : vector<8x128xf32>
    %c0_54 = arith.constant 0 : index
    %c2 = arith.constant 2 : index
    %c0_55 = arith.constant 0 : index
    %c0_56 = arith.constant 0 : index
    %76 = vector.load %arg4[%c0_54, %c2, %c0_55, %c0_56] : memref<3x4x128x32xbf16, #tpu.memory_space<vmem>>, vector<1x1x128x32xbf16>
    %77 = vector.shape_cast %76 : vector<1x1x128x32xbf16> to vector<128x32xbf16>
    %cst_57 = arith.constant dense<0.000000e+00> : vector<8x32xf32>
    %78 = tpu.matmul %7, %77, %cst_57 {dimension_numbers = #tpu.dot_dimension_numbers<[1], [0], [0], [1], [0, 0, 1, 1], [], []>} : vector<8x128xbf16>, vector<128x32xbf16>, vector<8x32xf32> -> vector<8x32xf32>
    %c0_58 = arith.constant 0 : index
    %c2_59 = arith.constant 2 : index
    %c0_60 = arith.constant 0 : index
    %c0_61 = arith.constant 0 : index
    %79 = vector.load %arg5[%c0_58, %c2_59, %c0_60, %c0_61] : memref<3x4x1x32xf32, #tpu.memory_space<vmem>>, vector<1x1x1x32xf32>
    %80 = vector.shape_cast %79 : vector<1x1x1x32xf32> to vector<1x32xf32>
    %81 = vector.broadcast %80 : vector<1x32xf32> to vector<8x32xf32>
    %82 = arith.addf %78, %81 : vector<8x32xf32>
    %83 = arith.truncf %82 : vector<8x32xf32> to vector<8x32xbf16>
    %c0_62 = arith.constant 0 : index
    %c2_63 = arith.constant 2 : index
    %c0_64 = arith.constant 0 : index
    %c0_65 = arith.constant 0 : index
    %84 = vector.load %arg12[%c0_62, %c2_63, %c0_64, %c0_65] : memref<2x4x8x32xbf16, #tpu.memory_space<vmem>>, vector<1x1x8x32xbf16>
    %85 = vector.shape_cast %84 : vector<1x1x8x32xbf16> to vector<8x32xbf16>
    %c1_66 = arith.constant 1 : index
    %c2_67 = arith.constant 2 : index
    %c0_68 = arith.constant 0 : index
    %c0_69 = arith.constant 0 : index
    %86 = vector.load %arg12[%c1_66, %c2_67, %c0_68, %c0_69] : memref<2x4x8x32xbf16, #tpu.memory_space<vmem>>, vector<1x1x8x32xbf16>
    %87 = vector.shape_cast %86 : vector<1x1x8x32xbf16> to vector<8x32xbf16>
    %cst_70 = arith.constant dense<0.000000e+00> : vector<8x8xf32>
    %88 = tpu.matmul %83, %85, %cst_70 {dimension_numbers = #tpu.dot_dimension_numbers<[1], [1], [0], [0], [0, 0, 1, 0], [], []>} : vector<8x32xbf16>, vector<8x32xbf16>, vector<8x8xf32> -> vector<8x8xf32>
    %89 = vector.broadcast %10 : vector<1x8xf32> to vector<8x8xf32>
    %90 = arith.addf %88, %89 : vector<8x8xf32>
    %cst_71 = arith.constant dense<0xFF800000> : vector<8xf32>
    %91 = vector.multi_reduction <maximumf>, %90, %cst_71 [1] : vector<8x8xf32> to vector<8xf32>
    %92 = vector.shape_cast %91 : vector<8xf32> to vector<8x1xf32>
    %93 = vector.broadcast %92 : vector<8x1xf32> to vector<8x8xf32>
    %94 = arith.subf %90, %93 : vector<8x8xf32>
    %95 = math.exp %94 : vector<8x8xf32>
    %cst_72 = arith.constant dense<0.000000e+00> : vector<8xf32>
    %96 = vector.multi_reduction <add>, %95, %cst_72 [1] : vector<8x8xf32> to vector<8xf32>
    %97 = vector.shape_cast %96 : vector<8xf32> to vector<8x1xf32>
    %98 = tpu.reciprocal %97 {approx = true} : vector<8x1xf32> -> vector<8x1xf32>
    %99 = vector.broadcast %98 : vector<8x1xf32> to vector<8x8xf32>
    %100 = arith.mulf %95, %99 : vector<8x8xf32>
    %101 = arith.truncf %100 : vector<8x8xf32> to vector<8x8xbf16>
    %cst_73 = arith.constant dense<0.000000e+00> : vector<8x32xf32>
    %102 = tpu.matmul %101, %87, %cst_73 {dimension_numbers = #tpu.dot_dimension_numbers<[1], [0], [0], [1], [0, 0, 1, 1], [], []>} : vector<8x8xbf16>, vector<8x32xbf16>, vector<8x32xf32> -> vector<8x32xf32>
    %103 = arith.truncf %102 : vector<8x32xf32> to vector<8x32xbf16>
    %c2_74 = arith.constant 2 : index
    %c0_75 = arith.constant 0 : index
    %c0_76 = arith.constant 0 : index
    %104 = vector.load %arg6[%c2_74, %c0_75, %c0_76] : memref<4x32x128xbf16, #tpu.memory_space<vmem>>, vector<1x32x128xbf16>
    %105 = vector.shape_cast %104 : vector<1x32x128xbf16> to vector<32x128xbf16>
    %cst_77 = arith.constant dense<0.000000e+00> : vector<8x128xf32>
    %106 = tpu.matmul %103, %105, %cst_77 {dimension_numbers = #tpu.dot_dimension_numbers<[1], [0], [0], [1], [0, 0, 1, 1], [], []>} : vector<8x32xbf16>, vector<32x128xbf16>, vector<8x128xf32> -> vector<8x128xf32>
    %107 = arith.addf %75, %106 : vector<8x128xf32>
    %c0_78 = arith.constant 0 : index
    %c3 = arith.constant 3 : index
    %c0_79 = arith.constant 0 : index
    %c0_80 = arith.constant 0 : index
    %108 = vector.load %arg4[%c0_78, %c3, %c0_79, %c0_80] : memref<3x4x128x32xbf16, #tpu.memory_space<vmem>>, vector<1x1x128x32xbf16>
    %109 = vector.shape_cast %108 : vector<1x1x128x32xbf16> to vector<128x32xbf16>
    %cst_81 = arith.constant dense<0.000000e+00> : vector<8x32xf32>
    %110 = tpu.matmul %7, %109, %cst_81 {dimension_numbers = #tpu.dot_dimension_numbers<[1], [0], [0], [1], [0, 0, 1, 1], [], []>} : vector<8x128xbf16>, vector<128x32xbf16>, vector<8x32xf32> -> vector<8x32xf32>
    %c0_82 = arith.constant 0 : index
    %c3_83 = arith.constant 3 : index
    %c0_84 = arith.constant 0 : index
    %c0_85 = arith.constant 0 : index
    %111 = vector.load %arg5[%c0_82, %c3_83, %c0_84, %c0_85] : memref<3x4x1x32xf32, #tpu.memory_space<vmem>>, vector<1x1x1x32xf32>
    %112 = vector.shape_cast %111 : vector<1x1x1x32xf32> to vector<1x32xf32>
    %113 = vector.broadcast %112 : vector<1x32xf32> to vector<8x32xf32>
    %114 = arith.addf %110, %113 : vector<8x32xf32>
    %115 = arith.truncf %114 : vector<8x32xf32> to vector<8x32xbf16>
    %c0_86 = arith.constant 0 : index
    %c3_87 = arith.constant 3 : index
    %c0_88 = arith.constant 0 : index
    %c0_89 = arith.constant 0 : index
    %116 = vector.load %arg12[%c0_86, %c3_87, %c0_88, %c0_89] : memref<2x4x8x32xbf16, #tpu.memory_space<vmem>>, vector<1x1x8x32xbf16>
    %117 = vector.shape_cast %116 : vector<1x1x8x32xbf16> to vector<8x32xbf16>
    %c1_90 = arith.constant 1 : index
    %c3_91 = arith.constant 3 : index
    %c0_92 = arith.constant 0 : index
    %c0_93 = arith.constant 0 : index
    %118 = vector.load %arg12[%c1_90, %c3_91, %c0_92, %c0_93] : memref<2x4x8x32xbf16, #tpu.memory_space<vmem>>, vector<1x1x8x32xbf16>
    %119 = vector.shape_cast %118 : vector<1x1x8x32xbf16> to vector<8x32xbf16>
    %cst_94 = arith.constant dense<0.000000e+00> : vector<8x8xf32>
    %120 = tpu.matmul %115, %117, %cst_94 {dimension_numbers = #tpu.dot_dimension_numbers<[1], [1], [0], [0], [0, 0, 1, 0], [], []>} : vector<8x32xbf16>, vector<8x32xbf16>, vector<8x8xf32> -> vector<8x8xf32>
    %121 = vector.broadcast %10 : vector<1x8xf32> to vector<8x8xf32>
    %122 = arith.addf %120, %121 : vector<8x8xf32>
    %cst_95 = arith.constant dense<0xFF800000> : vector<8xf32>
    %123 = vector.multi_reduction <maximumf>, %122, %cst_95 [1] : vector<8x8xf32> to vector<8xf32>
    %124 = vector.shape_cast %123 : vector<8xf32> to vector<8x1xf32>
    %125 = vector.broadcast %124 : vector<8x1xf32> to vector<8x8xf32>
    %126 = arith.subf %122, %125 : vector<8x8xf32>
    %127 = math.exp %126 : vector<8x8xf32>
    %cst_96 = arith.constant dense<0.000000e+00> : vector<8xf32>
    %128 = vector.multi_reduction <add>, %127, %cst_96 [1] : vector<8x8xf32> to vector<8xf32>
    %129 = vector.shape_cast %128 : vector<8xf32> to vector<8x1xf32>
    %130 = tpu.reciprocal %129 {approx = true} : vector<8x1xf32> -> vector<8x1xf32>
    %131 = vector.broadcast %130 : vector<8x1xf32> to vector<8x8xf32>
    %132 = arith.mulf %127, %131 : vector<8x8xf32>
    %133 = arith.truncf %132 : vector<8x8xf32> to vector<8x8xbf16>
    %cst_97 = arith.constant dense<0.000000e+00> : vector<8x32xf32>
    %134 = tpu.matmul %133, %119, %cst_97 {dimension_numbers = #tpu.dot_dimension_numbers<[1], [0], [0], [1], [0, 0, 1, 1], [], []>} : vector<8x8xbf16>, vector<8x32xbf16>, vector<8x32xf32> -> vector<8x32xf32>
    %135 = arith.truncf %134 : vector<8x32xf32> to vector<8x32xbf16>
    %c3_98 = arith.constant 3 : index
    %c0_99 = arith.constant 0 : index
    %c0_100 = arith.constant 0 : index
    %136 = vector.load %arg6[%c3_98, %c0_99, %c0_100] : memref<4x32x128xbf16, #tpu.memory_space<vmem>>, vector<1x32x128xbf16>
    %137 = vector.shape_cast %136 : vector<1x32x128xbf16> to vector<32x128xbf16>
    %cst_101 = arith.constant dense<0.000000e+00> : vector<8x128xf32>
    %138 = tpu.matmul %135, %137, %cst_101 {dimension_numbers = #tpu.dot_dimension_numbers<[1], [0], [0], [1], [0, 0, 1, 1], [], []>} : vector<8x32xbf16>, vector<32x128xbf16>, vector<8x128xf32> -> vector<8x128xf32>
    %139 = arith.addf %107, %138 : vector<8x128xf32>
    %c0_102 = arith.constant 0 : index
    %c0_103 = arith.constant 0 : index
    %c0_104 = arith.constant 0 : index
    %140 = vector.load %arg10[%c0_102, %c0_103, %c0_104] : memref<6x1x128xf32, #tpu.memory_space<vmem>>, vector<1x1x128xf32>
    %141 = vector.shape_cast %140 : vector<1x1x128xf32> to vector<1x128xf32>
    %c1_105 = arith.constant 1 : index
    %c0_106 = arith.constant 0 : index
    %c0_107 = arith.constant 0 : index
    %142 = vector.load %arg10[%c1_105, %c0_106, %c0_107] : memref<6x1x128xf32, #tpu.memory_space<vmem>>, vector<1x1x128xf32>
    %143 = vector.shape_cast %142 : vector<1x1x128xf32> to vector<1x128xf32>
    %c2_108 = arith.constant 2 : index
    %c0_109 = arith.constant 0 : index
    %c0_110 = arith.constant 0 : index
    %144 = vector.load %arg10[%c2_108, %c0_109, %c0_110] : memref<6x1x128xf32, #tpu.memory_space<vmem>>, vector<1x1x128xf32>
    %145 = vector.shape_cast %144 : vector<1x1x128xf32> to vector<1x128xf32>
    %c3_111 = arith.constant 3 : index
    %c0_112 = arith.constant 0 : index
    %c0_113 = arith.constant 0 : index
    %146 = vector.load %arg10[%c3_111, %c0_112, %c0_113] : memref<6x1x128xf32, #tpu.memory_space<vmem>>, vector<1x1x128xf32>
    %147 = vector.shape_cast %146 : vector<1x1x128xf32> to vector<1x128xf32>
    %c4 = arith.constant 4 : index
    %c0_114 = arith.constant 0 : index
    %c0_115 = arith.constant 0 : index
    %148 = vector.load %arg10[%c4, %c0_114, %c0_115] : memref<6x1x128xf32, #tpu.memory_space<vmem>>, vector<1x1x128xf32>
    %149 = vector.shape_cast %148 : vector<1x1x128xf32> to vector<1x128xf32>
    %c5 = arith.constant 5 : index
    %c0_116 = arith.constant 0 : index
    %c0_117 = arith.constant 0 : index
    %150 = vector.load %arg10[%c5, %c0_116, %c0_117] : memref<6x1x128xf32, #tpu.memory_space<vmem>>, vector<1x1x128xf32>
    %151 = vector.shape_cast %150 : vector<1x1x128xf32> to vector<1x128xf32>
    %152 = vector.broadcast %149 : vector<1x128xf32> to vector<8x128xf32>
    %153 = arith.addf %139, %152 : vector<8x128xf32>
    %154 = arith.addf %153, %8 : vector<8x128xf32>
    %cst_118 = arith.constant dense<0.000000e+00> : vector<8xf32>
    %155 = vector.multi_reduction <add>, %154, %cst_118 [1] : vector<8x128xf32> to vector<8xf32>
    %156 = vector.shape_cast %155 : vector<8xf32> to vector<8x1xf32>
    %cst_119 = arith.constant 1.280000e+02 : f32
    %157 = vector.broadcast %cst_119 : f32 to vector<8x1xf32>
    %158 = arith.divf %156, %157 : vector<8x1xf32>
    %159 = arith.mulf %154, %154 : vector<8x128xf32>
    %cst_120 = arith.constant dense<0.000000e+00> : vector<8xf32>
    %160 = vector.multi_reduction <add>, %159, %cst_120 [1] : vector<8x128xf32> to vector<8xf32>
    %161 = vector.shape_cast %160 : vector<8xf32> to vector<8x1xf32>
    %cst_121 = arith.constant 1.280000e+02 : f32
    %162 = vector.broadcast %cst_121 : f32 to vector<8x1xf32>
    %163 = arith.divf %161, %162 : vector<8x1xf32>
    %164 = arith.mulf %158, %158 : vector<8x1xf32>
    %165 = arith.subf %163, %164 : vector<8x1xf32>
    %166 = vector.broadcast %158 : vector<8x1xf32> to vector<8x128xf32>
    %167 = arith.subf %154, %166 : vector<8x128xf32>
    %cst_122 = arith.constant 9.99999996E-13 : f32
    %168 = vector.broadcast %cst_122 : f32 to vector<8x1xf32>
    %169 = arith.addf %165, %168 : vector<8x1xf32>
    %170 = math.rsqrt %169 : vector<8x1xf32>
    %171 = vector.broadcast %170 : vector<8x1xf32> to vector<8x128xf32>
    %172 = arith.mulf %167, %171 : vector<8x128xf32>
    %173 = vector.broadcast %141 : vector<1x128xf32> to vector<8x128xf32>
    %174 = arith.mulf %172, %173 : vector<8x128xf32>
    %175 = vector.broadcast %143 : vector<1x128xf32> to vector<8x128xf32>
    %176 = arith.addf %174, %175 : vector<8x128xf32>
    %177 = arith.truncf %176 : vector<8x128xf32> to vector<8x128xbf16>
    %c0_123 = arith.constant 0 : index
    %c0_124 = arith.constant 0 : index
    %178 = vector.load %arg7[%c0_123, %c0_124] : memref<128x256xbf16, #tpu.memory_space<vmem>>, vector<128x256xbf16>
    %cst_125 = arith.constant dense<0.000000e+00> : vector<8x256xf32>
    %179 = tpu.matmul %177, %178, %cst_125 {dimension_numbers = #tpu.dot_dimension_numbers<[1], [0], [0], [1], [0, 0, 1, 1], [], []>} : vector<8x128xbf16>, vector<128x256xbf16>, vector<8x256xf32> -> vector<8x256xf32>
    %c0_126 = arith.constant 0 : index
    %c0_127 = arith.constant 0 : index
    %180 = vector.load %arg8[%c0_126, %c0_127] : memref<1x256xf32, #tpu.memory_space<vmem>>, vector<1x256xf32>
    %181 = vector.broadcast %180 : vector<1x256xf32> to vector<8x256xf32>
    %182 = arith.addf %179, %181 : vector<8x256xf32>
    %cst_128 = arith.constant 5.000000e-01 : f32
    %183 = vector.broadcast %cst_128 : f32 to vector<8x256xf32>
    %184 = arith.mulf %183, %182 : vector<8x256xf32>
    %cst_129 = arith.constant 4.471500e-02 : f32
    %185 = vector.broadcast %cst_129 : f32 to vector<8x256xf32>
    %186 = arith.mulf %185, %182 : vector<8x256xf32>
    %187 = arith.mulf %186, %182 : vector<8x256xf32>
    %188 = arith.mulf %187, %182 : vector<8x256xf32>
    %189 = arith.addf %182, %188 : vector<8x256xf32>
    %cst_130 = arith.constant 0.797884583 : f32
    %190 = vector.broadcast %cst_130 : f32 to vector<8x256xf32>
    %191 = arith.mulf %190, %189 : vector<8x256xf32>
    %192 = math.tanh %191 : vector<8x256xf32>
    %cst_131 = arith.constant 1.000000e+00 : f32
    %193 = vector.broadcast %cst_131 : f32 to vector<8x256xf32>
    %194 = arith.addf %193, %192 : vector<8x256xf32>
    %195 = arith.mulf %184, %194 : vector<8x256xf32>
    %196 = arith.truncf %195 : vector<8x256xf32> to vector<8x256xbf16>
    %c0_132 = arith.constant 0 : index
    %c0_133 = arith.constant 0 : index
    %197 = vector.load %arg9[%c0_132, %c0_133] : memref<256x128xbf16, #tpu.memory_space<vmem>>, vector<256x128xbf16>
    %cst_134 = arith.constant dense<0.000000e+00> : vector<8x128xf32>
    %198 = tpu.matmul %196, %197, %cst_134 {dimension_numbers = #tpu.dot_dimension_numbers<[1], [0], [0], [1], [0, 0, 1, 1], [], []>} : vector<8x256xbf16>, vector<256x128xbf16>, vector<8x128xf32> -> vector<8x128xf32>
    %199 = vector.broadcast %151 : vector<1x128xf32> to vector<8x128xf32>
    %200 = arith.addf %198, %199 : vector<8x128xf32>
    %201 = arith.addf %200, %176 : vector<8x128xf32>
    %cst_135 = arith.constant dense<0.000000e+00> : vector<8xf32>
    %202 = vector.multi_reduction <add>, %201, %cst_135 [1] : vector<8x128xf32> to vector<8xf32>
    %203 = vector.shape_cast %202 : vector<8xf32> to vector<8x1xf32>
    %cst_136 = arith.constant 1.280000e+02 : f32
    %204 = vector.broadcast %cst_136 : f32 to vector<8x1xf32>
    %205 = arith.divf %203, %204 : vector<8x1xf32>
    %206 = arith.mulf %201, %201 : vector<8x128xf32>
    %cst_137 = arith.constant dense<0.000000e+00> : vector<8xf32>
    %207 = vector.multi_reduction <add>, %206, %cst_137 [1] : vector<8x128xf32> to vector<8xf32>
    %208 = vector.shape_cast %207 : vector<8xf32> to vector<8x1xf32>
    %cst_138 = arith.constant 1.280000e+02 : f32
    %209 = vector.broadcast %cst_138 : f32 to vector<8x1xf32>
    %210 = arith.divf %208, %209 : vector<8x1xf32>
    %211 = arith.mulf %205, %205 : vector<8x1xf32>
    %212 = arith.subf %210, %211 : vector<8x1xf32>
    %213 = vector.broadcast %205 : vector<8x1xf32> to vector<8x128xf32>
    %214 = arith.subf %201, %213 : vector<8x128xf32>
    %cst_139 = arith.constant 9.99999996E-13 : f32
    %215 = vector.broadcast %cst_139 : f32 to vector<8x1xf32>
    %216 = arith.addf %212, %215 : vector<8x1xf32>
    %217 = math.rsqrt %216 : vector<8x1xf32>
    %218 = vector.broadcast %217 : vector<8x1xf32> to vector<8x128xf32>
    %219 = arith.mulf %214, %218 : vector<8x128xf32>
    %220 = vector.broadcast %145 : vector<1x128xf32> to vector<8x128xf32>
    %221 = arith.mulf %219, %220 : vector<8x128xf32>
    %222 = vector.broadcast %147 : vector<1x128xf32> to vector<8x128xf32>
    %223 = arith.addf %221, %222 : vector<8x128xf32>
    %224 = arith.truncf %223 : vector<8x128xf32> to vector<8x128xbf16>
    %c0_140 = arith.constant 0 : index
    %c0_141 = arith.constant 0 : index
    %c0_142 = arith.constant 0 : index
    %225 = vector.load %arg11[%c0_140, %c0_141, %c0_142] : memref<1x8x128xbf16, #tpu.memory_space<vmem>>, vector<1x8x128xbf16>
    %226 = vector.shape_cast %225 : vector<1x8x128xbf16> to vector<8x128xbf16>
    %227 = vector.shape_cast %224 : vector<8x128xbf16> to vector<1x8x128xbf16>
    tpu.vector_store %arg11[%c0_140, %c0_141, %c0_142], %227 {strides = array<i32>} : memref<1x8x128xbf16, #tpu.memory_space<vmem>>, vector<1x8x128xbf16>,
    return
  }
  func.func @transform_0(%arg0: i32, %arg1: i32) -> (i32, i32, i32) {
    %c0_i32 = arith.constant 0 : i32
    %c0_i32_0 = arith.constant 0 : i32
    %c0_i32_1 = arith.constant 0 : i32
    return %arg0, %c0_i32, %c0_i32_0 : i32, i32, i32
  }
  func.func @transform_1(%arg0: i32, %arg1: i32) -> (i32, i32, i32) {
    %c0_i32 = arith.constant 0 : i32
    %c0_i32_0 = arith.constant 0 : i32
    %c0_i32_1 = arith.constant 0 : i32
    return %arg0, %c0_i32, %c0_i32_0 : i32, i32, i32
  }
  func.func @transform_2(%arg0: i32, %arg1: i32) -> (i32, i32, i32, i32) {
    %c0_i32 = arith.constant 0 : i32
    %c0_i32_0 = arith.constant 0 : i32
    %c0_i32_1 = arith.constant 0 : i32
    %c0_i32_2 = arith.constant 0 : i32
    %c0_i32_3 = arith.constant 0 : i32
    return %c0_i32, %c0_i32_0, %c0_i32_1, %c0_i32_2 : i32, i32, i32, i32
  }
  func.func @transform_3(%arg0: i32, %arg1: i32) -> (i32, i32, i32, i32) {
    %c0_i32 = arith.constant 0 : i32
    %c0_i32_0 = arith.constant 0 : i32
    %c0_i32_1 = arith.constant 0 : i32
    %c0_i32_2 = arith.constant 0 : i32
    %c0_i32_3 = arith.constant 0 : i32
    return %c0_i32, %c0_i32_0, %c0_i32_1, %c0_i32_2 : i32, i32, i32, i32
  }
  func.func @transform_4(%arg0: i32, %arg1: i32) -> (i32, i32, i32) {
    %c0_i32 = arith.constant 0 : i32
    %c0_i32_0 = arith.constant 0 : i32
    %c0_i32_1 = arith.constant 0 : i32
    %c0_i32_2 = arith.constant 0 : i32
    return %c0_i32, %c0_i32_0, %c0_i32_1 : i32, i32, i32
  }
  func.func @transform_5(%arg0: i32, %arg1: i32) -> (i32, i32) {
    %c0_i32 = arith.constant 0 : i32
    %c0_i32_0 = arith.constant 0 : i32
    %c0_i32_1 = arith.constant 0 : i32
    return %c0_i32, %c0_i32_0 : i32, i32
  }
  func.func @transform_6(%arg0: i32, %arg1: i32) -> (i32, i32) {
    %c0_i32 = arith.constant 0 : i32
    %c0_i32_0 = arith.constant 0 : i32
    %c0_i32_1 = arith.constant 0 : i32
    return %c0_i32, %c0_i32_0 : i32, i32
  }
  func.func @transform_7(%arg0: i32, %arg1: i32) -> (i32, i32) {
    %c0_i32 = arith.constant 0 : i32
    %c0_i32_0 = arith.constant 0 : i32
    %c0_i32_1 = arith.constant 0 : i32
    return %c0_i32, %c0_i32_0 : i32, i32
  }
  func.func @transform_8(%arg0: i32, %arg1: i32) -> (i32, i32, i32) {
    %c0_i32 = arith.constant 0 : i32
    %c0_i32_0 = arith.constant 0 : i32
    %c0_i32_1 = arith.constant 0 : i32
    %c0_i32_2 = arith.constant 0 : i32
    return %c0_i32, %c0_i32_0, %c0_i32_1 : i32, i32, i32
  }
  func.func @transform_9(%arg0: i32, %arg1: i32) -> (i32, i32, i32) {
    %c0_i32 = arith.constant 0 : i32
    %c0_i32_0 = arith.constant 0 : i32
    return %arg0, %arg1, %c0_i32 : i32, i32, i32
  }
}

</mosaic_0001>

<bundles_post_ra>
// kernel: tpu_custom_call.1
= control target key start
LH: loop header
LB: loop body
LE: loop exit
PB: predicated region body
PF: predicated region fallthrough
CT: control target
= control target key end

     0   :  { %6 = vsyncpa [#allocation3], 0  ;;  %s125_s0 = inlined_call_operand.hbm [shape: f32[8,128], index: 0, kind: input, shape index: {}]   ;;  %s126_s1 = inlined_call_operand.hbm [shape: f32[8,128], index: 1, kind: output, shape index: {}]  }
   0x1   :  { %7 = vsyncpa [#allocation4], 0  ;;  %s89_s6 = smov [#allocation2]   ;;  %s41_s10 = scalar_lea.hbm %s125_s0, 128 }
   0x2   :  { %s14_s7 = sshll.u32 %s89_s6, 4  ;;  %p42_p0 = scmp.ne.s32.totalorder %s125_s0, %s41_s10  ;;  %s15_s7 = int_to_ptr.vmem [resolvable:$true] %s14_s7 }
   0x3   :  { %p45_p1 = scmp.lt.u32.totalorder %s41_s10, %s125_s0 }
   0x5   :  { %p47_p2 = pnand %p45_p1, %p42_p0 }
   0x7   :  { %50 = shalt.err (!%p47_p2)
}
   0x8   :  { %s51_s15 = scalar_lea.vmem %s15_s7, 128  ;;  %p56_p4 = scmp.lt.s32.totalorder %s15_s7, %s15_s7 }
   0x9   :  { %p52_p3 = scmp.ne.s32.totalorder %s15_s7, %s51_s15  ;;  %p57_p5 = scmp.lt.s32.totalorder %s51_s15, %s51_s15 }
   0xb   :  { %p58_p6 = por %p57_p5, %p56_p4 }
   0xd   :  { %p59_p7 = pnand %p58_p6, %p52_p3 }
   0xf   :  { %62 = shalt.err (!%p59_p7)
}
  0x10   :  { %17 = dma.hbm_to_vmem [thread:$0]  %s125_s0, 128, %s15_s7, [#allocation3]  }
  0x11   :  { %85 = dma.done.wait [#allocation3], 128  }
  0x12   :  { %86 = vsyncadd [#allocation3], 4294967168  ;;  %s90_s18 = smov [#allocation5]   ;;  %v21_v0 = vld [vmem:[#allocation2] sm:$0xff] }
  0x13   :  { %s30_s19 = sshll.u32 %s90_s18, 4  ;;  %v22_v1 = vmul.f32 2.0, %v21_v0  ;;  %s31_s19 = int_to_ptr.vmem [resolvable:$true] %s30_s19 }
  0x14   :  { %s63_s20 = scalar_lea.vmem %s31_s19, 128  ;;  %p68_p9 = scmp.lt.s32.totalorder %s31_s19, %s31_s19 }
  0x15   :  { %23 = vst [vmem:[#allocation5] sm:$0xff] %v22_v1  ;;  %p64_p8 = scmp.ne.s32.totalorder %s31_s19, %s63_s20  ;;  %p69_p10 = scmp.lt.s32.totalorder %s63_s20, %s63_s20 }
  0x17   :  { %p70_p11 = por %p69_p10, %p68_p9 }
  0x19   :  { %p71_p12 = pnand %p70_p11, %p64_p8 }
  0x1b   :  { %74 = shalt.err (!%p71_p12)
}
  0x1c   :  { %s75_s23 = scalar_lea.hbm %s126_s1, 128 }
  0x1d   :  { %p76_p13 = scmp.ne.s32.totalorder %s126_s1, %s75_s23  ;;  %p79_p0 = scmp.lt.u32.totalorder %s75_s23, %s126_s1 }
  0x1f   :  { %p81_p1 = pnand %p79_p0, %p76_p13 }
  0x21   :  { %84 = shalt.err (!%p81_p1)
}
  0x22   :  { %33 = dma.vmem_to_hbm [thread:$0]  %s31_s19, 128, %s126_s1, [#allocation4]  }
  0x23   :  { %87 = dma.done.wait [#allocation4], 128  }
  0x24   :  { %88 = vsyncadd [#allocation4], 4294967168 }
  0x25   :  { %37 = vsyncpa [#allocation3], 1 }
  0x26   :  { %38 = vsyncpa [#allocation4], 1 }

// kernel: spmm_encoder_forward.3
= control target key start
LH: loop header
LB: loop body
LE: loop exit
PB: predicated region body
PF: predicated region fallthrough
CT: control target
= control target key end

     0   :  { %10 = vsyncpa [#allocation3], 0  ;;  %s1107_s0 = inlined_call_operand.hbm [shape: f32[2,8,128], index: 0, kind: input, shape index: {}]   ;;  %s1108_s1 = inlined_call_operand.hbm [shape: f32[8,128], index: 1, kind: input, shape index: {}]   ;;  %s1109_s2 = inlined_call_operand.hbm [shape: f32[1,128], index: 2, kind: input, shape index: {}]   ;;  %s1110_s3 = inlined_call_operand.hbm [shape: f32[1,128], index: 3, kind: input, shape index: {}]   ;;  %s1111_s4 = inlined_call_operand.hbm [shape: f32[1,128], index: 4, kind: input, shape index: {}]   ;;  %s1112_s5 = inlined_call_operand.hbm [shape: bf16[2,8,128], index: 5, kind: output, shape index: {}]  }
   0x1   :  { %12 = vsyncpa [#allocation3 + $0x1], 0 }
   0x2   :  { %13 = vsyncpa [#allocation6], 0 }
   0x3   :  { %14 = vsyncpa [#allocation9], 0 }
   0x4   :  { %15 = vsyncpa [#allocation4], 0 }
   0x5   :  { %17 = vsyncpa [#allocation4 + $0x1], 0  ;;  %s821_s18 = smov 0   ;;  %s823_s19 = smov 0  }
   0x6   :  { %s825_s20 = smov 0   ;;  %s827_s21 = smov 0  }
   0x7 LB: > { %s785_s22 = smov [#allocation5]   ;;  %s842_s24 = sadd.s32 4294967295, %s783_s21   ;;  %s783_s21 = sphi %s827_s21, %s1136_s21   ;;  %s779_s20 = sphi %s825_s20, %s1135_s20   ;;  %s775_s19 = sphi %s823_s19, %s1134_s19   ;;  %s771_s18 = sphi %s821_s18, %s1133_s18  }
   0x8   : > { %s177_s23 = sshll.u32 %s785_s22, 4  ;;  %p456_p0 = scmp.ge.s32.totalorder %s783_s21, 1  ;;  %s847_s23 = int_to_ptr.vmem [resolvable:$true] %s177_s23 }
   0x9   : > { %p1113_p1 = scmp.eq.s32.totalorder %s842_s24, 0  ;;  %p164_p2 = scmp.lt.s32.totalorder %s783_s21, 3 }
   0xa   : > { %s786_s26 = smov [#allocation8]   ;;  %s787_s28 = smov [#allocation7]  }
   0xb   : > { %p849_p3 = pnand %p456_p0, %p164_p2  ;;  %s199_s27 = sshll.u32 %s786_s26, 4  ;;  %s856_s27 = int_to_ptr.vmem [resolvable:$true] %s199_s27 }
   0xc   : > { %s188_s29 = sshll.u32 %s787_s28, 4  ;;  %s788_s6 = smov [#allocation10]   ;;  %s864_s29 = int_to_ptr.vmem [resolvable:$true] %s188_s29 }
   0xd   : > { %s1116_s25 = scalar_select %p849_p3, 1, 0 }
   0xe   : > { %p498_p5 = pneg %p849_p3  ;;  %s866_s7 = sshll.u32 %s788_s6, 4  ;;  %s211_s7 = int_to_ptr.vmem [resolvable:$true] %s866_s7 }
   0xf   : > { %s567_s10 = scalar_lea.hbm %s1108_s1, 128 }
  0x10   : > { %p860_p6 = pnand %p498_p5, %p1113_p1  ;;  %p568_p7 = scmp.ne.s32.totalorder %s1108_s1, %s567_s10 }
  0x11   : > { %p574_p11 = scmp.lt.u32.totalorder %s567_s10, %s1108_s1 }
  0x12   : > { %p876_p8 = pneg %p860_p6 }
  0x14   : > { %p570_p9 = pnand %p876_p8, %p568_p7 }
  0x16   : > { %p571_p10 = pneg %p570_p9 }
  0x18   : > { %p576_p12 = pnand %p574_p11, %p571_p10 }
  0x1a   : > { %579 = shalt.err (!%p576_p12)
}
  0x1b   : > { %s580_s16 = scalar_lea.vmem %s847_s23, 128  ;;  %p588_p5 = scmp.lt.s32.totalorder %s847_s23, %s847_s23 }
  0x1c   : > { %p581_p13 = scmp.ne.s32.totalorder %s847_s23, %s580_s16  ;;  %p589_p4 = scmp.lt.s32.totalorder %s580_s16, %s580_s16 }
  0x1e   : > { %p583_p0 = pnand %p581_p13, %p876_p8  ;;  %p590_p7 = por %p589_p4, %p588_p5 }
  0x20   : > { %p584_p2 = pneg %p583_p0 }
  0x22   : > { %p591_p9 = pnand %p590_p7, %p584_p2 }
  0x24   : > { %594 = shalt.err (!%p591_p9)
}
  0x25   : > { %501 = dma.hbm_to_vmem [thread:$0]  (!%p860_p6), %s1108_s1, 128, %s847_s23, [#allocation6]  }
  0x26   : > { %s595_s6 = scalar_lea.hbm %s1110_s3, 16 }
  0x27   : > { %p596_p10 = scmp.ne.s32.totalorder %s1110_s3, %s595_s6  ;;  %p602_p12 = scmp.lt.u32.totalorder %s595_s6, %s1110_s3 }
  0x29   : > { %p598_p4 = pnand %p596_p10, %p876_p8 }
  0x2b   : > { %p599_p11 = pneg %p598_p4 }
  0x2d   : > { %p604_p13 = pnand %p602_p12, %p599_p11 }
  0x2f   : > { %607 = shalt.err (!%p604_p13)
}
  0x30   : > { %s608_s23 = scalar_lea.vmem %s856_s27, 16  ;;  %s615_s12 = scalar_lea.vmem %s856_s27, 32 }
  0x31   : > { %p609_p0 = scmp.ne.s32.totalorder %s856_s27, %s608_s23  ;;  %p616_p7 = scmp.lt.s32.totalorder %s856_s27, %s856_s27 }
  0x32   : > { %p617_p9 = scmp.lt.s32.totalorder %s615_s12, %s608_s23 }
  0x33   : > { %p611_p2 = pnand %p609_p0, %p876_p8 }
  0x34   : > { %p618_p10 = por %p617_p9, %p616_p7 }
  0x35   : > { %p612_p5 = pneg %p611_p2 }
  0x37   : > { %p619_p4 = pnand %p618_p10, %p612_p5 }
  0x39   : > { %622 = shalt.err (!%p619_p4)
}
  0x3a   : > { %507 = dma.hbm_to_vmem [thread:$0]  (!%p860_p6), %s1110_s3, 16, %s856_s27, [#allocation9]  }
  0x3b   : > { %s623_s22 = scalar_lea.hbm %s1109_s2, 16 }
  0x3c   : > { %p624_p11 = scmp.ne.s32.totalorder %s1109_s2, %s623_s22  ;;  %p630_p0 = scmp.lt.u32.totalorder %s623_s22, %s1109_s2 }
  0x3e   : > { %p626_p12 = pnand %p624_p11, %p876_p8 }
  0x40   : > { %p627_p13 = pneg %p626_p12 }
  0x42   : > { %p632_p2 = pnand %p630_p0, %p627_p13 }
  0x44   : > { %635 = shalt.err (!%p632_p2)
}
  0x45   : > { %s636_s27 = scalar_lea.vmem %s864_s29, 16  ;;  %s643_s9 = scalar_lea.vmem %s864_s29, 32 }
  0x46   : > { %p637_p5 = scmp.ne.s32.totalorder %s864_s29, %s636_s27  ;;  %p644_p10 = scmp.lt.s32.totalorder %s864_s29, %s864_s29 }
  0x47   : > { %p645_p4 = scmp.lt.s32.totalorder %s643_s9, %s636_s27 }
  0x48   : > { %p639_p7 = pnand %p637_p5, %p876_p8 }
  0x49   : > { %p646_p11 = por %p645_p4, %p644_p10 }
  0x4a   : > { %p640_p9 = pneg %p639_p7 }
  0x4c   : > { %p647_p12 = pnand %p646_p11, %p640_p9 }
  0x4e   : > { %650 = shalt.err (!%p647_p12)
}
  0x4f   : > { %504 = dma.hbm_to_vmem [thread:$0]  (!%p860_p6), %s1109_s2, 16, %s864_s29, [#allocation6]  }
  0x50   : > { %s651_s14 = scalar_lea.hbm %s1111_s4, 16 }
  0x51   : > { %p652_p13 = scmp.ne.s32.totalorder %s1111_s4, %s651_s14  ;;  %p658_p5 = scmp.lt.u32.totalorder %s651_s14, %s1111_s4 }
  0x53   : > { %p654_p0 = pnand %p652_p13, %p876_p8 }
  0x55   : > { %p655_p2 = pneg %p654_p0 }
  0x57   : > { %p660_p7 = pnand %p658_p5, %p655_p2 }
  0x59   : > { %663 = shalt.err (!%p660_p7)
}
  0x5a   : > { %s664_s26 = scalar_lea.vmem %s211_s7, 16  ;;  %s671_s29 = scalar_lea.vmem %s211_s7, 32 }
  0x5b   : > { %p665_p9 = scmp.ne.s32.totalorder %s211_s7, %s664_s26  ;;  %p672_p11 = scmp.lt.s32.totalorder %s211_s7, %s211_s7 }
  0x5c   : > { %p673_p12 = scmp.lt.s32.totalorder %s671_s29, %s664_s26 }
  0x5d   : > { %p667_p10 = pnand %p665_p9, %p876_p8 }
  0x5e   : > { %p674_p1 = por %p673_p12, %p672_p11 }
  0x5f   : > { %p668_p4 = pneg %p667_p10 }
  0x61   : > { %p675_p3 = pnand %p674_p1, %p668_p4 }
  0x63   : > { %678 = shalt.err (!%p675_p3)
}
  0x64   : > { %510 = dma.hbm_to_vmem [thread:$0]  (!%p860_p6), %s1111_s4, 16, %s211_s7, [#allocation9]  }
  0x65   : > { %s455_s13 = sadd.s32 4294967294, %s783_s21   ;;  %s966_s30 = sadd.s32 1, %s783_s21  }
  0x66   : > { %s27_s8 = ssub.s32 %s783_s21, %s966_s30  ;;  %s30_s27 = sadd.s32 1, %s779_s20 }
  0x67   : > { %p28_p1 = scmp.eq.s32.totalorder %s27_s8, 0  ;;  %p37_p3 = scmp.ne.s32.totalorder %s779_s20, %s775_s19 }
  0x68   : > { %p38_p8 = scmp.eq.s32.totalorder %s783_s21, 0  ;;  %p43_p13 = scmp.ne.s32.totalorder %s775_s19, %s771_s18 }
  0x69   : > { %s977_s9 = scalar_select %p28_p1, %s779_s20, %s30_s27  }
  0x6a   : > { %p979_p0 = por %p38_p8, %p37_p3  ;;  %p1120_p2 = scmp.eq.s32.totalorder %s842_s24, 0 }
  0x6b   : > { %p151_p5 = scmp.eq.s32.totalorder %s842_s24, 1  ;;  %p157_p7 = scmp.eq.s32.totalorder %s455_s13, 1 }
  0x6c   : > { %p985_p6 = por %p1120_p2, %p43_p13  ;;  %p523_p9 = scmp.lt.s32.totalorder %s783_s21, 2 }
  0x6d   : > { %s221_s11 = sand.u32 1, %s779_s20   ;;  %p992_p10 = por %p151_p5, %p37_p3 }
  0x6e   : > { %p996_p4 = por %p157_p7, %p43_p13  ;;  %s462_s14 = sshll.u32 %s221_s11, 3 }
  0x6f   : > { %s1122_s23 = scalar_select %p992_p10, 1, 0 }
  0x70   : > { %s1123_s12 = scalar_select %p996_p4, 1, 0 }
  0x71   : > { %s463_s15 = sshll.u32 %s783_s21, 7  ;;  %s225_s26 = scalar_lea.vmem [#allocation2], %s462_s14 }
  0x72   : > { %s1004_s22 = scalar_lea.hbm %s1107_s0, %s463_s15  ;;  %s232_s29 = sshll.u32 %s225_s26, 4  ;;  %s1006_s29 = int_to_ptr.vmem [resolvable:$true] %s232_s29 }
  0x73   : > { %p1010_p11 = pnand %p523_p9, %p979_p0  ;;  %s222_s6 = scalar_lea.sflag [#allocation3], %s221_s11 }
  0x74   : > { %s679_s13 = scalar_lea.hbm %s1004_s22, 128  ;;  %s684_s14 = scalar_lea.hbm %s1107_s0, 256 }
  0x75   : > { %p680_p12 = scmp.ne.s32.totalorder %s1004_s22, %s679_s13  ;;  %p681_p1 = pneg %p1010_p11 }
  0x76   : > { %p685_p13 = scmp.lt.u32.totalorder %s1004_s22, %s1107_s0  ;;  %p686_p0 = scmp.lt.u32.totalorder %s684_s14, %s679_s13 }
  0x77   : > { %p682_p3 = pnand %p681_p1, %p680_p12  ;;  %p688_p5 = scmp.lt.u32.totalorder %s679_s13, %s1004_s22 }
  0x78   : > { %p687_p2 = por %p686_p0, %p685_p13 }
  0x79   : > { %p683_p8 = pneg %p682_p3 }
  0x7a   : > { %p689_p7 = por %p688_p5, %p687_p2 }
  0x7c   : > { %p690_p9 = pnand %p689_p7, %p683_p8 }
  0x7e   : > { %693 = shalt.err (!%p690_p9)
}
  0x7f   : > { %s694_s11 = scalar_lea.vmem %s1006_s29, 128  ;;  %s789_s16 = smov [#allocation2]  }
  0x80   : > { %p695_p12 = scmp.ne.s32.totalorder %s1006_s29, %s694_s11  ;;  %s699_s17 = sshll.u32 %s789_s16, 4  ;;  %s700_s17 = int_to_ptr.vmem [resolvable:$false] %s699_s17 }
  0x81   : > { %s701_s26 = scalar_lea.vmem %s700_s17, 256  ;;  %p702_p10 = scmp.lt.s32.totalorder %s1006_s29, %s700_s17 }
  0x82   : > { %p697_p3 = pnand %p695_p12, %p681_p1  ;;  %p703_p13 = scmp.lt.s32.totalorder %s701_s26, %s694_s11 }
  0x84   : > { %p698_p4 = pneg %p697_p3  ;;  %p704_p0 = por %p703_p13, %p702_p10 }
  0x86   : > { %p705_p2 = pnand %p704_p0, %p698_p4 }
  0x88   : > { %708 = shalt.err (!%p705_p2)
}
  0x89   : > { %514 = dma.hbm_to_vmem [thread:$0]  (!%p1010_p11), %s1004_s22, 128, %s1006_s29, %s222_s6  }
  0x8a   : > { %p1125_p8 = scmp.ne.s32.totalorder %s1116_s25, 0 }
  0x8b   : > { %s1042_s13 = sand.u32 (!%p1125_p8), 1, %s775_s19  }
  0x8c   : > { %241 = sbr.rel (%p1125_p8) target bundleno = 345 (0x159), region = 40  ;;  %s465_s8 = sshll.u32 (!%p1125_p8), %s1042_s13, 3 }
  0x8d   : > { %s244_s27 = scalar_lea.sflag (!%p1125_p8), [#allocation3], %s1042_s13  ;;  %s247_s14 = scalar_lea.vmem (!%p1125_p8), [#allocation2], %s465_s8 }
  0x93   : > { %754 = dma.done.wait (%p985_p6), %s244_s27, 128  }
  0x94   : > { %756 = vsyncadd (%p985_p6), %s244_s27, 4294967168  ;;  %p1126_p10 = scmp.eq.s32.totalorder %s842_s24, 0 }
  0x96   : > { %758 = dma.done.wait (%p1126_p10), [#allocation6], 144   ;;  %p1127_p4 = pmov %p1126_p10 }
  0x98   : > { %760 = vsyncadd (%p1127_p4), [#allocation6], 4294967152  ;;  %p1128_p11 = pmov %p1127_p4 }
  0x99   : > { %p1129_p1 = pmov %p1127_p4 }
  0x9a   : > { %762 = dma.done.wait (%p1128_p11), [#allocation9], 32  }
  0x9b   : > { %764 = vsyncadd (%p1129_p1), [#allocation9], 4294967264  ;;  %v290_v0 = vld [vmem:[%s247_s14] sm:$0xff]  ;;  %v291_v1 = vld [vmem:[#allocation5] sm:$0xff]  ;;  %s470_s25 = sshll.u32 %s1042_s13, 2  ;;  %s475_s7 = sshll.u32 %s842_s24, 6 }
  0x9c   : > { %v471_v2 = vld [vmem:[#allocation7] ss:$0 sm:$0xff]  ;;  %v292_v3 = vadd.f32 %v291_v1, %v290_v0  ;;  %v472_v15 = vld [vmem:[#allocation8] ss:$0 sm:$0xff]  ;;  %v473_v17 = vld [vmem:[#allocation10] ss:$0 sm:$0xff]  ;;  %s1063_s10 = scalar_lea.hbm %s1112_s5, %s475_s7 }
  0x9d   : > { %s289_s22 = scalar_lea.vmem [#allocation11], %s470_s25  ;;  %s334_s15 = scalar_lea.sflag [#allocation4], %s1042_s13 }
  0x9e   : > { %v300_v4 = vadd.f32 %v471_v2, %v292_v3  ;;  %s347_s29 = sshll.u32 %s289_s22, 4  ;;  %p1130_p5 = scmp.ne.s32.totalorder %s1122_s23, 0  ;;  %s1065_s29 = int_to_ptr.vmem [resolvable:$true] %s347_s29 }
  0x9f   : > { %s709_s11 = scalar_lea.vmem %s1065_s29, 64  ;;  %s790_s24 = smov [#allocation11]  }
  0xa0   : > { %303 = vadd.xlane.f32.xlu0 %v300_v4  ;;  %v307_v5 = vmul.f32 %v300_v4, %v300_v4  ;;  %p710_p6 = scmp.ne.s32.totalorder %s1065_s29, %s709_s11  ;;  %s713_s16 = sshll.u32 %s790_s24, 4  ;;  %s714_s16 = int_to_ptr.vmem [resolvable:$false] %s713_s16 }
  0xa1   : > { %s715_s17 = scalar_lea.vmem %s714_s16, 128  ;;  %p716_p12 = scmp.lt.s32.totalorder %s1065_s29, %s714_s16 }
  0xa2   : > { %p711_p7 = pnand %p710_p6, %p1130_p5  ;;  %p717_p3 = scmp.lt.s32.totalorder %s715_s17, %s709_s11 }
  0xa4   : > { %308 = vadd.xlane.f32.xlu0 %v307_v5  ;;  %p712_p9 = pneg %p711_p7  ;;  %p718_p13 = por %p717_p3, %p716_p12 }
  0xa6   : > { %p719_p0 = pnand %p718_p13, %p712_p9 }
 0x12d   : > { %v304_v6 = vpop.xlane.xlu0 %303 }
 0x12e   : > { %v306_v7 = vmul.f32 0.0078125, %v304_v6 }
 0x130   : > { %v311_v9 = vmul.f32 %v306_v7, %v306_v7  ;;  %v313_v13 = vsub.f32 %v300_v4, %v306_v7 }
 0x131   : > { %v309_v8 = vpop.xlane.xlu0 %308 }
 0x132   : > { %v310_v10 = vmul.f32 0.0078125, %v309_v8 }
 0x134   : > { %v312_v11 = vsub.f32 %v310_v10, %v311_v9 }
 0x136   : > { %v314_v12 = vadd.f32 1e-12, %v312_v11 }
 0x138   : > { %565 = vrsqrt.f32 %v314_v12 }
 0x142   : > { %v566_v14 = vpop.eup %565 }
 0x143   : > { %v316_v16 = vmul.f32 %v566_v14, %v313_v13 }
 0x145   : > { %v323_v18 = vmul.f32 %v472_v15, %v316_v16 }
 0x147   : > { %v330_v19 = vadd.f32 %v473_v17, %v323_v18 }
 0x149   : > { %v331_v20 = vpack.c.bf16 %v330_v19, %v330_v19 }
 0x14b   : > { %332 = vst [vmem:[%s289_s22] sm:$0xf] %v331_v20 }
 0x14c   : > { %722 = shalt.err (!%p719_p0)
}
 0x14d   : > { %s723_s26 = scalar_lea.hbm %s1063_s10, 64  ;;  %s727_s27 = scalar_lea.hbm %s1112_s5, 128 }
 0x14e   : > { %p724_p2 = scmp.ne.s32.totalorder %s1063_s10, %s723_s26  ;;  %p728_p4 = scmp.lt.u32.totalorder %s1063_s10, %s1112_s5 }
 0x14f   : > { %p729_p11 = scmp.lt.u32.totalorder %s727_s27, %s723_s26  ;;  %p731_p6 = scmp.lt.u32.totalorder %s723_s26, %s1063_s10 }
 0x150   : > { %p725_p8 = pnand %p724_p2, %p1130_p5 }
 0x151   : > { %p730_p1 = por %p729_p11, %p728_p4 }
 0x152   : > { %p726_p10 = pneg %p725_p8 }
 0x153   : > { %p732_p7 = por %p731_p6, %p730_p1 }
 0x155   : > { %p733_p9 = pnand %p732_p7, %p726_p10 }
 0x157   : > { %736 = shalt.err (!%p733_p9)
}
 0x158   : > { %496 = dma.vmem_to_hbm [thread:$0]  (%p1130_p5), %s1065_s29, 64, %s1063_s10, %s334_s15  }
 0x159 PF: > { %s359_s7 = sand.u32 1, %s771_s18   ;;  %p1131_p12 = scmp.ne.s32.totalorder %s1123_s12, 0 }
 0x15a   : > { %p1132_p3 = scmp.ge.s32.totalorder %s783_s21, 2  ;;  %s360_s22 = scalar_lea.sflag [#allocation4], %s359_s7 }
 0x15c   : > { %p516_p13 = pnand %p1132_p3, %p1131_p12 }
 0x15e   : > { %766 = dma.done.wait (!%p516_p13), %s360_s22, 64  }
 0x15f   : > { %768 = vsyncadd (!%p516_p13), %s360_s22, 4294967232  ;;  %p20_p0 = scmp.ge.s32.totalorder %s966_s30, 4   ;;  %s1133_s18 = smov %s775_s19 }
 0x160   : > { %s1134_s19 = smov %s779_s20  ;;  %s1135_s20 = smov %s977_s9 }
 0x161   : > { %s1136_s21 = smov %s966_s30  ;;  %22 = sbr.rel (!%p20_p0) target bundleno = 7 (0x7), region = 101 }
 0x168   :  { %365 = vsyncpa [#allocation3], 1 }
 0x169   :  { %367 = vsyncpa [#allocation3 + $0x1], 1 }
 0x16a   :  { %368 = vsyncpa [#allocation6], 1 }
 0x16b   :  { %369 = vsyncpa [#allocation9], 1 }
 0x16c   :  { %370 = vsyncpa [#allocation4], 1 }
 0x16d   :  { %372 = vsyncpa [#allocation4 + $0x1], 1 }

// kernel: spmm_encoder_forward.4
= control target key start
LH: loop header
LB: loop body
LE: loop exit
PB: predicated region body
PF: predicated region fallthrough
CT: control target
= control target key end

     0   :  { %s5240_s0 = inlined_call_operand.hbm [shape: bf16[2,8,128], index: 0, kind: input, shape index: {}]   ;;  %s5241_s1 = inlined_call_operand.hbm [shape: f32[2,1,8], index: 1, kind: input, shape index: {}]   ;;  %s5242_s2 = inlined_call_operand.hbm [shape: bf16[3,4,128,32], index: 2, kind: input, shape index: {}]   ;;  %s5243_s3 = inlined_call_operand.hbm [shape: f32[3,4,1,32], index: 3, kind: input, shape index: {}]   ;;  %s5244_s4 = inlined_call_operand.hbm [shape: bf16[4,32,128], index: 4, kind: input, shape index: {}]   ;;  %s5245_s5 = inlined_call_operand.hbm [shape: bf16[128,256], index: 5, kind: input, shape index: {}]   ;;  %s5246_s6 = inlined_call_operand.hbm [shape: f32[1,256], index: 6, kind: input, shape index: {}]   ;;  %s5247_s7 = inlined_call_operand.hbm [shape: bf16[256,128], index: 7, kind: input, shape index: {}]   ;;  %s5248_s8 = inlined_call_operand.hbm [shape: f32[6,1,128], index: 8, kind: input, shape index: {}]   ;;  %s5249_s9 = inlined_call_operand.hbm [shape: bf16[2,8,128], index: 9, kind: output, shape index: {}]  }
   0x1   :  { %5262 = sst [smem:[#allocation28_spill]] %s5240_s0 }
   0x2   :  { %5263 = sst [smem:[#allocation29_spill]] %s5242_s2 }
   0x3   :  { %5264 = sst [smem:[#allocation30_spill]] %s5243_s3 }
   0x4   :  { %5265 = sst [smem:[#allocation31_spill]] %s5249_s9 }
   0x5   :  { %14 = vsyncpa [#allocation4], 0 }
   0x6   :  { %16 = vsyncpa [#allocation4 + $0x1], 0 }
   0x7   :  { %17 = vsyncpa [#allocation7], 0 }
   0x8   :  { %19 = vsyncpa [#allocation7 + $0x1], 0 }
   0x9   :  { %20 = vsyncpa [#allocation10], 0 }
   0xa   :  { %21 = vsyncpa [#allocation13], 0 }
   0xb   :  { %22 = vsyncpa [#allocation16], 0 }
   0xc   :  { %23 = vsyncpa [#allocation5], 0 }
   0xd   :  { %25 = vsyncpa [#allocation5 + $0x1], 0  ;;  %s4596_s30 = smov 0   ;;  %s4598_s10 = smov 0  }
   0xe   :  { %s4600_s11 = smov 0   ;;  %s4602_s12 = smov 0  }
   0xf   :  { %s4604_s13 = smov 0   ;;  %s4606_s14 = smov 0  }
  0x10 LB: > { %5266 = sst [smem:[#allocation26_spill]] %s4517_s12  ;;  %s4627_s15 = sadd.s32 4294967295, %s4525_s14   ;;  %s4525_s14 = sphi %s4606_s14, %s31_s14   ;;  %s4521_s13 = sphi %s4604_s13, %s5306_s13   ;;  %s4517_s12 = sphi %s4602_s12, %s5305_s12   ;;  %s4513_s11 = sphi %s4600_s11, %s5304_s11   ;;  %s4509_s10 = sphi %s4598_s10, %s5303_s10   ;;  %s4505_s30 = sphi %s4596_s30, %s5302_s30  }
  0x11   : > { %p3181_p0 = scmp.ge.s32.totalorder %s4525_s14, 1  ;;  %p5255_p1 = scmp.eq.s32.totalorder %s4627_s15, 0 }
  0x12   : > { %p275_p2 = scmp.lt.s32.totalorder %s4525_s14, 3  ;;  %s4527_s17 = smov [#allocation8]  }
  0x13   : > { %s287_s18 = sshll.u32 %s4527_s17, 4  ;;  %s4528_s20 = smov [#allocation9]   ;;  %s4636_s18 = int_to_ptr.vmem [resolvable:$true] %s287_s18 }
  0x14   : > { %p4632_p3 = pnand %p3181_p0, %p275_p2  ;;  %s300_s21 = sshll.u32 %s4528_s20, 4  ;;  %s4647_s21 = int_to_ptr.vmem [resolvable:$true] %s300_s21 }
  0x15   : > { %s5270_s2 = sld [smem:[#allocation29_spill]] }
  0x16   : > { %s5267_s16 = scalar_select %p4632_p3, 1, 0 }
  0x17   : > { %p3886_p4 = pneg %p4632_p3 }
  0x18   : > { %5268 = sst [smem:[#allocation27_spill]] %s5267_s16 }
  0x19   : > { %p4643_p6 = pnand %p3886_p4, %p5255_p1 }
  0x1b   : > { %s4167_s24 = scalar_lea.hbm %s5270_s2, 12288  ;;  %p4657_p8 = pneg %p4643_p6 }
  0x1c   : > { %p4168_p7 = scmp.ne.s32.totalorder %s5270_s2, %s4167_s24  ;;  %p4174_p11 = scmp.lt.u32.totalorder %s4167_s24, %s5270_s2 }
  0x1e   : > { %p4170_p9 = pnand %p4657_p8, %p4168_p7 }
  0x20   : > { %p4171_p10 = pneg %p4170_p9 }
  0x22   : > { %p4176_p12 = pnand %p4174_p11, %p4171_p10 }
  0x24   : > { %4179 = shalt.err (!%p4176_p12)
}
  0x25   : > { %s4180_s17 = scalar_lea.vmem %s4636_s18, 12288  ;;  %p4188_p4 = scmp.lt.s32.totalorder %s4636_s18, %s4636_s18 }
  0x26   : > { %p4181_p13 = scmp.ne.s32.totalorder %s4636_s18, %s4180_s17  ;;  %p4189_p5 = scmp.lt.s32.totalorder %s4180_s17, %s4180_s17 }
  0x28   : > { %p4183_p0 = pnand %p4181_p13, %p4657_p8  ;;  %p4190_p7 = por %p4189_p5, %p4188_p4 }
  0x2a   : > { %p4184_p2 = pneg %p4183_p0 }
  0x2c   : > { %p4191_p9 = pnand %p4190_p7, %p4184_p2 }
  0x2e   : > { %4194 = shalt.err (!%p4191_p9)
}
  0x2f   : > { %s5251_s20 = smov 64   ;;  %s5253_s22 = smov 4  }
  0x30   : > { %3889 = dma.hbm_to_vmem [thread:$0]  (!%p4643_p6), %s5270_s2, 12288, %s4636_s18, [#allocation7], %s5251_s20, %s5251_s20, %s5253_s22  }
  0x31   : > { %s5272_s3 = sld [smem:[#allocation30_spill]] }
  0x37   : > { %s4195_s28 = scalar_lea.hbm %s5272_s3, 192 }
  0x38   : > { %p4196_p5 = scmp.ne.s32.totalorder %s5272_s3, %s4195_s28  ;;  %p4202_p12 = scmp.lt.u32.totalorder %s4195_s28, %s5272_s3 }
  0x3a   : > { %p4198_p10 = pnand %p4196_p5, %p4657_p8 }
  0x3c   : > { %p4199_p11 = pneg %p4198_p10 }
  0x3e   : > { %p4204_p13 = pnand %p4202_p12, %p4199_p11 }
  0x40   : > { %4207 = shalt.err (!%p4204_p13)
}
  0x41   : > { %s4208_s18 = scalar_lea.vmem %s4647_s21, 192  ;;  %p4216_p7 = scmp.lt.s32.totalorder %s4647_s21, %s4647_s21 }
  0x42   : > { %p4209_p0 = scmp.ne.s32.totalorder %s4647_s21, %s4208_s18  ;;  %p4217_p9 = scmp.lt.s32.totalorder %s4208_s18, %s4208_s18 }
  0x44   : > { %p4211_p2 = pnand %p4209_p0, %p4657_p8  ;;  %p4218_p5 = por %p4217_p9, %p4216_p7 }
  0x46   : > { %p4212_p4 = pneg %p4211_p2 }
  0x48   : > { %p4219_p10 = pnand %p4218_p5, %p4212_p4 }
  0x4a   : > { %4222 = shalt.err (!%p4219_p10)
}
  0x4b   : > { %s5257_s23 = smov 16   ;;  %s5258_s9 = smov 1  }
  0x4c   : > { %3892 = dma.hbm_to_vmem [thread:$0]  (!%p4643_p6), %s5272_s3, 192, %s4647_s21, [#allocation10], %s5257_s23, %s5257_s23, %s5258_s9  }
  0x4d   : > { %s4533_s25 = smov [#allocation12]   ;;  %s4223_s17 = scalar_lea.hbm %s5245_s5, 2048 }
  0x4e   : > { %s326_s26 = sshll.u32 %s4533_s25, 4  ;;  %p4224_p11 = scmp.ne.s32.totalorder %s5245_s5, %s4223_s17  ;;  %s327_s26 = int_to_ptr.vmem [resolvable:$true] %s326_s26 }
  0x4f   : > { %p4230_p0 = scmp.lt.u32.totalorder %s4223_s17, %s5245_s5 }
  0x50   : > { %p4226_p12 = pnand %p4224_p11, %p4657_p8 }
  0x52   : > { %p4227_p13 = pneg %p4226_p12 }
  0x54   : > { %p4232_p2 = pnand %p4230_p0, %p4227_p13 }
  0x56   : > { %4235 = shalt.err (!%p4232_p2)
}
  0x57   : > { %s4236_s21 = scalar_lea.vmem %s327_s26, 2048  ;;  %p4244_p5 = scmp.lt.s32.totalorder %s327_s26, %s327_s26 }
  0x58   : > { %p4237_p4 = scmp.ne.s32.totalorder %s327_s26, %s4236_s21  ;;  %p4245_p10 = scmp.lt.s32.totalorder %s4236_s21, %s4236_s21 }
  0x5a   : > { %p4239_p7 = pnand %p4237_p4, %p4657_p8  ;;  %p4246_p1 = por %p4245_p10, %p4244_p5 }
  0x5c   : > { %p4240_p9 = pneg %p4239_p7 }
  0x5e   : > { %p4247_p3 = pnand %p4246_p1, %p4240_p9 }
  0x60   : > { %4250 = shalt.err (!%p4247_p3)
}
  0x61   : > { %s4534_s20 = smov 128   ;;  %s4535_s12 = smov 8  }
  0x62   : > { %3898 = dma.hbm_to_vmem [thread:$0]  (!%p4643_p6), %s5245_s5, 2048, %s327_s26, [#allocation13], %s4534_s20, %s4534_s20, %s4535_s12  }
  0x63   : > { %s4536_s24 = smov [#allocation15]   ;;  %s4537_s28 = smov [#allocation11]  }
  0x64   : > { %s350_s25 = sshll.u32 %s4536_s24, 4  ;;  %s313_s29 = sshll.u32 %s4537_s28, 4  ;;  %s351_s25 = int_to_ptr.vmem [resolvable:$true] %s350_s25  ;;  %s314_s29 = int_to_ptr.vmem [resolvable:$true] %s313_s29 }
  0x65   : > { %s4251_s21 = scalar_lea.hbm %s5247_s7, 2048 }
  0x66   : > { %p4252_p1 = scmp.ne.s32.totalorder %s5247_s7, %s4251_s21  ;;  %p4258_p12 = scmp.lt.u32.totalorder %s4251_s21, %s5247_s7 }
  0x68   : > { %p4254_p3 = pnand %p4252_p1, %p4657_p8 }
  0x6a   : > { %p4255_p11 = pneg %p4254_p3 }
  0x6c   : > { %p4260_p13 = pnand %p4258_p12, %p4255_p11 }
  0x6e   : > { %4263 = shalt.err (!%p4260_p13)
}
  0x6f   : > { %s4264_s26 = scalar_lea.vmem %s351_s25, 2048  ;;  %p4272_p7 = scmp.lt.s32.totalorder %s351_s25, %s351_s25 }
  0x70   : > { %p4265_p0 = scmp.ne.s32.totalorder %s351_s25, %s4264_s26  ;;  %p4273_p9 = scmp.lt.s32.totalorder %s4264_s26, %s4264_s26 }
  0x72   : > { %p4267_p2 = pnand %p4265_p0, %p4657_p8  ;;  %p4274_p5 = por %p4273_p9, %p4272_p7 }
  0x74   : > { %p4268_p4 = pneg %p4267_p2 }
  0x76   : > { %p4275_p10 = pnand %p4274_p5, %p4268_p4 }
  0x78   : > { %4278 = shalt.err (!%p4275_p10)
}
  0x79   : > { %s5273_s23 = smov 4   ;;  %s5274_s9 = smov 64  }
  0x7a   : > { %3904 = dma.hbm_to_vmem [thread:$0]  (!%p4643_p6), %s5247_s7, 2048, %s351_s25, [#allocation16], %s5274_s9, %s5274_s9, %s5273_s23  }
  0x7b   : > { %s4279_s2 = scalar_lea.hbm %s5244_s4, 1024 }
  0x7c   : > { %p4280_p1 = scmp.ne.s32.totalorder %s5244_s4, %s4279_s2  ;;  %p4286_p12 = scmp.lt.u32.totalorder %s4279_s2, %s5244_s4 }
  0x7e   : > { %p4282_p3 = pnand %p4280_p1, %p4657_p8 }
  0x80   : > { %p4283_p11 = pneg %p4282_p3 }
  0x82   : > { %p4288_p13 = pnand %p4286_p12, %p4283_p11 }
  0x84   : > { %4291 = shalt.err (!%p4288_p13)
}
  0x85   : > { %s4292_s18 = scalar_lea.vmem %s314_s29, 1024  ;;  %p4300_p7 = scmp.lt.s32.totalorder %s314_s29, %s314_s29 }
  0x86   : > { %p4293_p0 = scmp.ne.s32.totalorder %s314_s29, %s4292_s18  ;;  %p4301_p9 = scmp.lt.s32.totalorder %s4292_s18, %s4292_s18 }
  0x88   : > { %p4295_p2 = pnand %p4293_p0, %p4657_p8  ;;  %p4302_p5 = por %p4301_p9, %p4300_p7 }
  0x8a   : > { %p4296_p4 = pneg %p4295_p2 }
  0x8c   : > { %p4303_p10 = pnand %p4302_p5, %p4296_p4 }
  0x8e   : > { %4306 = shalt.err (!%p4303_p10)
}
  0x8f   : > { %3895 = dma.hbm_to_vmem [thread:$0]  (!%p4643_p6), %s5244_s4, 1024, %s314_s29, [#allocation10], %s5274_s9, %s5274_s9, %s5273_s23  }
  0x90   : > { %s4538_s26 = smov [#allocation14]   ;;  %s4539_s16 = smov [#allocation17]  }
  0x91   : > { %s340_s3 = sshll.u32 %s4538_s26, 4  ;;  %s363_s20 = sshll.u32 %s4539_s16, 4  ;;  %s341_s3 = int_to_ptr.vmem [resolvable:$true] %s340_s3  ;;  %s364_s20 = int_to_ptr.vmem [resolvable:$true] %s363_s20 }
  0x92   : > { %s4307_s22 = scalar_lea.hbm %s5246_s6, 32 }
  0x93   : > { %p4308_p1 = scmp.ne.s32.totalorder %s5246_s6, %s4307_s22  ;;  %p4314_p12 = scmp.lt.u32.totalorder %s4307_s22, %s5246_s6 }
  0x95   : > { %p4310_p3 = pnand %p4308_p1, %p4657_p8 }
  0x97   : > { %p4311_p11 = pneg %p4310_p3 }
  0x99   : > { %p4316_p13 = pnand %p4314_p12, %p4311_p11 }
  0x9b   : > { %4319 = shalt.err (!%p4316_p13)
}
  0x9c   : > { %s4320_s29 = scalar_lea.vmem %s341_s3, 32  ;;  %p4328_p7 = scmp.lt.s32.totalorder %s341_s3, %s341_s3 }
  0x9d   : > { %p4321_p0 = scmp.ne.s32.totalorder %s341_s3, %s4320_s29  ;;  %p4329_p9 = scmp.lt.s32.totalorder %s4320_s29, %s4320_s29 }
  0x9f   : > { %p4323_p2 = pnand %p4321_p0, %p4657_p8  ;;  %p4330_p5 = por %p4329_p9, %p4328_p7 }
  0xa1   : > { %p4324_p4 = pneg %p4323_p2 }
  0xa3   : > { %p4331_p10 = pnand %p4330_p5, %p4324_p4 }
  0xa5   : > { %4334 = shalt.err (!%p4331_p10)
}
  0xa6   : > { %3901 = dma.hbm_to_vmem [thread:$0]  (!%p4643_p6), %s5246_s6, 32, %s341_s3, [#allocation13]  }
  0xa7   : > { %s4335_s26 = scalar_lea.hbm %s5248_s8, 96 }
  0xa8   : > { %p4336_p1 = scmp.ne.s32.totalorder %s5248_s8, %s4335_s26  ;;  %p4342_p12 = scmp.lt.u32.totalorder %s4335_s26, %s5248_s8 }
  0xaa   : > { %p4338_p3 = pnand %p4336_p1, %p4657_p8 }
  0xac   : > { %p4339_p11 = pneg %p4338_p3 }
  0xae   : > { %p4344_p13 = pnand %p4342_p12, %p4339_p11 }
  0xb0   : > { %4347 = shalt.err (!%p4344_p13)
}
  0xb1   : > { %s4348_s24 = scalar_lea.vmem %s364_s20, 96  ;;  %p4356_p7 = scmp.lt.s32.totalorder %s364_s20, %s364_s20 }
  0xb2   : > { %p4349_p0 = scmp.ne.s32.totalorder %s364_s20, %s4348_s24  ;;  %p4357_p9 = scmp.lt.s32.totalorder %s4348_s24, %s4348_s24 }
  0xb4   : > { %p4351_p2 = pnand %p4349_p0, %p4657_p8  ;;  %p4358_p5 = por %p4357_p9, %p4356_p7 }
  0xb6   : > { %p4352_p4 = pneg %p4351_p2 }
  0xb8   : > { %p4359_p10 = pnand %p4358_p5, %p4352_p4 }
  0xba   : > { %4362 = shalt.err (!%p4359_p10)
}
  0xbb   : > { %s5275_s3 = smov 1   ;;  %s5276_s28 = smov 16  }
  0xbc   : > { %3907 = dma.hbm_to_vmem [thread:$0]  (!%p4643_p6), %s5248_s8, 96, %s364_s20, [#allocation16], %s5276_s28, %s5276_s28, %s5275_s3  }
  0xbd   : > { %s3180_s19 = sadd.s32 4294967294, %s4525_s14   ;;  %s43_s27 = sadd.s32 1, %s4521_s13 }
  0xbe   : > { %s50_s29 = sadd.s32 1, %s4513_s11  ;;  %p45_p8 = scmp.ge.s32.totalorder %s43_s27, 2 }
  0xbf   : > { %p57_p1 = scmp.ne.s32.totalorder %s4513_s11, %s4509_s10  ;;  %p58_p3 = scmp.eq.s32.totalorder %s4525_s14, 0 }
  0xc0   : > { %p63_p11 = scmp.ne.s32.totalorder %s4509_s10, %s4505_s30  ;;  %s5308_s27 = smov (%p45_p8, %s43_s27), 0 }
  0xc1   : > { %p4816_p12 = por %p58_p3, %p57_p1  ;;  %p5278_p13 = scmp.eq.s32.totalorder %s4627_s15, 0 }
  0xc2   : > { %s47_s9 = ssub.s32 %s4521_s13, %s5308_s27  ;;  %p262_p0 = scmp.eq.s32.totalorder %s4627_s15, 1 }
  0xc3   : > { %p4822_p6 = por %p5278_p13, %p63_p11  ;;  %p48_p2 = scmp.eq.s32.totalorder %s47_s9, 0 }
  0xc4   : > { %p268_p4 = scmp.eq.s32.totalorder %s3180_s19, 1  ;;  %p4829_p7 = por %p262_p0, %p57_p1 }
  0xc5   : > { %s5279_s20 = scalar_select %p4822_p6, 1, 0 }
  0xc6   : > { %s5280_s25 = scalar_select %p4829_p7, 1, 0 }
  0xc7   : > { %p3926_p9 = scmp.lt.s32.totalorder %s4525_s14, 2  ;;  %p4837_p5 = por %p268_p4, %p63_p11 }
  0xc8   : > { %s4835_s21 = scalar_select %p48_p2, %s4513_s11, %s50_s29  }
  0xc9   : > { %s5281_s26 = scalar_select %p4837_p5, 1, 0 }
  0xca   : > { %s4842_s16 = sand.u32 1, %s4513_s11   ;;  %s3191_s2 = sshll.u32 %s4521_s13, 6 }
  0xcb   : > { %s3190_s12 = sshll.u32 %s4842_s16, 2  ;;  %s5282_s0 = sld [smem:[#allocation28_spill]] }
  0xcc   : > { %s381_s28 = scalar_lea.vmem [#allocation3], %s3190_s12  ;;  %p4855_p10 = pnand %p3926_p9, %p4816_p12 }
  0xcd   : > { %s388_s17 = sshll.u32 %s381_s28, 4  ;;  %s378_s29 = scalar_lea.sflag [#allocation4], %s4842_s16  ;;  %s4851_s17 = int_to_ptr.vmem [resolvable:$true] %s388_s17 }
  0xce   : > { %p4365_p1 = pneg %p4855_p10 }
  0xd1   : > { %s4849_s3 = scalar_lea.hbm %s5282_s0, %s3191_s2  ;;  %s4368_s23 = scalar_lea.hbm %s5282_s0, 128 }
  0xd2   : > { %s4363_s9 = scalar_lea.hbm %s4849_s3, 64  ;;  %p4369_p12 = scmp.lt.u32.totalorder %s4849_s3, %s5282_s0 }
  0xd3   : > { %p4364_p8 = scmp.ne.s32.totalorder %s4849_s3, %s4363_s9  ;;  %p4370_p13 = scmp.lt.u32.totalorder %s4368_s23, %s4363_s9 }
  0xd4   : > { %p4372_p2 = scmp.lt.u32.totalorder %s4363_s9, %s4849_s3 }
  0xd5   : > { %p4366_p3 = pnand %p4365_p1, %p4364_p8  ;;  %p4371_p0 = por %p4370_p13, %p4369_p12 }
  0xd7   : > { %p4367_p11 = pneg %p4366_p3  ;;  %p4373_p4 = por %p4372_p2, %p4371_p0 }
  0xd9   : > { %p4374_p9 = pnand %p4373_p4, %p4367_p11 }
  0xdb   : > { %4377 = shalt.err (!%p4374_p9)
}
  0xdc   : > { %s4378_s28 = scalar_lea.vmem %s4851_s17, 64  ;;  %s4540_s12 = smov [#allocation3]  }
  0xdd   : > { %p4379_p8 = scmp.ne.s32.totalorder %s4851_s17, %s4378_s28  ;;  %s4383_s2 = sshll.u32 %s4540_s12, 4  ;;  %s4384_s2 = int_to_ptr.vmem [resolvable:$false] %s4383_s2 }
  0xde   : > { %s4385_s22 = scalar_lea.vmem %s4384_s2, 128  ;;  %p4386_p7 = scmp.lt.s32.totalorder %s4851_s17, %s4384_s2 }
  0xdf   : > { %p4381_p3 = pnand %p4379_p8, %p4365_p1  ;;  %p4387_p12 = scmp.lt.s32.totalorder %s4385_s22, %s4378_s28 }
  0xe1   : > { %p4382_p5 = pneg %p4381_p3  ;;  %p4388_p13 = por %p4387_p12, %p4386_p7 }
  0xe3   : > { %p4389_p0 = pnand %p4388_p13, %p4382_p5 }
  0xe5   : > { %4392 = shalt.err (!%p4389_p0)
}
  0xe6   : > { %3911 = dma.hbm_to_vmem [thread:$0]  (!%p4855_p10), %s4849_s3, 64, %s4851_s17, %s378_s29  }
  0xe7   : > { %s3192_s9 = sshll.u32 %s4521_s13, 4  ;;  %s398_s23 = scalar_lea.vmem [#allocation6], %s4842_s16 }
  0xe8   : > { %s405_s24 = sshll.u32 %s398_s23, 4  ;;  %s4891_s2 = scalar_lea.hbm %s5241_s1, %s3192_s9  ;;  %s406_s24 = int_to_ptr.vmem [resolvable:$true] %s405_s24 }
  0xe9   : > { %s5284_s28 = sand.u32 1, %s4525_s14   ;;  %s4393_s0 = scalar_lea.hbm %s4891_s2, 16 }
  0xea   : > { %s396_s22 = scalar_lea.sflag [#allocation7], %s5284_s28  ;;  %p4394_p7 = scmp.ne.s32.totalorder %s4891_s2, %s4393_s0 }
  0xeb   : > { %s4398_s17 = scalar_lea.hbm %s5241_s1, 32  ;;  %p4399_p2 = scmp.lt.u32.totalorder %s4891_s2, %s5241_s1 }
  0xec   : > { %p4396_p5 = pnand %p4394_p7, %p4365_p1  ;;  %p4400_p4 = scmp.lt.u32.totalorder %s4398_s17, %s4393_s0 }
  0xed   : > { %p4402_p8 = scmp.lt.u32.totalorder %s4393_s0, %s4891_s2 }
  0xee   : > { %p4397_p11 = pneg %p4396_p5  ;;  %p4401_p9 = por %p4400_p4, %p4399_p2 }
  0xf0   : > { %p4403_p3 = por %p4402_p8, %p4401_p9 }
  0xf2   : > { %p4404_p12 = pnand %p4403_p3, %p4397_p11 }
  0xf4   : > { %4407 = shalt.err (!%p4404_p12)
}
  0xf5   : > { %s4408_s9 = scalar_lea.vmem %s406_s24, 16  ;;  %s4541_s23 = smov [#allocation6]  }
  0xf6   : > { %p4409_p13 = scmp.ne.s32.totalorder %s406_s24, %s4408_s9  ;;  %s4413_s12 = sshll.u32 %s4541_s23, 4  ;;  %s4414_s12 = int_to_ptr.vmem [resolvable:$false] %s4413_s12 }
  0xf7   : > { %s4415_s28 = scalar_lea.vmem %s4414_s12, 32  ;;  %p4416_p5 = scmp.lt.s32.totalorder %s406_s24, %s4414_s12 }
  0xf8   : > { %p4411_p0 = pnand %p4409_p13, %p4365_p1  ;;  %p4417_p6 = scmp.lt.s32.totalorder %s4415_s28, %s4408_s9 }
  0xfa   : > { %p4412_p7 = pneg %p4411_p0  ;;  %p4418_p2 = por %p4417_p6, %p4416_p5 }
  0xfc   : > { %p4419_p4 = pnand %p4418_p2, %p4412_p7 }
  0xfe   : > { %4422 = shalt.err (!%p4419_p4)
}
  0xff   : > { %3914 = dma.hbm_to_vmem [thread:$0]  (!%p4855_p10), %s4891_s2, 16, %s406_s24, %s396_s22  }
 0x100   : > { %s5285_s0 = sld [smem:[#allocation27_spill]] }
 0x106   : > { %p5286_p11 = scmp.ne.s32.totalorder %s5285_s0, 0 }
 0x107   : > { %s4917_s16 = sand.u32 (!%p5286_p11), 1, %s4509_s10   ;;  %p5287_p6 = scmp.ne.s32.totalorder (!%p5286_p11), %s5279_s20, 0 }
 0x108   : > { %414 = sbr.rel (%p5286_p11) target bundleno = 5204 (0x1454), region = 56  ;;  %s3194_s3 = sshll.u32 (!%p5286_p11), %s4917_s16, 2 }
 0x109   : > { %s417_s17 = scalar_lea.sflag (!%p5286_p11), [#allocation4], %s4917_s16  ;;  %s4923_s19 = scalar_lea.vmem (!%p5286_p11), [#allocation3], %s3194_s3 }
 0x10f   : > { %4476 = dma.done.wait (%p5287_p6), %s417_s17, 64  }
 0x110   : > { %4478 = vsyncadd (%p5287_p6), %s417_s17, 4294967232  ;;  %s425_s18 = sand.u32 1, %s4627_s15   ;;  %s428_s2 = scalar_lea.vmem [#allocation6], %s4917_s16 }
 0x111   : > { %s426_s24 = scalar_lea.sflag [#allocation7], %s425_s18 }
 0x112   : > { %4480 = dma.done.wait (%p5287_p6), %s426_s24, 16  }
 0x113   : > { %4482 = vsyncadd (%p5287_p6), %s426_s24, 4294967280  ;;  %p5288_p10 = scmp.eq.s32.totalorder %s4627_s15, 0 }
 0x115   : > { %4484 = dma.done.wait (%p5288_p10), [#allocation7], 12288   ;;  %p5289_p1 = pmov %p5288_p10 }
 0x117   : > { %4486 = vsyncadd (%p5289_p1), [#allocation7], 4294955008  ;;  %p5290_p9 = pmov %p5289_p1 }
 0x118   : > { %p5291_p8 = pmov %p5289_p1 }
 0x119   : > { %4488 = dma.done.wait (%p5290_p9), [#allocation10], 1216  }
 0x11a   : > { %4490 = vsyncadd (%p5291_p8), [#allocation10], 4294966080  ;;  %p5292_p3 = pmov %p5289_p1 }
 0x11b   : > { %p5293_p12 = pmov %p5289_p1 }
 0x11c   : > { %4492 = dma.done.wait (%p5292_p3), [#allocation13], 2080  }
 0x11d   : > { %4494 = vsyncadd (%p5293_p12), [#allocation13], 4294965216  ;;  %p5294_p13 = pmov %p5289_p1 }
 0x11e   : > { %p5295_p0 = pmov %p5289_p1 }
 0x11f   : > { %4496 = dma.done.wait (%p5294_p13), [#allocation16], 2144  }
 0x120   : > { %4498 = vsyncadd (%p5295_p0), [#allocation16], 4294965152  ;;  %v4542_v0 = vmov 0.0   ;;  %vm4543_vm0 = vmmov 0   ;;  %v3999_v1 = vld [vmem:[#allocation8 + $0x100] sm:$0xff]   ;;  %v4000_v2 = vld [vmem:[#allocation8 + $0x108] sm:$0xff]  }
 0x121   : > { %3532 = vmatprep.subr.bf16.mxu0 %v4542_v0  ;;  %3548 = vmatprep.mubr.msk.bf16.mxu0 %vm4543_vm0, %v4542_v0  ;;  %v4001_v3 = vld [vmem:[#allocation8 + $0x110] sm:$0xff]   ;;  %v4002_v4 = vld [vmem:[#allocation8 + $0x118] sm:$0xff]   ;;  %v4003_v5 = vld [vmem:[#allocation8 + $0x120] sm:$0xff]   ;;  %vm728_vm1 = vcmask 257024   ;;  %vm1558_vm2 = vcmask 261120   ;;  %vm1621_vm3 = vcmask 1043456  }
 0x122   : > { %3552 = vmatprep.subr.bf16.mxu1 %v4542_v0  ;;  %3568 = vmatprep.mubr.msk.bf16.mxu1 %vm4543_vm0, %v4542_v0  ;;  %v4004_v6 = vld [vmem:[#allocation8 + $0x128] sm:$0xff]   ;;  %v4005_v7 = vld [vmem:[#allocation8 + $0x130] sm:$0xff]   ;;  %v4006_v8 = vld [vmem:[#allocation8 + $0x138] sm:$0xff]   ;;  %vm1605_vm4 = vcmask 64512   ;;  %s5296_s15 = sld [smem:[#allocation26_spill]]  ;;  %s494_s22 = scalar_lea.vmem [#allocation18], %s3194_s3 }
 0x123   : > { %3533 = vmatpush3.bf16.msra.mxu0 %v3999_v1  ;;  %v4965_v9 = vld [vmem:[%s4923_s19] sm:$0xf]  ;;  %v4007_v10 = vld [vmem:[#allocation8 + $0x140] sm:$0xff]   ;;  %v4008_v12 = vld [vmem:[#allocation8 + $0x148] sm:$0xff]   ;;  %s3012_s29 = sshll.u32 %s494_s22, 4  ;;  %s5297_s12 = sld [smem:[#allocation31_spill]]  ;;  %s5193_s29 = int_to_ptr.vmem [resolvable:$true] %s3012_s29 }
 0x124   : > { %3534 = vmatprep.subr.bf16.mxu0 %v4542_v0  ;;  %v4030_v11 = vld [vmem:[#allocation8 + $0x200] sm:$0xff]   ;;  %v4032_v13 = vld [vmem:[#allocation8 + $0x208] sm:$0xff]   ;;  %v4009_v14 = vld [vmem:[#allocation8 + $0x150] sm:$0xff]   ;;  %s2998_s17 = scalar_lea.sflag [#allocation5], %s4917_s16  ;;  %p5299_p5 = scmp.ne.s32.totalorder %s5280_s25, 0 }
 0x125   : > { %3553 = vmatpush3.bf16.msra.mxu1 %v4030_v11  ;;  %v4034_v15 = vld [vmem:[#allocation8 + $0x210] sm:$0xff]   ;;  %v4010_v16 = vld [vmem:[#allocation8 + $0x158] sm:$0xff]   ;;  %v4011_v18 = vld [vmem:[#allocation8 + $0x160] sm:$0xff]   ;;  %s4545_s3 = smov [#allocation18]  }
 0x126   : > { %3554 = vmatprep.subr.bf16.mxu1 %v4542_v0  ;;  %v4036_v17 = vld [vmem:[#allocation8 + $0x218] sm:$0xff]   ;;  %v4038_v19 = vld [vmem:[#allocation8 + $0x220] sm:$0xff]   ;;  %v4012_v20 = vld [vmem:[#allocation8 + $0x168] sm:$0xff]   ;;  %s4427_s18 = sshll.u32 %s4545_s3, 4  ;;  %s4428_s18 = int_to_ptr.vmem [resolvable:$false] %s4427_s18 }
 0x127   : > { %3535 = vmatpush3.bf16.msra.mxu0 %v4000_v2  ;;  %v4040_v21 = vld [vmem:[#allocation8 + $0x228] sm:$0xff]   ;;  %v4013_v22 = vld [vmem:[#allocation8 + $0x170] sm:$0xff]   ;;  %v4014_v24 = vld [vmem:[#allocation8 + $0x178] sm:$0xff]   ;;  %s4429_s24 = scalar_lea.vmem %s4428_s18, 128  ;;  %p4430_p11 = scmp.lt.s32.totalorder %s5193_s29, %s4428_s18 }
 0x128   : > { %3536 = vmatprep.subr.bf16.mxu0 %v4542_v0  ;;  %v4042_v23 = vld [vmem:[#allocation8 + $0x230] sm:$0xff]   ;;  %v4044_v25 = vld [vmem:[#allocation8 + $0x238] sm:$0xff]   ;;  %v4015_v26 = vld [vmem:[#allocation8 + $0x180] sm:$0xff]   ;;  %s3371_s20 = sshll.u32 %s5296_s15, 6 }
 0x129   : > { %3555 = vmatpush3.bf16.msra.mxu1 %v4032_v13  ;;  %v4046_v27 = vld [vmem:[#allocation8 + $0x240] sm:$0xff]   ;;  %v4016_v28 = vld [vmem:[#allocation8 + $0x188] sm:$0xff]   ;;  %v4017_v30 = vld [vmem:[#allocation8 + $0x190] sm:$0xff]   ;;  %s5298_s28 = smov %s5297_s12  ;;  %s5191_s0 = scalar_lea.hbm %s5297_s12, %s3371_s20 }
 0x12a   : > { %3556 = vmatprep.subr.bf16.mxu1 %v4542_v0  ;;  %v4048_v29 = vld [vmem:[#allocation8 + $0x248] sm:$0xff]   ;;  %v4049_v31 = vld [vmem:[#allocation8 + $0x250] sm:$0xff]   ;;  %v4018_v32 = vld [vmem:[#allocation8 + $0x198] sm:$0xff]  }
 0x12b   : > { %3537 = vmatpush3.bf16.msra.mxu0 %v4001_v3  ;;  %v4050_v33 = vld [vmem:[#allocation8 + $0x258] sm:$0xff]   ;;  %v4019_v34 = vld [vmem:[#allocation8 + $0x1a0] sm:$0xff]   ;;  %v4020_v36 = vld [vmem:[#allocation8 + $0x1a8] sm:$0xff]  }
 0x12c   : > { %3538 = vmatprep.subr.bf16.mxu0 %v4542_v0  ;;  %v4051_v35 = vld [vmem:[#allocation8 + $0x260] sm:$0xff]   ;;  %v4052_v37 = vld [vmem:[#allocation8 + $0x268] sm:$0xff]   ;;  %v4021_v38 = vld [vmem:[#allocation8 + $0x1b0] sm:$0xff]  }
 0x12d   : > { %3557 = vmatpush3.bf16.msra.mxu1 %v4034_v15  ;;  %v4053_v39 = vld [vmem:[#allocation8 + $0x270] sm:$0xff]   ;;  %v4022_v40 = vld [vmem:[#allocation8 + $0x1b8] sm:$0xff]   ;;  %v4023_v42 = vld [vmem:[#allocation8 + $0x1c0] sm:$0xff]  }
 0x12e   : > { %3558 = vmatprep.subr.bf16.mxu1 %v4542_v0  ;;  %v4054_v41 = vld [vmem:[#allocation8 + $0x278] sm:$0xff]   ;;  %v4055_v43 = vld [vmem:[#allocation8 + $0x280] sm:$0xff]   ;;  %v4024_v44 = vld [vmem:[#allocation8 + $0x1c8] sm:$0xff]  }
 0x12f   : > { %3539 = vmatpush3.bf16.msra.mxu0 %v4002_v4  ;;  %v4056_v45 = vld [vmem:[#allocation8 + $0x288] sm:$0xff]   ;;  %v4025_v46 = vld [vmem:[#allocation8 + $0x1d0] sm:$0xff]   ;;  %v4026_v48 = vld [vmem:[#allocation8 + $0x1d8] sm:$0xff]  }
 0x130   : > { %3540 = vmatprep.subr.bf16.mxu0 %v4542_v0  ;;  %v4057_v47 = vld [vmem:[#allocation8 + $0x290] sm:$0xff]   ;;  %v4058_v49 = vld [vmem:[#allocation8 + $0x298] sm:$0xff]   ;;  %v4027_v50 = vld [vmem:[#allocation8 + $0x1e0] sm:$0xff]  }
 0x131   : > { %3559 = vmatpush3.bf16.msra.mxu1 %v4036_v17  ;;  %v4059_v51 = vld [vmem:[#allocation8 + $0x2a0] sm:$0xff]   ;;  %v4028_v52 = vld [vmem:[#allocation8 + $0x1e8] sm:$0xff]   ;;  %v4029_v54 = vld [vmem:[#allocation8 + $0x1f0] sm:$0xff]  }
 0x132   : > { %3560 = vmatprep.subr.bf16.mxu1 %v4542_v0  ;;  %v4060_v53 = vld [vmem:[#allocation8 + $0x2a8] sm:$0xff]   ;;  %v4061_v55 = vld [vmem:[#allocation8 + $0x2b0] sm:$0xff]   ;;  %v4031_v56 = vld [vmem:[#allocation8 + $0x1f8] sm:$0xff]  }
 0x133   : > { %3541 = vmatpush3.bf16.msra.mxu0 %v4003_v5  ;;  %v4062_v57 = vld [vmem:[#allocation8 + $0x2b8] sm:$0xff]   ;;  %v4033_v58 = vld [vmem:[#allocation8] sm:$0xff]   ;;  %v4035_v60 = vld [vmem:[#allocation8 + $0x8] sm:$0xff]  }
 0x134   : > { %3542 = vmatprep.subr.bf16.mxu0 %v4542_v0  ;;  %v4063_v59 = vld [vmem:[#allocation8 + $0x2c0] sm:$0xff]   ;;  %v4064_v61 = vld [vmem:[#allocation8 + $0x2c8] sm:$0xff]   ;;  %v4037_v62 = vld [vmem:[#allocation8 + $0x10] sm:$0xff]  }
 0x135   : > { %3561 = vmatpush3.bf16.msra.mxu1 %v4038_v19  ;;  %v4065_v63 = vld [vmem:[#allocation8 + $0x2d0] sm:$0xff]   ;;  %v4039_v1 = vld [vmem:[#allocation8 + $0x18] sm:$0xff]   ;;  %v4041_v3 = vld [vmem:[#allocation8 + $0x20] sm:$0xff]  }
 0x136   : > { %3562 = vmatprep.subr.bf16.mxu1 %v4542_v0  ;;  %v4066_v2 = vld [vmem:[#allocation8 + $0x2d8] sm:$0xff]   ;;  %v4067_v4 = vld [vmem:[#allocation8 + $0x2e0] sm:$0xff]   ;;  %v4043_v5 = vld [vmem:[#allocation8 + $0x28] sm:$0xff]  }
 0x137   : > { %3543 = vmatpush3.bf16.msra.mxu0 %v4004_v6  ;;  %v4068_v6 = vld [vmem:[#allocation8 + $0x2e8] sm:$0xff]   ;;  %v4070_v11 = vld [vmem:[#allocation8 + $0x2f8] sm:$0xff]   ;;  %v3203_v13 = vld [vmem:[#allocation9 + $0x4] ss:$0 sm:$0xff] }
 0x138   : > { %3544 = vmatprep.subr.bf16.mxu0 %v4542_v0 }
 0x139   : > { %3563 = vmatpush3.bf16.msra.mxu1 %v4040_v21 }
 0x13a   : > { %3564 = vmatprep.subr.bf16.mxu1 %v4542_v0 }
 0x13b   : > { %3545 = vmatpush3.bf16.msra.mxu0 %v4005_v7  ;;  %v4045_v7 = vld [vmem:[#allocation8 + $0x30] sm:$0xff]  }
 0x13c   : > { %3546 = vmatprep.subr.bf16.mxu0 %v4542_v0 }
 0x13d   : > { %3565 = vmatpush3.bf16.msra.mxu1 %v4042_v23  ;;  %v3212_v23 = vld [vmem:[#allocation9 + $0x8] ss:$0 sm:$0xff] }
 0x13e   : > { %3566 = vmatprep.subr.bf16.mxu1 %v4542_v0 }
 0x13f   : > { %3547 = vmatpush3.bf16.msra.mxu0 %v4006_v8  ;;  %v4069_v8 = vld [vmem:[#allocation8 + $0x2f0] sm:$0xff]  }
 0x140   : > { %3572 = vmatprep.subr.bf16.mxu0 %v4542_v0 }
 0x141   : > { %3567 = vmatpush3.bf16.msra.mxu1 %v4044_v25 }
 0x142   : > { %3549 = vmatmul.mubr.bf16.vlgmr.msra.gmra.mrb[0].mxu0 %v4965_v9  ;;  %3592 = vmatprep.subr.bf16.mxu1 %v4542_v0 }
 0x143   : > { %3573 = vmatpush3.bf16.msra.mxu0 %v4007_v10  ;;  %3588 = vmatprep.mubr.msk.bf16.mxu0 %vm4543_vm0, %v4542_v0  ;;  %v4047_v10 = vld [vmem:[#allocation8 + $0x38] sm:$0xff]  }
 0x144   : > { %3574 = vmatprep.subr.bf16.mxu0 %v4542_v0  ;;  %3569 = vmatmul.mubr.bf16.vlgmr.msra.gmra.mrb[0].mxu1 %v4965_v9 }
 0x145   : > { %3593 = vmatpush3.bf16.msra.mxu1 %v4046_v27  ;;  %3608 = vmatprep.mubr.msk.bf16.mxu1 %vm4543_vm0, %v4542_v0 }
 0x146   : > { %3594 = vmatprep.subr.bf16.mxu1 %v4542_v0 }
 0x147   : > { %3575 = vmatpush3.bf16.msra.mxu0 %v4008_v12  ;;  %v5052_v12 = vld [vmem:[%s4923_s19] sm:$0xf]  ;;  %s4423_s19 = scalar_lea.vmem %s5193_s29, 64 }
 0x148   : > { %3576 = vmatprep.subr.bf16.mxu0 %v4542_v0  ;;  %p4424_p7 = scmp.ne.s32.totalorder %s5193_s29, %s4423_s19  ;;  %p4431_p6 = scmp.lt.s32.totalorder %s4429_s24, %s4423_s19 }
 0x149   : > { %3595 = vmatpush3.bf16.msra.mxu1 %v4048_v29 }
 0x14a   : > { %3596 = vmatprep.subr.bf16.mxu1 %v4542_v0  ;;  %p4425_p2 = pnand %p4424_p7, %p5299_p5  ;;  %p4432_p10 = por %p4431_p6, %p4430_p11 }
 0x14b   : > { %3577 = vmatpush3.bf16.msra.mxu0 %v4009_v14 }
 0x14c   : > { %3578 = vmatprep.subr.bf16.mxu0 %v4542_v0  ;;  %p4426_p4 = pneg %p4425_p2 }
 0x14d   : > { %3597 = vmatpush3.bf16.msra.mxu1 %v4049_v31 }
 0x14e   : > { %3598 = vmatprep.subr.bf16.mxu1 %v4542_v0  ;;  %p4433_p1 = pnand %p4432_p10, %p4426_p4 }
 0x14f   : > { %3579 = vmatpush3.bf16.msra.mxu0 %v4010_v16 }
 0x150   : > { %3580 = vmatprep.subr.bf16.mxu0 %v4542_v0 }
 0x151   : > { %3599 = vmatpush3.bf16.msra.mxu1 %v4050_v33 }
 0x152   : > { %3600 = vmatprep.subr.bf16.mxu1 %v4542_v0 }
 0x153   : > { %3581 = vmatpush3.bf16.msra.mxu0 %v4011_v18 }
 0x154   : > { %3582 = vmatprep.subr.bf16.mxu0 %v4542_v0 }
 0x155   : > { %3601 = vmatpush3.bf16.msra.mxu1 %v4051_v35 }
 0x156   : > { %3602 = vmatprep.subr.bf16.mxu1 %v4542_v0 }
 0x157   : > { %3583 = vmatpush3.bf16.msra.mxu0 %v4012_v20 }
 0x158   : > { %3584 = vmatprep.subr.bf16.mxu0 %v4542_v0 }
 0x159   : > { %3603 = vmatpush3.bf16.msra.mxu1 %v4052_v37  ;;  %v3239_v37 = vld [vmem:[#allocation9 + $0x6] ss:$0 sm:$0xff] }
 0x15a   : > { %3604 = vmatprep.subr.bf16.mxu1 %v4542_v0 }
 0x15b   : > { %3585 = vmatpush3.bf16.msra.mxu0 %v4013_v22 }
 0x15c   : > { %3586 = vmatprep.subr.bf16.mxu0 %v4542_v0 }
 0x15d   : > { %3605 = vmatpush3.bf16.msra.mxu1 %v4053_v39  ;;  %v3230_v39 = vld [vmem:[#allocation9 + $0x9] ss:$0 sm:$0xff] }
 0x15e   : > { %3606 = vmatprep.subr.bf16.mxu1 %v4542_v0 }
 0x15f   : > { %3587 = vmatpush3.bf16.msra.mxu0 %v4014_v24 }
 0x160   : > { %3612 = vmatprep.subr.bf16.mxu0 %v4542_v0 }
 0x161   : > { %3607 = vmatpush3.bf16.msra.mxu1 %v4054_v41 }
 0x162   : > { %3589 = vmatmul.mubr.bf16.vlgmr.msra.gmra.mrb[4].mxu0 %v4965_v9  ;;  %3632 = vmatprep.subr.bf16.mxu1 %v4542_v0 }
 0x163   : > { %3613 = vmatpush3.bf16.msra.mxu0 %v4015_v26  ;;  %3628 = vmatprep.mubr.msk.bf16.mxu0 %vm4543_vm0, %v4542_v0 }
 0x164   : > { %3614 = vmatprep.subr.bf16.mxu0 %v4542_v0  ;;  %3609 = vmatmul.mubr.bf16.vlgmr.msra.gmra.mrb[4].mxu1 %v4965_v9 }
 0x165   : > { %3633 = vmatpush3.bf16.msra.mxu1 %v4055_v43  ;;  %3648 = vmatprep.mubr.msk.bf16.mxu1 %vm4543_vm0, %v4542_v0 }
 0x166   : > { %3634 = vmatprep.subr.bf16.mxu1 %v4542_v0 }
 0x167   : > { %3615 = vmatpush3.bf16.msra.mxu0 %v4016_v28 }
 0x168   : > { %3616 = vmatprep.subr.bf16.mxu0 %v4542_v0 }
 0x169   : > { %3635 = vmatpush3.bf16.msra.mxu1 %v4056_v45 }
 0x16a   : > { %3636 = vmatprep.subr.bf16.mxu1 %v4542_v0 }
 0x16b   : > { %3617 = vmatpush3.bf16.msra.mxu0 %v4017_v30 }
 0x16c   : > { %3618 = vmatprep.subr.bf16.mxu0 %v4542_v0 }
 0x16d   : > { %3637 = vmatpush3.bf16.msra.mxu1 %v4057_v47 }
 0x16e   : > { %3638 = vmatprep.subr.bf16.mxu1 %v4542_v0 }
 0x16f   : > { %3619 = vmatpush3.bf16.msra.mxu0 %v4018_v32 }
 0x170   : > { %3620 = vmatprep.subr.bf16.mxu0 %v4542_v0 }
 0x171   : > { %3639 = vmatpush3.bf16.msra.mxu1 %v4058_v49 }
 0x172   : > { %3640 = vmatprep.subr.bf16.mxu1 %v4542_v0 }
 0x173   : > { %3621 = vmatpush3.bf16.msra.mxu0 %v4019_v34 }
 0x174   : > { %3622 = vmatprep.subr.bf16.mxu0 %v4542_v0 }
 0x175   : > { %3641 = vmatpush3.bf16.msra.mxu1 %v4059_v51  ;;  %v3257_v51 = vld [vmem:[#allocation9 + $0x7] ss:$0 sm:$0xff] }
 0x176   : > { %3642 = vmatprep.subr.bf16.mxu1 %v4542_v0 }
 0x177   : > { %3623 = vmatpush3.bf16.msra.mxu0 %v4020_v36 }
 0x178   : > { %3624 = vmatprep.subr.bf16.mxu0 %v4542_v0 }
 0x179   : > { %3643 = vmatpush3.bf16.msra.mxu1 %v4060_v53  ;;  %v3248_v53 = vld [vmem:[#allocation9 + $0xa] ss:$0 sm:$0xff] }
 0x17a   : > { %3644 = vmatprep.subr.bf16.mxu1 %v4542_v0 }
 0x17b   : > { %3625 = vmatpush3.bf16.msra.mxu0 %v4021_v38 }
 0x17c   : > { %3626 = vmatprep.subr.bf16.mxu0 %v4542_v0 }
 0x17d   : > { %3645 = vmatpush3.bf16.msra.mxu1 %v4061_v55 }
 0x17e   : > { %3646 = vmatprep.subr.bf16.mxu1 %v4542_v0 }
 0x17f   : > { %3627 = vmatpush3.bf16.msra.mxu0 %v4022_v40 }
 0x180   : > { %3652 = vmatprep.subr.bf16.mxu0 %v4542_v0 }
 0x181   : > { %3647 = vmatpush3.bf16.msra.mxu1 %v4062_v57 }
 0x182   : > { %3629 = vmatmul.mubr.bf16.vlgmr.msra.gmra.mrb[8].mxu0 %v4965_v9  ;;  %3672 = vmatprep.subr.bf16.mxu1 %v4542_v0 }
 0x183   : > { %3653 = vmatpush3.bf16.msra.mxu0 %v4023_v42  ;;  %3668 = vmatprep.mubr.msk.bf16.mxu0 %vm4543_vm0, %v4542_v0 }
 0x184   : > { %3654 = vmatprep.subr.bf16.mxu0 %v4542_v0  ;;  %3649 = vmatmul.mubr.bf16.vlgmr.msra.gmra.mrb[8].mxu1 %v4965_v9 }
 0x185   : > { %3673 = vmatpush3.bf16.msra.mxu1 %v4063_v59  ;;  %3688 = vmatprep.mubr.msk.bf16.mxu1 %vm4543_vm0, %v4542_v0 }
 0x186   : > { %3674 = vmatprep.subr.bf16.mxu1 %v4542_v0 }
 0x187   : > { %3655 = vmatpush3.bf16.msra.mxu0 %v4024_v44 }
 0x188   : > { %3656 = vmatprep.subr.bf16.mxu0 %v4542_v0 }
 0x189   : > { %3675 = vmatpush3.bf16.msra.mxu1 %v4064_v61 }
 0x18a   : > { %3676 = vmatprep.subr.bf16.mxu1 %v4542_v0 }
 0x18b   : > { %3657 = vmatpush3.bf16.msra.mxu0 %v4025_v46 }
 0x18c   : > { %3658 = vmatprep.subr.bf16.mxu0 %v4542_v0 }
 0x18d   : > { %3677 = vmatpush3.bf16.msra.mxu1 %v4065_v63 }
 0x18e   : > { %3678 = vmatprep.subr.bf16.mxu1 %v4542_v0 }
 0x18f   : > { %3659 = vmatpush3.bf16.msra.mxu0 %v4026_v48 }
 0x190   : > { %3660 = vmatprep.subr.bf16.mxu0 %v4542_v0 }
 0x191   : > { %3679 = vmatpush3.bf16.msra.mxu1 %v4066_v2  ;;  %v3275_v2 = vld [vmem:[#allocation9] ss:$0 sm:$0xff] }
 0x192   : > { %3680 = vmatprep.subr.bf16.mxu1 %v4542_v0 }
 0x193   : > { %3661 = vmatpush3.bf16.msra.mxu0 %v4027_v50 }
 0x194   : > { %3662 = vmatprep.subr.bf16.mxu0 %v4542_v0 }
 0x195   : > { %3681 = vmatpush3.bf16.msra.mxu1 %v4067_v4 }
 0x196   : > { %3682 = vmatprep.subr.bf16.mxu1 %v4542_v0 }
 0x197   : > { %3663 = vmatpush3.bf16.msra.mxu0 %v4028_v52 }
 0x198   : > { %3664 = vmatprep.subr.bf16.mxu0 %v4542_v0 }
 0x199   : > { %3683 = vmatpush3.bf16.msra.mxu1 %v4068_v6 }
 0x19a   : > { %3684 = vmatprep.subr.bf16.mxu1 %v4542_v0 }
 0x19b   : > { %3665 = vmatpush3.bf16.msra.mxu0 %v4029_v54 }
 0x19c   : > { %3666 = vmatprep.subr.bf16.mxu0 %v4542_v0 }
 0x19d   : > { %3685 = vmatpush3.bf16.msra.mxu1 %v4069_v8 }
 0x19e   : > { %3686 = vmatprep.subr.bf16.mxu1 %v4542_v0 }
 0x19f   : > { %3667 = vmatpush3.bf16.msra.mxu0 %v4031_v56 }
 0x1a0   : > { %3692 = vmatprep.subr.bf16.mxu0 %v4542_v0 }
 0x1a1   : > { %3687 = vmatpush3.bf16.msra.mxu1 %v4070_v11 }
 0x1a2   : > { %3669 = vmatmul.mubr.bf16.vlgmr.msra.gmra.mrb[12].mxu0 %v4965_v9  ;;  %3712 = vmatprep.subr.bf16.mxu1 %v4542_v0 }
 0x1a3   : > { %3693 = vmatpush3.bf16.msra.mxu0 %v4033_v58  ;;  %3708 = vmatprep.mubr.msk.bf16.mxu0 %vm4543_vm0, %v4542_v0 }
 0x1a4   : > { %3694 = vmatprep.subr.bf16.mxu0 %v4542_v0  ;;  %3689 = vmatmul.mubr.bf16.vlgmr.msra.gmra.mrb[12].mxu1 %v4965_v9  ;;  %v3221_v9 = vld [vmem:[#allocation9 + $0x5] ss:$0 sm:$0xff] }
 0x1a5   : > { %3714 = vmatprep.mubr.msk.bf16.mxu1 %vm4543_vm0, %v4542_v0 }
 0x1a7   : > { %3695 = vmatpush3.bf16.msra.mxu0 %v4035_v60 }
 0x1a8   : > { %3696 = vmatprep.subr.bf16.mxu0 %v4542_v0 }
 0x1ab   : > { %3697 = vmatpush3.bf16.msra.mxu0 %v4037_v62 }
 0x1ac   : > { %3698 = vmatprep.subr.bf16.mxu0 %v4542_v0 }
 0x1af   : > { %3699 = vmatpush3.bf16.msra.mxu0 %v4039_v1 }
 0x1b0   : > { %3700 = vmatprep.subr.bf16.mxu0 %v4542_v0 }
 0x1b3   : > { %3701 = vmatpush3.bf16.msra.mxu0 %v4041_v3 }
 0x1b4   : > { %3702 = vmatprep.subr.bf16.mxu0 %v4542_v0 }
 0x1b7   : > { %3703 = vmatpush3.bf16.msra.mxu0 %v4043_v5  ;;  %v3266_v5 = vld [vmem:[#allocation9 + $0xb] ss:$0 sm:$0xff] }
 0x1b8   : > { %3704 = vmatprep.subr.bf16.mxu0 %v4542_v0 }
 0x1bb   : > { %3705 = vmatpush3.bf16.msra.mxu0 %v4045_v7 }
 0x1bc   : > { %3706 = vmatprep.subr.bf16.mxu0 %v4542_v0 }
 0x1bf   : > { %3707 = vmatpush3.bf16.msra.mxu0 %v4047_v10 }
 0x1c0   : > { %3744 = vmatprep.subr.bf16.mxu0 %v4542_v0 }
 0x1c2   : > { %3709 = vmatmul.mubr.bf16.vlgmr.msra.gmra.mrb[16].mxu0 %v5052_v12 }
 0x1c3   : > { %3746 = vmatprep.mubr.msk.bf16.mxu0 %vm4543_vm0, %v4542_v0 }
 0x215   : > { %v608_v14 = vpop.f32.mrb[0].mxu0 }
 0x216   : > { %v609_v15 = vadd.f32 %v3203_v13, %v608_v14  ;;  %v3550_v16 = vpop.f32.mrb[1].mxu0 }
 0x217   : > { %v611_v17 = vpop.f32.mrb[2].mxu0  ;;  %v721_v27 = vpop.f32.mrb[0].mxu1 }
 0x218   : > { %v727_v18 = vpack.c.bf16 %v609_v15, %v609_v15  ;;  %v3551_v19 = vpop.f32.mrb[3].mxu0  ;;  %v722_v30 = vadd.f32 %v3212_v23, %v721_v27  ;;  %v3570_v31 = vpop.f32.mrb[1].mxu1 }
 0x219   : > { %v724_v32 = vpop.f32.mrb[2].mxu1 }
 0x21a   : > { %729 = vst.msk [vmem:[#allocation2] sm:$0xf] %vm728_vm1, %v727_v18  ;;  %v730_v33 = vpack.c.bf16 %v722_v30, %v722_v30  ;;  %v3571_v34 = vpop.f32.mrb[3].mxu1 }
 0x21b   : > { %v4071_v34 = vld [vmem:[#allocation8 + $0x40] sm:$0xff]  }
 0x21c   : > { %732 = vst.msk [vmem:[#allocation2 + $0x10] sm:$0xf] %vm728_vm1, %v730_v33 }
 0x221   : > { %v1549_v20 = vld [vmem:[#allocation2] sm:$0xf] }
 0x222   : > { %v1563_v21 = vsel %vm1558_vm2, %v1549_v20, 0  ;;  %v5081_v20 = vld [vmem:[%s428_s2] ss:$0 sm:$0xff] }
 0x223   : > { %3713 = vmatpush3.bf16.xpose.msra.mxu1 %v1563_v21  ;;  %v1551_v4 = vld [vmem:[#allocation2 + $0x10] sm:$0xf] }
 0x224   : > { %3718 = vmatprep.subr.bf16.mxu1 %v4542_v0  ;;  %v1623_v14 = vsel %vm1621_vm3, %v1551_v4, 0 }
 0x235   : > { %v840_v22 = vpop.f32.mrb[4].mxu0 }
 0x236   : > { %v841_v24 = vadd.f32 %v3221_v9, %v840_v22  ;;  %v3590_v25 = vpop.f32.mrb[5].mxu0 }
 0x237   : > { %v843_v26 = vpop.f32.mrb[6].mxu0  ;;  %v953_v43 = vpop.f32.mrb[4].mxu1 }
 0x238   : > { %v959_v28 = vpack.c.bf16 %v841_v24, %v841_v24  ;;  %v3591_v29 = vpop.f32.mrb[7].mxu0  ;;  %v954_v46 = vadd.f32 %v3230_v39, %v953_v43  ;;  %v3610_v47 = vpop.f32.mrb[5].mxu1  ;;  %v4075_v39 = vld [vmem:[#allocation8 + $0x60] sm:$0xff]   ;;  %v4079_v43 = vld [vmem:[#allocation11] sm:$0xff]  }
 0x239   : > { %v956_v48 = vpop.f32.mrb[6].mxu1 }
 0x23a   : > { %961 = vst.msk [vmem:[#allocation2 + $0x4] sm:$0xf] %vm728_vm1, %v959_v28  ;;  %v962_v49 = vpack.c.bf16 %v954_v46, %v954_v46  ;;  %v3611_v50 = vpop.f32.mrb[7].mxu1 }
 0x23c   : > { %964 = vst.msk [vmem:[#allocation2 + $0x14] sm:$0xf] %vm728_vm1, %v962_v49 }
 0x241   : > { %v1785_v35 = vld [vmem:[#allocation2 + $0x4] sm:$0xf] }
 0x242   : > { %v1792_v36 = vsel %vm1558_vm2, %v1785_v35, 0 }
 0x243   : > { %3745 = vmatpush3.bf16.xpose.msra.mxu0 %v1792_v36  ;;  %v4072_v36 = vld [vmem:[#allocation8 + $0x48] sm:$0xff]  }
 0x244   : > { %3750 = vmatprep.subr.bf16.mxu0 %v4542_v0 }
 0x255   : > { %v1072_v38 = vpop.f32.mrb[8].mxu0 }
 0x256   : > { %v1073_v40 = vadd.f32 %v3239_v37, %v1072_v38  ;;  %v3630_v41 = vpop.f32.mrb[9].mxu0  ;;  %v4073_v37 = vld [vmem:[#allocation8 + $0x50] sm:$0xff]   ;;  %v4074_v38 = vld [vmem:[#allocation8 + $0x58] sm:$0xff]  }
 0x257   : > { %v1075_v42 = vpop.f32.mrb[10].mxu0  ;;  %v1185_v57 = vpop.f32.mrb[8].mxu1  ;;  %v4077_v41 = vld [vmem:[#allocation8 + $0x70] sm:$0xff]  }
 0x258   : > { %v1191_v44 = vpack.c.bf16 %v1073_v40, %v1073_v40  ;;  %v3631_v45 = vpop.f32.mrb[11].mxu0  ;;  %v1186_v60 = vadd.f32 %v3248_v53, %v1185_v57  ;;  %v3650_v61 = vpop.f32.mrb[9].mxu1  ;;  %v4076_v40 = vld [vmem:[#allocation8 + $0x68] sm:$0xff]   ;;  %v4078_v42 = vld [vmem:[#allocation8 + $0x78] sm:$0xff]  }
 0x259   : > { %v1188_v62 = vpop.f32.mrb[10].mxu1  ;;  %v1787_v57 = vld [vmem:[#allocation2 + $0x14] sm:$0xf] }
 0x25a   : > { %1193 = vst.msk [vmem:[#allocation2 + $0x8] sm:$0xf] %vm728_vm1, %v1191_v44  ;;  %v1194_v63 = vpack.c.bf16 %v1186_v60, %v1186_v60  ;;  %v3651_v1 = vpop.f32.mrb[11].mxu1  ;;  %v4080_v44 = vld [vmem:[#allocation11 + $0x8] sm:$0xff]   ;;  %v1850_v60 = vsel %vm1621_vm3, %v1787_v57, 0 }
 0x25c   : > { %1196 = vst.msk [vmem:[#allocation2 + $0x18] sm:$0xf] %vm728_vm1, %v1194_v63 }
 0x261   : > { %v2123_v46 = vld [vmem:[#allocation2 + $0x8] sm:$0xf] }
 0x275   : > { %v1304_v52 = vpop.f32.mrb[12].mxu0 }
 0x276   : > { %v1305_v54 = vadd.f32 %v3257_v51, %v1304_v52  ;;  %v3670_v55 = vpop.f32.mrb[13].mxu0  ;;  %v2130_v51 = vsel %vm1558_vm2, %v2123_v46, 0  ;;  %v3287_v52 = vld [vmem:[#allocation9 + $0x1] ss:$0 sm:$0xff]  ;;  %v2125_v46 = vld [vmem:[#allocation2 + $0x18] sm:$0xf] }
 0x277   : > { %v1307_v56 = vpop.f32.mrb[14].mxu0  ;;  %v1417_v10 = vpop.f32.mrb[12].mxu1 }
 0x278   : > { %v1423_v58 = vpack.c.bf16 %v1305_v54, %v1305_v54  ;;  %v3671_v59 = vpop.f32.mrb[15].mxu0  ;;  %v1418_v15 = vadd.f32 %v3266_v5, %v1417_v10  ;;  %v3690_v16 = vpop.f32.mrb[13].mxu1 }
 0x279   : > { %v1420_v17 = vpop.f32.mrb[14].mxu1 }
 0x27a   : > { %1425 = vst.msk [vmem:[#allocation2 + $0xc] sm:$0xf] %vm728_vm1, %v1423_v58  ;;  %v1426_v18 = vpack.c.bf16 %v1418_v15, %v1418_v15  ;;  %v3691_v19 = vpop.f32.mrb[15].mxu1 }
 0x27c   : > { %1428 = vst.msk [vmem:[#allocation2 + $0x1c] sm:$0xf] %vm728_vm1, %v1426_v18  ;;  %v4081_v18 = vld [vmem:[#allocation11 + $0x10] sm:$0xff]  }
 0x295   : > { %v1542_v3 = vpop.f32.mrb[16].mxu0 }
 0x296   : > { %v1543_v6 = vadd.f32 %v3275_v2, %v1542_v3  ;;  %v3710_v7 = vpop.f32.mrb[17].mxu0 }
 0x297   : > { %v1545_v8 = vpop.f32.mrb[18].mxu0 }
 0x298   : > { %v1548_v11 = vpack.c.bf16 %v1543_v6, %v1543_v6  ;;  %v3711_v13 = vpop.f32.mrb[19].mxu0 }
 0x29a   : > { %3715 = vmatmul.mubr.msk.bf16.vlgmr.msra.gmra.mrb[16].mxu1 %vm1558_vm2, %v1548_v11 }
 0x29b   : > { %3719 = vmatpush3.bf16.msra.mxu1 %v1623_v14  ;;  %3720 = vmatprep.mubr.msk.bf16.mxu1 %vm4543_vm0, %v4542_v0 }
 0x29c   : > { %3724 = vmatprep.subr.bf16.mxu1 %v4542_v0 }
 0x36d   : > { %v1599_v21 = vpop.f32.mrb[16].mxu1 }
 0x36e   : > { %v1600_v9 = vadd.f32 %v5081_v20, %v1599_v21  ;;  %v3716_v22 = vpop.f32.mrb[17].mxu1  ;;  %v4082_v21 = vld [vmem:[#allocation11 + $0x18] sm:$0xff]  }
 0x36f   : > { %v1602_v23 = vpop.f32.mrb[18].mxu1  ;;  %v4083_v22 = vld [vmem:[#allocation8 + $0x80] sm:$0xff]  }
 0x370   : > { %v3717_v24 = vpop.f32.mrb[19].mxu1  ;;  %v1606_v25 = vsel %vm1605_vm4, %v1600_v9, -inf }
 0x371   : > { %1607 = vmax.xlane.f32.xlu0 %v1606_v25 }
 0x3fe   : > { %v1608_v26 = vpop.xlane.xlu0 %1607 }
 0x3ff   : > { %v1609_v27 = vsub.f32 %v1600_v9, %v1608_v26 }
 0x401   : > { %v1610_v28 = vmul.f32 1.442695, %v1609_v27  ;;  %v4084_v27 = vld [vmem:[#allocation8 + $0x88] sm:$0xff]  }
 0x403   : > { %4143 = vpow2.f32 %v1610_v28  ;;  %v4085_v28 = vld [vmem:[#allocation8 + $0x90] sm:$0xff]  }
 0x40d   : > { %v4144_v29 = vpop.eup %4143 }
 0x40e   : > { %v1612_v30 = vsel %vm1605_vm4, %v4144_v29, 0.0 }
 0x40f   : > { %1613 = vadd.xlane.f32.xlu0 %v1612_v30  ;;  %v4087_v30 = vld [vmem:[#allocation8 + $0xa0] sm:$0xff]  }
 0x49c   : > { %v1614_v31 = vpop.xlane.xlu0 %1613 }
 0x49d   : > { %4145 = vrcp.f32 %v1614_v31  ;;  %v4088_v31 = vld [vmem:[#allocation8 + $0xa8] sm:$0xff]  }
 0x4a7   : > { %v4146_v32 = vpop.eup %4145 }
 0x4a8   : > { %v1616_v33 = vmul.f32 %v4146_v32, %v4144_v29  ;;  %v4086_v29 = vld [vmem:[#allocation8 + $0x98] sm:$0xff]   ;;  %v4089_v32 = vld [vmem:[#allocation8 + $0xb0] sm:$0xff]  }
 0x4aa   : > { %v1617_v35 = vpack.c.bf16 %v1616_v33, %v1616_v33  ;;  %v4090_v33 = vld [vmem:[#allocation8 + $0xb8] sm:$0xff]  }
 0x4ac   : > { %3721 = vmatmul.mubr.msk.bf16.vlgmr.msra.gmra.mrb[20].mxu1 %vm1605_vm4, %v1617_v35 }
 0x4ad   : > { %3725 = vmatpush3.bf16.msra.mxu1 %v4071_v34  ;;  %3740 = vmatprep.mubr.msk.bf16.mxu1 %vm4543_vm0, %v4542_v0  ;;  %v2407_v34 = vld [vmem:[#allocation2 + $0xc] sm:$0xf] }
 0x4ae   : > { %3726 = vmatprep.subr.bf16.mxu1 %v4542_v0  ;;  %v2414_v35 = vsel %vm1558_vm2, %v2407_v34, 0 }
 0x4b1   : > { %3727 = vmatpush3.bf16.msra.mxu1 %v4072_v36 }
 0x4b2   : > { %3728 = vmatprep.subr.bf16.mxu1 %v4542_v0 }
 0x4b5   : > { %3729 = vmatpush3.bf16.msra.mxu1 %v4073_v37 }
 0x4b6   : > { %3730 = vmatprep.subr.bf16.mxu1 %v4542_v0 }
 0x4b9   : > { %3731 = vmatpush3.bf16.msra.mxu1 %v4074_v38 }
 0x4ba   : > { %3732 = vmatprep.subr.bf16.mxu1 %v4542_v0 }
 0x4bd   : > { %3733 = vmatpush3.bf16.msra.mxu1 %v4075_v39 }
 0x4be   : > { %3734 = vmatprep.subr.bf16.mxu1 %v4542_v0 }
 0x4c1   : > { %3735 = vmatpush3.bf16.msra.mxu1 %v4076_v40 }
 0x4c2   : > { %3736 = vmatprep.subr.bf16.mxu1 %v4542_v0 }
 0x4c5   : > { %3737 = vmatpush3.bf16.msra.mxu1 %v4077_v41  ;;  %v3304_v41 = vld [vmem:[#allocation9 + $0x2] ss:$0 sm:$0xff] }
 0x4c6   : > { %3738 = vmatprep.subr.bf16.mxu1 %v4542_v0 }
 0x4c9   : > { %3739 = vmatpush3.bf16.msra.mxu1 %v4078_v42 }
 0x4ca   : > { %3764 = vmatprep.subr.bf16.mxu1 %v4542_v0 }
 0x4cc   : > { %3741 = vmatmul.mubr.bf16.vlgmr.msra.gmra.mrb[24].mxu1 %v5052_v12 }
 0x4cd   : > { %3765 = vmatpush3.bf16.msra.mxu1 %v4079_v43  ;;  %3768 = vmatprep.mubr.msk.bf16.mxu1 %vm4543_vm0, %v4542_v0 }
 0x4ce   : > { %3766 = vmatprep.subr.bf16.mxu1 %v4542_v0 }
 0x4d1   : > { %3767 = vmatpush3.bf16.msra.mxu1 %v4080_v44 }
 0x4d2   : > { %3792 = vmatprep.subr.bf16.mxu1 %v4542_v0 }
 0x57f   : > { %v1659_v45 = vpop.f32.mrb[20].mxu1 }
 0x580   : > { %v1665_v47 = vpack.c.bf16 %v1659_v45, %v1659_v45  ;;  %v3722_v48 = vpop.f32.mrb[21].mxu1 }
 0x581   : > { %v1662_v49 = vpop.f32.mrb[22].mxu1 }
 0x582   : > { %v3723_v50 = vpop.f32.mrb[23].mxu1  ;;  %3769 = vmatmul.mubr.msk.bf16.vlgmr.msra.gmra.mrb[28].mxu1 %vm1558_vm2, %v1665_v47  ;;  %v2188_v49 = vsel %vm1621_vm3, %v2125_v46, 0 }
 0x583   : > { %3793 = vmatpush3.bf16.xpose.msra.mxu1 %v2130_v51  ;;  %3794 = vmatprep.mubr.msk.bf16.mxu1 %vm4543_vm0, %v4542_v0 }
 0x584   : > { %3798 = vmatprep.subr.bf16.mxu1 %v4542_v0 }
 0x59f   : > { %v1777_v53 = vpop.f32.mrb[24].mxu1 }
 0x5a0   : > { %v1778_v54 = vadd.f32 %v3287_v52, %v1777_v53  ;;  %v3742_v55 = vpop.f32.mrb[25].mxu1 }
 0x5a1   : > { %v1780_v56 = vpop.f32.mrb[26].mxu1 }
 0x5a2   : > { %v1783_v58 = vpack.c.bf16 %v1778_v54, %v1778_v54  ;;  %v3743_v59 = vpop.f32.mrb[27].mxu1 }
 0x5a4   : > { %3747 = vmatmul.mubr.msk.bf16.vlgmr.msra.gmra.mrb[20].mxu0 %vm1558_vm2, %v1783_v58 }
 0x5a5   : > { %3751 = vmatpush3.bf16.msra.mxu0 %v1850_v60  ;;  %3752 = vmatprep.mubr.msk.bf16.mxu0 %vm4543_vm0, %v4542_v0 }
 0x5a6   : > { %3756 = vmatprep.subr.bf16.mxu0 %v4542_v0 }
 0x655   : > { %v5112_v61 = vpop.f32.mrb[28].mxu1 }
 0x656   : > { %v3770_v62 = vpop.f32.mrb[29].mxu1 }
 0x657   : > { %v2005_v63 = vpop.f32.mrb[30].mxu1 }
 0x658   : > { %v3771_v1 = vpop.f32.mrb[31].mxu1 }
 0x659   : > { %v4091_v1 = vld [vmem:[#allocation11 + $0x20] sm:$0xff]  }
 0x677   : > { %v1828_v2 = vpop.f32.mrb[20].mxu0 }
 0x678   : > { %v1829_v3 = vadd.f32 %v5081_v20, %v1828_v2  ;;  %v3748_v4 = vpop.f32.mrb[21].mxu0 }
 0x679   : > { %v1831_v5 = vpop.f32.mrb[22].mxu0 }
 0x67a   : > { %v3749_v6 = vpop.f32.mrb[23].mxu0  ;;  %v1834_v7 = vsel %vm1605_vm4, %v1829_v3, -inf  ;;  %v4093_v5 = vld [vmem:[#allocation8 + $0xc0] sm:$0xff]  }
 0x67b   : > { %1835 = vmax.xlane.f32.xlu1 %v1834_v7 }
 0x708   : > { %v1836_v8 = vpop.xlane.xlu1 %1835 }
 0x709   : > { %v1837_v10 = vsub.f32 %v1829_v3, %v1836_v8  ;;  %v4092_v3 = vld [vmem:[#allocation11 + $0x28] sm:$0xff]  }
 0x70b   : > { %v1838_v11 = vmul.f32 1.442695, %v1837_v10 }
 0x70d   : > { %4147 = vpow2.f32 %v1838_v11  ;;  %v4094_v11 = vld [vmem:[#allocation8 + $0xc8] sm:$0xff]  }
 0x717   : > { %v4148_v13 = vpop.eup %4147 }
 0x718   : > { %v1840_v14 = vsel %vm1605_vm4, %v4148_v13, 0.0 }
 0x719   : > { %1841 = vadd.xlane.f32.xlu1 %v1840_v14  ;;  %v4096_v14 = vld [vmem:[#allocation8 + $0xd8] sm:$0xff]  }
 0x7a6   : > { %v1842_v15 = vpop.xlane.xlu1 %1841 }
 0x7a7   : > { %4149 = vrcp.f32 %v1842_v15  ;;  %v4097_v15 = vld [vmem:[#allocation8 + $0xe0] sm:$0xff]  }
 0x7b1   : > { %v4150_v16 = vpop.eup %4149 }
 0x7b2   : > { %v1844_v17 = vmul.f32 %v4150_v16, %v4148_v13  ;;  %v4095_v13 = vld [vmem:[#allocation8 + $0xd0] sm:$0xff]   ;;  %v4098_v16 = vld [vmem:[#allocation8 + $0xe8] sm:$0xff]  }
 0x7b4   : > { %v1845_v19 = vpack.c.bf16 %v1844_v17, %v1844_v17  ;;  %v4099_v17 = vld [vmem:[#allocation8 + $0xf0] sm:$0xff]  }
 0x7b6   : > { %3753 = vmatmul.mubr.msk.bf16.vlgmr.msra.gmra.mrb[24].mxu0 %vm1605_vm4, %v1845_v19 }
 0x7b7   : > { %3757 = vmatpush3.bf16.msra.mxu0 %v4081_v18  ;;  %3760 = vmatprep.mubr.msk.bf16.mxu0 %vm4543_vm0, %v4542_v0  ;;  %v4100_v18 = vld [vmem:[#allocation8 + $0xf8] sm:$0xff]  }
 0x7b8   : > { %3758 = vmatprep.subr.bf16.mxu0 %v4542_v0 }
 0x7bb   : > { %3759 = vmatpush3.bf16.msra.mxu0 %v4082_v21 }
 0x7bc   : > { %3772 = vmatprep.subr.bf16.mxu0 %v4542_v0 }
 0x889   : > { %v1886_v9 = vpop.f32.mrb[24].mxu0 }
 0x88a   : > { %v1892_v23 = vpack.c.bf16 %v1886_v9, %v1886_v9  ;;  %v3754_v24 = vpop.f32.mrb[25].mxu0 }
 0x88b   : > { %v1889_v25 = vpop.f32.mrb[26].mxu0  ;;  %v3318_v24 = vld [vmem:[#allocation9 + $0x3] ss:$0 sm:$0xff] }
 0x88c   : > { %v3755_v26 = vpop.f32.mrb[27].mxu0  ;;  %3761 = vmatmul.mubr.msk.bf16.vlgmr.msra.gmra.mrb[28].mxu0 %vm1558_vm2, %v1892_v23 }
 0x88d   : > { %3773 = vmatpush3.bf16.msra.mxu0 %v4083_v22  ;;  %3788 = vmatprep.mubr.msk.bf16.mxu0 %vm4543_vm0, %v4542_v0 }
 0x88e   : > { %3774 = vmatprep.subr.bf16.mxu0 %v4542_v0 }
 0x891   : > { %3775 = vmatpush3.bf16.msra.mxu0 %v4084_v27 }
 0x892   : > { %3776 = vmatprep.subr.bf16.mxu0 %v4542_v0 }
 0x895   : > { %3777 = vmatpush3.bf16.msra.mxu0 %v4085_v28 }
 0x896   : > { %3778 = vmatprep.subr.bf16.mxu0 %v4542_v0 }
 0x899   : > { %3779 = vmatpush3.bf16.msra.mxu0 %v4086_v29  ;;  %v2409_v29 = vld [vmem:[#allocation2 + $0x1c] sm:$0xf] }
 0x89a   : > { %3780 = vmatprep.subr.bf16.mxu0 %v4542_v0 }
 0x89d   : > { %3781 = vmatpush3.bf16.msra.mxu0 %v4087_v30 }
 0x89e   : > { %3782 = vmatprep.subr.bf16.mxu0 %v4542_v0 }
 0x8a1   : > { %3783 = vmatpush3.bf16.msra.mxu0 %v4088_v31 }
 0x8a2   : > { %3784 = vmatprep.subr.bf16.mxu0 %v4542_v0 }
 0x8a5   : > { %3785 = vmatpush3.bf16.msra.mxu0 %v4089_v32  ;;  %v2472_v32 = vsel %vm1621_vm3, %v2409_v29, 0  ;;  %v3334_v29 = vld [vmem:[#allocation17 + $0x1] ss:$0 sm:$0xff] }
 0x8a6   : > { %3786 = vmatprep.subr.bf16.mxu0 %v4542_v0 }
 0x8a9   : > { %3787 = vmatpush3.bf16.msra.mxu0 %v4090_v33 }
 0x8aa   : > { %3832 = vmatprep.subr.bf16.mxu0 %v4542_v0 }
 0x8ac   : > { %3789 = vmatmul.mubr.bf16.vlgmr.msra.gmra.mrb[32].mxu0 %v5052_v12 }
 0x8ad   : > { %3834 = vmatprep.mubr.msk.bf16.mxu0 %vm4543_vm0, %v4542_v0 }
 0x8b2   : > { %3833 = vmatpush3.bf16.xpose.msra.mxu0 %v2414_v35 }
 0x8b3   : > { %3838 = vmatprep.subr.bf16.mxu0 %v4542_v0 }
 0x95f   : > { %v1947_v36 = vpop.f32.mrb[28].mxu0 }
 0x960   : > { %v5139_v37 = vadd.f32 %v5112_v61, %v1947_v36  ;;  %v3762_v38 = vpop.f32.mrb[29].mxu0 }
 0x961   : > { %v1950_v39 = vpop.f32.mrb[30].mxu0 }
 0x962   : > { %v3763_v40 = vpop.f32.mrb[31].mxu0 }
 0x97f   : > { %v2115_v42 = vpop.f32.mrb[32].mxu0 }
 0x980   : > { %v2116_v43 = vadd.f32 %v3304_v41, %v2115_v42  ;;  %v3790_v44 = vpop.f32.mrb[33].mxu0 }
 0x981   : > { %v2118_v45 = vpop.f32.mrb[34].mxu0 }
 0x982   : > { %v2121_v47 = vpack.c.bf16 %v2116_v43, %v2116_v43  ;;  %v3791_v48 = vpop.f32.mrb[35].mxu0 }
 0x983   : > { %v4102_v48 = vld [vmem:[#allocation11 + $0x38] sm:$0xff]  }
 0x984   : > { %3795 = vmatmul.mubr.msk.bf16.vlgmr.msra.gmra.mrb[32].mxu1 %vm1558_vm2, %v2121_v47  ;;  %v4101_v47 = vld [vmem:[#allocation11 + $0x30] sm:$0xff]  }
 0x985   : > { %3799 = vmatpush3.bf16.msra.mxu1 %v2188_v49  ;;  %3800 = vmatprep.mubr.msk.bf16.mxu1 %vm4543_vm0, %v4542_v0 }
 0x986   : > { %3804 = vmatprep.subr.bf16.mxu1 %v4542_v0 }
 0xa57   : > { %v2166_v50 = vpop.f32.mrb[32].mxu1 }
 0xa58   : > { %v2167_v51 = vadd.f32 %v5081_v20, %v2166_v50  ;;  %v3796_v52 = vpop.f32.mrb[33].mxu1 }
 0xa59   : > { %v2169_v53 = vpop.f32.mrb[34].mxu1 }
 0xa5a   : > { %v3797_v54 = vpop.f32.mrb[35].mxu1  ;;  %v2172_v55 = vsel %vm1605_vm4, %v2167_v51, -inf }
 0xa5b   : > { %2173 = vmax.xlane.f32.xlu0 %v2172_v55  ;;  %v4103_v54 = vld [vmem:[#allocation12] ss:$8 sps:$4 sm:$0xff]   ;;  %v4105_v55 = vld [vmem:[#allocation12 + $0x4] ss:$8 sps:$4 sm:$0xff]  }
 0xae8   : > { %v2174_v56 = vpop.xlane.xlu0 %2173 }
 0xae9   : > { %v2175_v57 = vsub.f32 %v2167_v51, %v2174_v56  ;;  %v4108_v56 = vld [vmem:[#allocation12 + $0x14] ss:$8 sps:$4 sm:$0xff]  }
 0xaeb   : > { %v2176_v58 = vmul.f32 1.442695, %v2175_v57  ;;  %v4106_v57 = vld [vmem:[#allocation12 + $0x10] ss:$8 sps:$4 sm:$0xff]  }
 0xaed   : > { %4151 = vpow2.f32 %v2176_v58 }
 0xaf7   : > { %v4152_v59 = vpop.eup %4151 }
 0xaf8   : > { %v2178_v60 = vsel %vm1605_vm4, %v4152_v59, 0.0 }
 0xaf9   : > { %2179 = vadd.xlane.f32.xlu1 %v2178_v60 }
 0xb86   : > { %v2180_v61 = vpop.xlane.xlu1 %2179 }
 0xb87   : > { %4153 = vrcp.f32 %v2180_v61  ;;  %v1435_v61 = vunpack.c.l.bf16 %v5052_v12 }
 0xb91   : > { %v4154_v62 = vpop.eup %4153 }
 0xb92   : > { %v2182_v63 = vmul.f32 %v4154_v62, %v4152_v59  ;;  %v3332_v59 = vld [vmem:[#allocation17 + $0x4] ss:$0 sm:$0xff] }
 0xb94   : > { %v2183_v2 = vpack.c.bf16 %v2182_v63, %v2182_v63 }
 0xb96   : > { %3801 = vmatmul.mubr.msk.bf16.vlgmr.msra.gmra.mrb[36].mxu1 %vm1605_vm4, %v2183_v2 }
 0xb97   : > { %3805 = vmatpush3.bf16.msra.mxu1 %v4091_v1  ;;  %3808 = vmatprep.mubr.msk.bf16.mxu1 %vm4543_vm0, %v4542_v0 }
 0xb98   : > { %3806 = vmatprep.subr.bf16.mxu1 %v4542_v0 }
 0xb9b   : > { %3807 = vmatpush3.bf16.msra.mxu1 %v4092_v3 }
 0xb9c   : > { %3812 = vmatprep.subr.bf16.mxu1 %v4542_v0 }
 0xc69   : > { %v2224_v4 = vpop.f32.mrb[36].mxu1 }
 0xc6a   : > { %v2230_v6 = vpack.c.bf16 %v2224_v4, %v2224_v4  ;;  %v3802_v7 = vpop.f32.mrb[37].mxu1  ;;  %v4111_v4 = vld [vmem:[#allocation12 + $0x24] ss:$8 sps:$4 sm:$0xff]  }
 0xc6b   : > { %v2227_v8 = vpop.f32.mrb[38].mxu1  ;;  %v4112_v7 = vld [vmem:[#allocation12 + $0x30] ss:$8 sps:$4 sm:$0xff]  }
 0xc6c   : > { %v3803_v10 = vpop.f32.mrb[39].mxu1  ;;  %3809 = vmatmul.mubr.msk.bf16.vlgmr.msra.gmra.mrb[40].mxu1 %vm1558_vm2, %v2230_v6  ;;  %v4114_v6 = vld [vmem:[#allocation12 + $0x34] ss:$8 sps:$4 sm:$0xff]   ;;  %v4117_v8 = vld [vmem:[#allocation12 + $0x44] ss:$8 sps:$4 sm:$0xff]  }
 0xc6d   : > { %3813 = vmatpush3.bf16.msra.mxu1 %v4093_v5  ;;  %3828 = vmatprep.mubr.msk.bf16.mxu1 %vm4543_vm0, %v4542_v0  ;;  %v4109_v5 = vld [vmem:[#allocation12 + $0x20] ss:$8 sps:$4 sm:$0xff]  }
 0xc6e   : > { %3814 = vmatprep.subr.bf16.mxu1 %v4542_v0  ;;  %v4115_v10 = vld [vmem:[#allocation12 + $0x40] ss:$8 sps:$4 sm:$0xff]  }
 0xc71   : > { %3815 = vmatpush3.bf16.msra.mxu1 %v4094_v11  ;;  %v4120_v11 = vld [vmem:[#allocation12 + $0x54] ss:$8 sps:$4 sm:$0xff]  }
 0xc72   : > { %3816 = vmatprep.subr.bf16.mxu1 %v4542_v0 }
 0xc75   : > { %3817 = vmatpush3.bf16.msra.mxu1 %v4095_v13  ;;  %v4118_v13 = vld [vmem:[#allocation12 + $0x50] ss:$8 sps:$4 sm:$0xff]  }
 0xc76   : > { %3818 = vmatprep.subr.bf16.mxu1 %v4542_v0 }
 0xc79   : > { %3819 = vmatpush3.bf16.msra.mxu1 %v4096_v14  ;;  %v4123_v14 = vld [vmem:[#allocation12 + $0x64] ss:$8 sps:$4 sm:$0xff]  }
 0xc7a   : > { %3820 = vmatprep.subr.bf16.mxu1 %v4542_v0 }
 0xc7d   : > { %3821 = vmatpush3.bf16.msra.mxu1 %v4097_v15  ;;  %v4121_v15 = vld [vmem:[#allocation12 + $0x60] ss:$8 sps:$4 sm:$0xff]  }
 0xc7e   : > { %3822 = vmatprep.subr.bf16.mxu1 %v4542_v0 }
 0xc81   : > { %3823 = vmatpush3.bf16.msra.mxu1 %v4098_v16  ;;  %v4126_v16 = vld [vmem:[#allocation12 + $0x74] ss:$8 sps:$4 sm:$0xff]  }
 0xc82   : > { %3824 = vmatprep.subr.bf16.mxu1 %v4542_v0 }
 0xc85   : > { %3825 = vmatpush3.bf16.msra.mxu1 %v4099_v17  ;;  %v4124_v17 = vld [vmem:[#allocation12 + $0x70] ss:$8 sps:$4 sm:$0xff]  }
 0xc86   : > { %3826 = vmatprep.subr.bf16.mxu1 %v4542_v0 }
 0xc89   : > { %3827 = vmatpush3.bf16.msra.mxu1 %v4100_v18 }
 0xc8c   : > { %3829 = vmatmul.mubr.bf16.vlgmr.msra.gmra.mrb[44].mxu1 %v5052_v12  ;;  %v4544_v12 = vmov 0  }
 0xd3f   : > { %v2285_v19 = vpop.f32.mrb[40].mxu1 }
 0xd40   : > { %v2291_v21 = vadd.f32 %v2285_v19, %v5139_v37  ;;  %v3810_v9 = vpop.f32.mrb[41].mxu1 }
 0xd41   : > { %v2288_v22 = vpop.f32.mrb[42].mxu1 }
 0xd42   : > { %v3811_v23 = vpop.f32.mrb[43].mxu1 }
 0xd5f   : > { %v2399_v25 = vpop.f32.mrb[44].mxu1 }
 0xd60   : > { %v2400_v26 = vadd.f32 %v3318_v24, %v2399_v25  ;;  %v3830_v27 = vpop.f32.mrb[45].mxu1 }
 0xd61   : > { %v2402_v28 = vpop.f32.mrb[46].mxu1  ;;  %v3333_v27 = vld [vmem:[#allocation17] ss:$0 sm:$0xff] }
 0xd62   : > { %v2405_v30 = vpack.c.bf16 %v2400_v26, %v2400_v26  ;;  %v3831_v31 = vpop.f32.mrb[47].mxu1 }
 0xd64   : > { %3835 = vmatmul.mubr.msk.bf16.vlgmr.msra.gmra.mrb[36].mxu0 %vm1558_vm2, %v2405_v30 }
 0xd65   : > { %3839 = vmatpush3.bf16.msra.mxu0 %v2472_v32  ;;  %3840 = vmatprep.mubr.msk.bf16.mxu0 %vm4543_vm0, %v4542_v0 }
 0xd66   : > { %3844 = vmatprep.subr.bf16.mxu0 %v4542_v0 }
 0xe37   : > { %v2450_v33 = vpop.f32.mrb[36].mxu0 }
 0xe38   : > { %v2451_v34 = vadd.f32 %v5081_v20, %v2450_v33  ;;  %v3836_v35 = vpop.f32.mrb[37].mxu0  ;;  %v4127_v33 = vld [vmem:[#allocation15 + $0x40] sm:$0xff]  }
 0xe39   : > { %v2453_v36 = vpop.f32.mrb[38].mxu0  ;;  %3510 = vmatprep.subr.bf16.mxu1 %v4127_v33  ;;  %v4129_v35 = vld [vmem:[#allocation15 + $0x48] sm:$0xff]  }
 0xe3a   : > { %v3837_v37 = vpop.f32.mrb[39].mxu0  ;;  %v2456_v38 = vsel %vm1605_vm4, %v2451_v34, -inf  ;;  %v4130_v36 = vld [vmem:[#allocation15 + $0x8] sm:$0xff]  }
 0xe3b   : > { %2457 = vmax.xlane.f32.xlu0 %v2456_v38  ;;  %v4131_v37 = vld [vmem:[#allocation15 + $0x50] sm:$0xff]  }
 0xe3c   : > { %v4132_v38 = vld [vmem:[#allocation15 + $0x10] sm:$0xff]  }
 0xec8   : > { %v2458_v39 = vpop.xlane.xlu0 %2457 }
 0xec9   : > { %v2459_v40 = vsub.f32 %v2451_v34, %v2458_v39  ;;  %v4128_v34 = vld [vmem:[#allocation15] sm:$0xff]   ;;  %v4133_v39 = vld [vmem:[#allocation15 + $0x58] sm:$0xff]  }
 0xeca   : > { %3511 = vmatpush3.bf16.msra.mxu1 %v4128_v34 }
 0xecb   : > { %v2460_v41 = vmul.f32 1.442695, %v2459_v40  ;;  %3512 = vmatprep.subr.bf16.mxu1 %v4129_v35  ;;  %v4134_v40 = vld [vmem:[#allocation15 + $0x18] sm:$0xff]  }
 0xecd   : > { %4155 = vpow2.f32 %v2460_v41  ;;  %v4135_v41 = vld [vmem:[#allocation15 + $0x60] sm:$0xff]  }
 0xece   : > { %3513 = vmatpush3.bf16.msra.mxu1 %v4130_v36 }
 0xecf   : > { %3514 = vmatprep.subr.bf16.mxu1 %v4131_v37  ;;  %v3368_v37 = vld [vmem:[#allocation17 + $0x2] ss:$0 sm:$0xff] }
 0xed2   : > { %3515 = vmatpush3.bf16.msra.mxu1 %v4132_v38 }
 0xed3   : > { %3516 = vmatprep.subr.bf16.mxu1 %v4133_v39 }
 0xed6   : > { %3517 = vmatpush3.bf16.msra.mxu1 %v4134_v40 }
 0xed7   : > { %v4156_v42 = vpop.eup %4155  ;;  %3518 = vmatprep.subr.bf16.mxu1 %v4135_v41 }
 0xed8   : > { %v2462_v43 = vsel %vm1605_vm4, %v4156_v42, 0.0 }
 0xed9   : > { %2463 = vadd.xlane.f32.xlu1 %v2462_v43  ;;  %v4137_v43 = vld [vmem:[#allocation15 + $0x68] sm:$0xff]  }
 0xf66   : > { %v2464_v44 = vpop.xlane.xlu1 %2463 }
 0xf67   : > { %4157 = vrcp.f32 %v2464_v44  ;;  %v4138_v44 = vld [vmem:[#allocation15 + $0x28] sm:$0xff]  }
 0xf71   : > { %v4158_v45 = vpop.eup %4157 }
 0xf72   : > { %v2466_v46 = vmul.f32 %v4158_v45, %v4156_v42  ;;  %v4136_v42 = vld [vmem:[#allocation15 + $0x20] sm:$0xff]   ;;  %v4139_v45 = vld [vmem:[#allocation15 + $0x70] sm:$0xff]  }
 0xf73   : > { %3519 = vmatpush3.bf16.msra.mxu1 %v4136_v42 }
 0xf74   : > { %v2467_v20 = vpack.c.bf16 %v2466_v46, %v2466_v46  ;;  %3520 = vmatprep.subr.bf16.mxu1 %v4137_v43  ;;  %v4140_v46 = vld [vmem:[#allocation15 + $0x30] sm:$0xff]  }
 0xf76   : > { %3841 = vmatmul.mubr.msk.bf16.vlgmr.msra.gmra.mrb[40].mxu0 %vm1605_vm4, %v2467_v20  ;;  %v4142_v20 = vld [vmem:[#allocation15 + $0x38] sm:$0xff]  }
 0xf77   : > { %3845 = vmatpush3.bf16.msra.mxu0 %v4101_v47  ;;  %3848 = vmatprep.mubr.msk.bf16.mxu0 %vm4543_vm0, %v4542_v0  ;;  %v4141_v47 = vld [vmem:[#allocation15 + $0x78] sm:$0xff]  }
 0xf78   : > { %3846 = vmatprep.subr.bf16.mxu0 %v4542_v0  ;;  %3521 = vmatpush3.bf16.msra.mxu1 %v4138_v44 }
 0xf79   : > { %3522 = vmatprep.subr.bf16.mxu1 %v4139_v45 }
 0xf7b   : > { %3847 = vmatpush3.bf16.msra.mxu0 %v4102_v48  ;;  %v2642_v48 = vlaneseq }
 0xf7c   : > { %2732 = vmatprep.subr.bf16.mxu0 %v4105_v55  ;;  %3523 = vmatpush3.bf16.msra.mxu1 %v4140_v46 }
 0xf7d   : > { %3524 = vmatprep.subr.bf16.mxu1 %v4141_v47 }
 0xf80   : > { %3525 = vmatpush3.bf16.msra.mxu1 %v4142_v20 }
0x1049   : > { %v2508_v49 = vpop.f32.mrb[40].mxu0 }
0x104a   : > { %v2514_v50 = vpack.c.bf16 %v2508_v49, %v2508_v49  ;;  %v3842_v51 = vpop.f32.mrb[41].mxu0  ;;  %v2643_v49 = vshrl.u32 %v2642_v48, 7 }
0x104b   : > { %v2511_v52 = vpop.f32.mrb[42].mxu0  ;;  %v2640_v51 = vld [vmem:[#allocation14] sm:$0x3] }
0x104c   : > { %v3843_v53 = vpop.f32.mrb[43].mxu0  ;;  %3849 = vmatmul.mubr.msk.bf16.vlgmr.msra.gmra.mrb[44].mxu0 %vm1558_vm2, %v2514_v50  ;;  %v2644_v50 = vsub.s32 0, %v2643_v49  ;;  %v2648_v52 = vsub.s32 1, %v2643_v49 }
0x104d   : > { %2733 = vmatpush1.bf16.msra.mxu0 %v4103_v54  ;;  %2764 = vmatprep.mubr.bf16.mxu0 %v4544_v12 }
0x104e   : > { %2734 = vmatprep.subr.bf16.mxu0 %v4108_v56  ;;  %v2645_v53 = vrot.slane %v2640_v51, %v2644_v50  ;;  %v2649_v54 = vrot.slane %v2640_v51, %v2648_v52 }
0x1051   : > { %2735 = vmatpush1.bf16.msra.mxu0 %v4106_v57 }
0x1052   : > { %2736 = vmatprep.subr.bf16.mxu0 %v4111_v4 }
0x1055   : > { %2737 = vmatpush1.bf16.msra.mxu0 %v4109_v5 }
0x1056   : > { %2738 = vmatprep.subr.bf16.mxu0 %v4114_v6 }
0x1059   : > { %2739 = vmatpush1.bf16.msra.mxu0 %v4112_v7 }
0x105a   : > { %2740 = vmatprep.subr.bf16.mxu0 %v4117_v8 }
0x105d   : > { %2741 = vmatpush1.bf16.msra.mxu0 %v4115_v10 }
0x105e   : > { %2742 = vmatprep.subr.bf16.mxu0 %v4120_v11 }
0x1061   : > { %2743 = vmatpush1.bf16.msra.mxu0 %v4118_v13 }
0x1062   : > { %2744 = vmatprep.subr.bf16.mxu0 %v4123_v14 }
0x1065   : > { %2745 = vmatpush1.bf16.msra.mxu0 %v4121_v15 }
0x1066   : > { %2746 = vmatprep.subr.bf16.mxu0 %v4126_v16 }
0x1069   : > { %2747 = vmatpush1.bf16.msra.mxu0 %v4124_v17 }
0x111f   : > { %v2569_v58 = vpop.f32.mrb[44].mxu0 }
0x1120   : > { %v2575_v60 = vadd.f32 %v2569_v58, %v2291_v21  ;;  %v3850_v0 = vpop.f32.mrb[45].mxu0 }
0x1121   : > { %v2572_v62 = vpop.f32.mrb[46].mxu0 }
0x1122   : > { %v2593_v63 = vadd.f32 %v3332_v59, %v2575_v60  ;;  %v3851_v1 = vpop.f32.mrb[47].mxu0 }
0x1124   : > { %v2594_v2 = vadd.f32 %v2593_v63, %v1435_v61 }
0x1126   : > { %2595 = vadd.xlane.f32.xlu0 %v2594_v2  ;;  %v2599_v3 = vmul.f32 %v2594_v2, %v2594_v2 }
0x1128   : > { %2600 = vadd.xlane.f32.xlu1 %v2599_v3 }
0x11b3   : > { %v2596_v18 = vpop.xlane.xlu0 %2595 }
0x11b4   : > { %v2598_v19 = vmul.f32 0.0078125, %v2596_v18 }
0x11b5   : > { %v2601_v21 = vpop.xlane.xlu1 %2600 }
0x11b6   : > { %v2603_v9 = vmul.f32 %v2598_v19, %v2598_v19  ;;  %v2602_v22 = vmul.f32 0.0078125, %v2601_v21  ;;  %v2605_v25 = vsub.f32 %v2594_v2, %v2598_v19  ;;  %v3351_v19 = vld [vmem:[#allocation17 + $0x5] ss:$0 sm:$0xff] }
0x11b8   : > { %v2604_v23 = vsub.f32 %v2602_v22, %v2603_v9 }
0x11ba   : > { %v2606_v24 = vadd.f32 1e-12, %v2604_v23 }
0x11bc   : > { %4159 = vrsqrt.f32 %v2606_v24 }
0x11c6   : > { %v4160_v26 = vpop.eup %4159 }
0x11c7   : > { %v2608_v28 = vmul.f32 %v4160_v26, %v2605_v25 }
0x11c9   : > { %v2615_v30 = vmul.f32 %v3333_v27, %v2608_v28 }
0x11cb   : > { %v5180_v31 = vadd.f32 %v3334_v29, %v2615_v30 }
0x11cd   : > { %v2623_v32 = vpack.c.bf16 %v5180_v31, %v5180_v31 }
0x11cf   : > { %2765 = vmatmul.mubr.bf16.vlgmr.msra.gmra.mrb[48].mxu0 %v2623_v32 }
0x12a2   : > { %v2766_v55 = vpop.f32.mrb[48].mxu0 }
0x12a3   : > { %v2767_v56 = vadd.f32 %v2766_v55, %v2645_v53  ;;  %v2768_v57 = vpop.f32.mrb[49].mxu0 }
0x12a4   : > { %v2769_v58 = vadd.f32 %v2768_v57, %v2649_v54  ;;  %v2770_v59 = vpop.f32.mrb[50].mxu0 }
0x12a5   : > { %v2775_v60 = vmul.f32 0.044715, %v2767_v56  ;;  %v2771_v0 = vpop.f32.mrb[51].mxu0  ;;  %v2773_v10 = vmul.f32 0.5, %v2767_v56 }
0x12a6   : > { %v2776_v61 = vmul.f32 0.044715, %v2769_v58  ;;  %v2774_v12 = vmul.f32 0.5, %v2769_v58 }
0x12a7   : > { %v2777_v62 = vmul.f32 %v2775_v60, %v2767_v56 }
0x12a8   : > { %v2778_v63 = vmul.f32 %v2776_v61, %v2769_v58 }
0x12a9   : > { %v2779_v1 = vmul.f32 %v2777_v62, %v2767_v56 }
0x12aa   : > { %v2780_v2 = vmul.f32 %v2778_v63, %v2769_v58 }
0x12ab   : > { %v2781_v3 = vadd.f32 %v2779_v1, %v2767_v56 }
0x12ac   : > { %v2782_v4 = vadd.f32 %v2780_v2, %v2769_v58 }
0x12ad   : > { %v2783_v5 = vmul.f32 0.7978846, %v2781_v3 }
0x12ae   : > { %v2784_v6 = vmul.f32 0.7978846, %v2782_v4 }
0x12af   : > { %4161 = vtanh.f32 %v2783_v5 }
0x12b0   : > { %4163 = vtanh.f32 %v2784_v6 }
0x12b9   : > { %v4162_v7 = vpop.eup %4161 }
0x12ba   : > { %v4164_v8 = vpop.eup %4163  ;;  %v2787_v11 = vadd.f32 1.0, %v4162_v7 }
0x12bb   : > { %v2788_v13 = vadd.f32 1.0, %v4164_v8 }
0x12bc   : > { %v2789_v14 = vmul.f32 %v2787_v11, %v2773_v10 }
0x12bd   : > { %v2790_v15 = vmul.f32 %v2788_v13, %v2774_v12 }
0x12be   : > { %v2791_v17 = vpack.c.bf16 %v2789_v14, %v2789_v14 }
0x12bf   : > { %v2792_v16 = vpack.c.bf16 %v2790_v15, %v2790_v15 }
0x12c1   : > { %2959 = vmatprep.mubr.bf16.mxu1 %v2792_v16 }
0x12c2   : > { %2960 = vmatmul.mubr.bf16.vlgmr.msra.gmra.mrb[48].mxu1 %v2791_v17 }
0x1395   : > { %v3526_v18 = vpop.f32.mrb[48].mxu1 }
0x1396   : > { %v3527_v21 = vpop.f32.mrb[49].mxu1 }
0x1397   : > { %v3528_v9 = vadd.f32 %v3527_v21, %v3526_v18  ;;  %v3529_v22 = vpop.f32.mrb[50].mxu1 }
0x1398   : > { %v3530_v23 = vpop.f32.mrb[51].mxu1 }
0x1399   : > { %v2962_v24 = vadd.f32 %v3528_v9, %v3351_v19 }
0x139b   : > { %v2967_v25 = vadd.f32 %v2962_v24, %v5180_v31  ;;  %v3369_v31 = vld [vmem:[#allocation17 + $0x3] ss:$0 sm:$0xff] }
0x139d   : > { %2968 = vadd.xlane.f32.xlu0 %v2967_v25  ;;  %v2971_v26 = vmul.f32 %v2967_v25, %v2967_v25 }
0x139f   : > { %2972 = vadd.xlane.f32.xlu1 %v2971_v26 }
0x142a   : > { %v2969_v27 = vpop.xlane.xlu0 %2968 }
0x142b   : > { %v2970_v28 = vmul.f32 0.0078125, %v2969_v27 }
0x142c   : > { %v2973_v29 = vpop.xlane.xlu1 %2972 }
0x142d   : > { %v2975_v30 = vmul.f32 %v2970_v28, %v2970_v28  ;;  %v2974_v32 = vmul.f32 0.0078125, %v2973_v29  ;;  %v2977_v35 = vsub.f32 %v2967_v25, %v2970_v28 }
0x142f   : > { %v2976_v33 = vsub.f32 %v2974_v32, %v2975_v30 }
0x1431   : > { %v2978_v34 = vadd.f32 1e-12, %v2976_v33 }
0x1433   : > { %4165 = vrsqrt.f32 %v2978_v34 }
0x143d   : > { %v4166_v36 = vpop.eup %4165 }
0x143e   : > { %v2980_v38 = vmul.f32 %v4166_v36, %v2977_v35 }
0x1440   : > { %v2987_v39 = vmul.f32 %v3368_v37, %v2980_v38 }
0x1442   : > { %v2994_v40 = vadd.f32 %v3369_v31, %v2987_v39 }
0x1444   : > { %v2995_v41 = vpack.c.bf16 %v2994_v40, %v2994_v40 }
0x1446   : > { %2996 = vst [vmem:[%s494_s22] sm:$0xf] %v2995_v41 }
0x1447   : > { %4436 = shalt.err (!%p4433_p1)
}
0x1448   : > { %s4437_s16 = scalar_lea.hbm %s5191_s0, 64  ;;  %s4441_s20 = scalar_lea.hbm %s5298_s28, 128 }
0x1449   : > { %p4438_p9 = scmp.ne.s32.totalorder %s5191_s0, %s4437_s16  ;;  %p4442_p12 = scmp.lt.u32.totalorder %s5191_s0, %s5298_s28 }
0x144a   : > { %p4443_p13 = scmp.lt.u32.totalorder %s4441_s20, %s4437_s16  ;;  %p4445_p7 = scmp.lt.u32.totalorder %s4437_s16, %s5191_s0 }
0x144b   : > { %p4439_p8 = pnand %p4438_p9, %p5299_p5 }
0x144c   : > { %p4444_p0 = por %p4443_p13, %p4442_p12 }
0x144d   : > { %p4440_p3 = pneg %p4439_p8 }
0x144e   : > { %p4446_p2 = por %p4445_p7, %p4444_p0 }
0x1450   : > { %p4447_p4 = pnand %p4446_p2, %p4440_p3 }
0x1452   : > { %4450 = shalt.err (!%p4447_p4)
}
0x1453   : > { %3884 = dma.vmem_to_hbm [thread:$0]  (%p5299_p5), %s5193_s29, 64, %s5191_s0, %s2998_s17  }
0x1454 PF: > { %s3024_s23 = sand.u32 1, %s4505_s30   ;;  %p5300_p11 = scmp.ne.s32.totalorder %s5281_s26, 0 }
0x1455   : > { %p5301_p6 = scmp.ge.s32.totalorder %s4525_s14, 2  ;;  %s3025_s12 = scalar_lea.sflag [#allocation5], %s3024_s23 }
0x1457   : > { %p3916_p10 = pnand %p5301_p6, %p5300_p11 }
0x1459   : > { %4500 = dma.done.wait (!%p3916_p10), %s3025_s12, 64  }
0x145a   : > { %4502 = vsyncadd (!%p3916_p10), %s3025_s12, 4294967232  ;;  %s31_s14 = sadd.s32 1, %s4525_s14   ;;  %s5302_s30 = smov %s4509_s10 }
0x145b   : > { %p28_p1 = scmp.ge.s32.totalorder %s31_s14, 4   ;;  %s5303_s10 = smov %s4513_s11 }
0x145c   : > { %s5304_s11 = smov %s4835_s21  ;;  %s5305_s12 = smov %s4521_s13 }
0x145d   : > { %s5306_s13 = smov %s5308_s27  ;;  %30 = sbr.rel (!%p28_p1) target bundleno = 16 (0x10), region = 191 }
0x1464   :  { %3030 = vsyncpa [#allocation4], 1 }
0x1465   :  { %3032 = vsyncpa [#allocation4 + $0x1], 1 }
0x1466   :  { %3033 = vsyncpa [#allocation7], 1 }
0x1467   :  { %3035 = vsyncpa [#allocation7 + $0x1], 1 }
0x1468   :  { %3036 = vsyncpa [#allocation10], 1 }
0x1469   :  { %3037 = vsyncpa [#allocation13], 1 }
0x146a   :  { %3038 = vsyncpa [#allocation16], 1 }
0x146b   :  { %3039 = vsyncpa [#allocation5], 1 }
0x146c   :  { %3041 = vsyncpa [#allocation5 + $0x1], 1 }

</bundles_post_ra>
